<compile_context>
chip_gen: v7x
topology: tpu7x:2x2x1
jax: 0.10.0
libtpu: 0.0.40
codegen_flags: <defaults>
</compile_context>

<pallas_src>
import functools

import jax
import jax.numpy as jnp
import numpy as np
from jax.experimental import pallas as pl
from jax.experimental.pallas import tpu as pltpu

EPS = 1e-5        # nn.InstanceNorm2d default eps
P_BIG = 4         # zero border of the H x W canvas (covers pad<=3 taps + flat-slice slack)
P_SMALL = 4       # zero border of the h x w (high-level) canvas -> Wc2=16, N2=h*16=128 (lane dense)


# --------------------------------------------------------------------------- fused kernel
def _fused_kernel(hi_ref, low_ref, prev_ref, mask_b_ref, mask_m_ref,
                  w_seb_ref, m_up_ref, w_g1_ref, w_g2_ref, w_up_ref,
                  o_ref,
                  col_ref, canv_a_ref, canv_b_ref,
                  *, in_c, out_c, H, W, h, w):
    Wc = W + 2 * P_BIG
    Wc2 = w + 2 * P_SMALL
    N = H * Wc                       # flattened "computed row band" of the big canvas
    N2 = h * Wc2                     # same for the high-level mini canvas (=128 for h=w=8)
    base = P_BIG * Wc
    base2 = P_SMALL * Wc2
    tot = (H + 2 * P_BIG) * Wc       # full big-canvas flat size

    mask_b = mask_b_ref[...]         # (1, N)  1.0 on valid (non-border) columns
    mask_m = mask_m_ref[...]         # (1, N2)

    def taps(kh, kw, wc, b):         # flat-lane offsets of a centered kh x kw stencil
        return [b + (ky - kh // 2) * wc + (kx - kw // 2)
                for ky in range(kh) for kx in range(kw)]

    def matmul_taps(src_ref, tap_list, w_ref, n):
        """Conv as ONE MXU matmul: stage (channel-range, offset) tap slices along K, dot."""
        k = 0
        for (c0, cn, off) in tap_list:
            col_ref[k:k + cn, 0:n] = src_ref[c0:c0 + cn, off:off + n]
            k += cn
        return jnp.dot(w_ref[...], col_ref[0:k, 0:n],
                       preferred_element_type=jnp.float32)          # (rows, n) f32

    def in_relu(acc, mask, count, mask_out):
        """InstanceNorm2d(affine=False) + ReLU, per row (= per channel/branch), masked stats."""
        am = acc * mask
        inv_cnt = 1.0 / count
        mean = jnp.sum(am, axis=1, keepdims=True) * inv_cnt
        var = jnp.maximum(jnp.sum(acc * am, axis=1, keepdims=True) * inv_cnt - mean * mean, 0.0)
        y = jnp.maximum((acc - mean) * jax.lax.rsqrt(var + EPS), 0.0)
        return y * mask if mask_out else y

    # Zero only the top/bottom border rows of the canvases; the left/right border columns
    # inside the band are rewritten (masked to zero) every iteration, the interior band is
    # always fully rewritten before it is read.
    canv_a_ref[:, 0:base] = jnp.zeros((in_c, base), jnp.bfloat16)
    canv_a_ref[:, base + N:tot] = jnp.zeros((in_c, tot - base - N), jnp.bfloat16)
    canv_b_ref[:, 0:base] = jnp.zeros((2 * out_c, base), jnp.bfloat16)
    canv_b_ref[:, base + N:tot] = jnp.zeros((2 * out_c, tot - base - N), jnp.bfloat16)

    # ---- SEB: CNA(3x3, 2*in_c -> in_c) on high level, bilinear x2 upsample (align_corners)
    #      as one matmul with a precomputed interpolation matrix, * low level.
    seb_taps = [(0, 2 * in_c, off) for off in taps(3, 3, Wc2, base2)]
    seb = in_relu(matmul_taps(hi_ref, seb_taps, w_seb_ref, N2), mask_m, h * w, False)
    up = jnp.dot(seb.astype(jnp.bfloat16), m_up_ref[...],
                 preferred_element_type=jnp.float32)                 # (in_c, N), 0 on borders
    level = up * low_ref[...]                                        # bf16 low -> f32 promote
    canv_a_ref[:, base:base + N] = level.astype(jnp.bfloat16)

    # ---- GCN stage 1: (7,1)->x_l and (1,7)->x_r branches fused into ONE matmul (M=2*out_c).
    t7v = taps(7, 1, Wc, base)
    t7h = taps(1, 7, Wc, base)
    hw = H * W
    g1_taps = ([(0, in_c, off) for off in t7v]          # 7 vertical tap slots (l1 branch)
               + [(0, in_c, off) for off in t7h])       # 7 horizontal tap slots (r1 branch)
    y1 = in_relu(matmul_taps(canv_a_ref, g1_taps, w_g1_ref, N), mask_b, hw, True)
    canv_b_ref[:, base:base + N] = y1.astype(jnp.bfloat16)   # rows 0:out_c = x_l, out_c: = x_r

    # ---- GCN stage 2: (1,7) on x_l and (7,1) on x_r fused into ONE block-diagonal matmul.
    g2_taps = ([(0, out_c, off) for off in t7h]               # x_l channels, horizontal taps
               + [(out_c, out_c, off) for off in t7v])        # x_r channels, vertical taps
    y2 = in_relu(matmul_taps(canv_b_ref, g2_taps, w_g2_ref, N), mask_b, hw, True)

    # ---- fused add3: gcn = x_l + x_r, + prev_feature -> upconv input canvas (first out_c ch).
    canv_b_ref[0:out_c, base:base + N] = (
        y2[0:out_c] + y2[out_c:2 * out_c] + prev_ref[...]).astype(jnp.bfloat16)

    # ---- upconv: polyphase ConvTranspose2d(3, stride 2, pad 1, out_pad 1): all 4 output
    #      phases (even/odd row x even/odd col) in ONE matmul over a 4-tap im2col.
    up_taps = [(0, out_c, base), (0, out_c, base + 1),
               (0, out_c, base + Wc), (0, out_c, base + Wc + 1)]
    yu = matmul_taps(canv_b_ref, up_taps, w_up_ref, N)                # (4*out_c, N) f32

    ym = yu * mask_b
    s4 = jnp.sum(ym, axis=1, keepdims=True)                           # (4*out_c, 1)
    ss4 = jnp.sum(yu * ym, axis=1, keepdims=True)
    s = s4[0:out_c] + s4[out_c:2 * out_c] + s4[2 * out_c:3 * out_c] + s4[3 * out_c:4 * out_c]
    ss = (ss4[0:out_c] + ss4[out_c:2 * out_c]
          + ss4[2 * out_c:3 * out_c] + ss4[3 * out_c:4 * out_c])
    inv_cnt = 1.0 / (4.0 * H * W)    # InstanceNorm over the whole (2H, 2W) output map
    mean = s * inv_cnt
    var = jnp.maximum(ss * inv_cnt - mean * mean, 0.0)
    inv = jax.lax.rsqrt(var + EPS)
    for p in range(4):               # phase order: ee, eo, oe, oo
        o_ref[p] = jnp.maximum((yu[p * out_c:(p + 1) * out_c] - mean) * inv, 0.0)


# --------------------------------------------------------------------------- parameters
def init_params(in_c, out_c, key):
    """Torch-layout weights; biases omitted (exactly cancelled by InstanceNorm(affine=False))."""
    ks = jax.random.split(key, 6)

    def conv_w(k, cout, cin, kh, kw):
        return jax.random.normal(k, (cout, cin, kh, kw), jnp.float32) / np.sqrt(cin * kh * kw)

    return {
        "seb": conv_w(ks[0], in_c, 2 * in_c, 3, 3),
        "l1": conv_w(ks[1], out_c, in_c, 7, 1),
        "l2": conv_w(ks[2], out_c, out_c, 1, 7),
        "r1": conv_w(ks[3], out_c, in_c, 1, 7),
        "r2": conv_w(ks[4], out_c, out_c, 7, 1),
        # ConvTranspose2d weight layout: (in_c, out_c, kh, kw)
        "up": jax.random.normal(ks[5], (out_c, out_c, 3, 3), jnp.float32) / np.sqrt(9 * out_c),
    }


def _bilinear_matrix(out_size, in_size):
    """1-D bilinear interpolation matrix, align_corners=True (UpsamplingBilinear2d)."""
    if in_size == 1:
        return np.ones((out_size, 1), np.float32)
    pos = np.arange(out_size, dtype=np.float64) * (in_size - 1) / (out_size - 1)
    lo = np.clip(np.floor(pos).astype(np.int64), 0, in_size - 2)
    frac = (pos - lo).astype(np.float32)
    m = np.zeros((out_size, in_size), np.float32)
    rows = np.arange(out_size)
    m[rows, lo] += 1.0 - frac
    m[rows, lo + 1] += frac
    return m


def pack_params(p, H, W, h, w):
    """Pack torch-layout weights into the fused-matmul forms the kernel consumes (bf16)."""
    bf = jnp.bfloat16
    out_c, in_c = p["l1"].shape[0], p["l1"].shape[1]

    def flat(wt):                      # Conv2d (Cout, Cin, kh, kw) -> (Cout, kh*kw*Cin)
        co, ci, kh, kw = wt.shape
        return jnp.transpose(wt, (0, 2, 3, 1)).reshape(co, kh * kw * ci)

    q = {"w_seb": flat(p["seb"]).astype(bf)}

    # GCN stage 1: rows [x_l | x_r], tap slots [7 vertical | 7 horizontal].
    zl = jnp.zeros((out_c, 7 * in_c), jnp.float32)
    q["w_g1"] = jnp.concatenate(
        [jnp.concatenate([flat(p["l1"]), zl], axis=1),
         jnp.concatenate([zl, flat(p["r1"])], axis=1)], axis=0).astype(bf)

    # GCN stage 2: rows [l2(x_l) | r2(x_r)], tap slots [7 horizontal (x_l ch) | 7 vertical (x_r ch)].
    z2 = jnp.zeros((out_c, 7 * out_c), jnp.float32)
    q["w_g2"] = jnp.concatenate(
        [jnp.concatenate([flat(p["l2"]), z2], axis=1),
         jnp.concatenate([z2, flat(p["r2"])], axis=1)], axis=0).astype(bf)

    # Polyphase split of ConvTranspose2d weight (Cin, Cout, 3, 3): all 4 phases stacked along
    # M, tap column blocks ordered [o, o+1, o+Wc, o+Wc+1]; unused taps are zero blocks.
    wt = p["up"]
    tp = lambda a: jnp.transpose(a, (1, 0))        # (Cin, Cout) -> (Cout, Cin)
    Z = jnp.zeros((out_c, out_c), jnp.float32)
    q["w_up"] = jnp.concatenate([
        jnp.concatenate([tp(wt[:, :, 1, 1]), Z, Z, Z], axis=1),                         # ee
        jnp.concatenate([tp(wt[:, :, 1, 2]), tp(wt[:, :, 1, 0]), Z, Z], axis=1),        # eo
        jnp.concatenate([tp(wt[:, :, 2, 1]), Z, tp(wt[:, :, 0, 1]), Z], axis=1),        # oe
        jnp.concatenate([tp(wt[:, :, 2, 2]), tp(wt[:, :, 2, 0]),
                         tp(wt[:, :, 0, 2]), tp(wt[:, :, 0, 0])], axis=1),              # oo
    ], axis=0).astype(bf)

    # Bilinear x2 (align_corners=True) upsample as one matmul mapping the SEB output's padded
    # row-band lanes (N2=128) directly onto the big canvas' padded row-band lanes (N).
    # TODO(synk): for large H/W replace the dense kron with separable row/col upsample matmuls
    # (O(H*h + W*w)) before this becomes the first buffer to blow v7x's 64 MiB VMEM.
    Wc, Wc2 = W + 2 * P_BIG, w + 2 * P_SMALL
    K = np.kron(_bilinear_matrix(H, h), _bilinear_matrix(W, w))          # (H*W, h*w)
    M = np.zeros((h * Wc2, H * Wc), np.float32)
    qidx = (np.arange(h)[:, None] * Wc2 + P_SMALL + np.arange(w)[None, :]).reshape(-1)
    ridx = (np.arange(H)[:, None] * Wc + P_BIG + np.arange(W)[None, :]).reshape(-1)
    M[np.ix_(qidx, ridx)] = K.T
    q["m_up"] = jnp.asarray(M, dtype=bf)
    return q


# --------------------------------------------------------------------------- forward
def exfuse_level_forward(low_level, high_level, prev_feature, packed):
    """NCHW in, NCHW out (matching ExFuseLevel.forward)."""
    B, in_c, H, W = low_level.shape
    _, two_in_c, h, w = high_level.shape
    _, out_c, _, _ = prev_feature.shape

    Wc, Wc2 = W + 2 * P_BIG, w + 2 * P_SMALL
    Hc, Hc2 = H + 2 * P_BIG, h + 2 * P_SMALL
    N, N2 = H * Wc, h * Wc2

    # NCHW -> channel-major, spatially flattened, zero-bordered (lane-dense) bf16 layouts.
    hi_p = jnp.pad(high_level.astype(jnp.bfloat16),
                   ((0, 0), (0, 0), (P_SMALL, P_SMALL), (P_SMALL, P_SMALL))
                   ).reshape(B, two_in_c, Hc2 * Wc2)
    low_p = jnp.pad(low_level.astype(jnp.bfloat16),
                    ((0, 0), (0, 0), (0, 0), (P_BIG, P_BIG))).reshape(B, in_c, N)
    prev_p = jnp.pad(prev_feature.astype(jnp.bfloat16),
                     ((0, 0), (0, 0), (0, 0), (P_BIG, P_BIG))).reshape(B, out_c, N)

    # Static valid-column masks (baked as small input arrays).
    col_b = np.arange(N) % Wc
    mask_b = jnp.asarray(((col_b >= P_BIG) & (col_b < P_BIG + W)).astype(np.float32)[None, :])
    col_m = np.arange(N2) % Wc2
    mask_m = jnp.asarray(((col_m >= P_SMALL) & (col_m < P_SMALL + w)).astype(np.float32)[None, :])

    # Widest im2col K used by any fused conv matmul.
    k_max = max(9 * two_in_c, 14 * in_c, 14 * out_c, 4 * out_c)

    kern = functools.partial(_fused_kernel, in_c=in_c, out_c=out_c, H=H, W=W, h=h, w=w)

    # TODO(synk): on single-TC chips (v5e/v6e) fold the batch into the lane axis ((C, B*N),
    # grid=(1,)) to amortize per-matmul/per-grid-step overheads; keep grid=(B,) on v7x.
    out = pl.pallas_call(
        kern,
        out_shape=jax.ShapeDtypeStruct((B, 4, out_c, N), jnp.float32),
        grid=(B,),
        in_specs=[
            pl.BlockSpec((None, two_in_c, Hc2 * Wc2), lambda b: (b, 0, 0)),
            pl.BlockSpec((None, in_c, N), lambda b: (b, 0, 0)),
            pl.BlockSpec((None, out_c, N), lambda b: (b, 0, 0)),
            pl.BlockSpec((1, N), lambda b: (0, 0)),
            pl.BlockSpec((1, N2), lambda b: (0, 0)),
            pl.BlockSpec(packed["w_seb"].shape, lambda b: (0, 0)),
            pl.BlockSpec(packed["m_up"].shape, lambda b: (0, 0)),
            pl.BlockSpec(packed["w_g1"].shape, lambda b: (0, 0)),
            pl.BlockSpec(packed["w_g2"].shape, lambda b: (0, 0)),
            pl.BlockSpec(packed["w_up"].shape, lambda b: (0, 0)),
        ],
        out_specs=pl.BlockSpec((None, 4, out_c, N), lambda b: (b, 0, 0, 0)),
        scratch_shapes=[
            pltpu.VMEM((k_max, N), jnp.bfloat16),            # im2col staging
            pltpu.VMEM((in_c, Hc * Wc), jnp.bfloat16),       # "level" canvas
            pltpu.VMEM((2 * out_c, Hc * Wc), jnp.bfloat16),  # 2-branch GCN / upconv-input canvas
        ],
        # TODO(synk): if an xprof profile shows one v7x TC idle, switch the batch axis to
        # pltpu.CORE_PARALLEL (plain "parallel" vs "arbitrary" barely changes codegen).
        compiler_params=pltpu.CompilerParams(
            dimension_semantics=("parallel",)),
    )(hi_p, low_p, prev_p, mask_b, mask_m,
      packed["w_seb"], packed["m_up"], packed["w_g1"], packed["w_g2"], packed["w_up"])

    # De-interleave the 4 polyphase outputs and drop border columns -> (B, out_c, 2H, 2W).
    # TODO(synk): downstream consumers could take the phase-major (B,4,out_c,N) layout directly
    # to avoid this extra HBM pass at large resolutions.
    out = out.reshape(B, 2, 2, out_c, H, Wc)[:, :, :, :, :, P_BIG:P_BIG + W]
    out = jnp.transpose(out, (0, 3, 4, 1, 5, 2)).reshape(B, out_c, 2 * H, 2 * W)
    return out


# --------------------------------------------------------------------------- main
if __name__ == "__main__":
    B, in_c, out_c, H, W = 2, 4, 8, 16, 16

    key = jax.random.PRNGKey(0)
    k1, k2, k3 = jax.random.split(key, 3)
    low_level = jax.random.normal(k1, (B, in_c, H, W), jnp.float32)              # NCHW
    high_level = jax.random.normal(k2, (B, 2 * in_c, H // 2, W // 2), jnp.float32)
    prev_feature = jax.random.normal(k3, (B, out_c, H, W), jnp.float32)

    params = init_params(in_c, out_c, jax.random.PRNGKey(42))
    packed = pack_params(params, H, W, H // 2, W // 2)

    fwd = jax.jit(functools.partial(exfuse_level_forward, packed=packed))
    out = fwd(low_level, high_level, prev_feature)
    jax.block_until_ready(out)

    assert out.shape == (B, out_c, 2 * H, 2 * W), out.shape
    assert bool(jnp.all(jnp.isfinite(out))), "non-finite output"
    print("KERNEL_OK")
</pallas_src>

<mosaic_0001>
module attributes {stable_mosaic.version = 11 : i64} {
  func.func @_fused_kernel(%arg0: i32, %arg1: memref<1x8x256xbf16, #tpu.memory_space<vmem>>, %arg2: memref<1x4x384xbf16, #tpu.memory_space<vmem>>, %arg3: memref<1x8x384xbf16, #tpu.memory_space<vmem>>, %arg4: memref<1x384xf32, #tpu.memory_space<vmem>>, %arg5: memref<1x128xf32, #tpu.memory_space<vmem>>, %arg6: memref<4x72xbf16, #tpu.memory_space<vmem>>, %arg7: memref<128x384xbf16, #tpu.memory_space<vmem>>, %arg8: memref<16x56xbf16, #tpu.memory_space<vmem>>, %arg9: memref<16x112xbf16, #tpu.memory_space<vmem>>, %arg10: memref<32x32xbf16, #tpu.memory_space<vmem>>, %arg11: memref<1x4x8x384xf32, #tpu.memory_space<vmem>>, %arg12: memref<112x384xbf16, #tpu.memory_space<vmem>>, %arg13: memref<4x576xbf16, #tpu.memory_space<vmem>>, %arg14: memref<16x576xbf16, #tpu.memory_space<vmem>>) attributes {dimension_semantics = [#tpu.dimension_semantics<parallel>], iteration_bounds = array<i64: 2>, scalar_prefetch = 0 : i64, scratch_operands = 3 : i64, tpu.core_type = #tpu.core_type<tc>, window_params = [{transform_indices = @transform_0, window_bounds = array<i64: 1, 8, 256>}, {transform_indices = @transform_1, window_bounds = array<i64: 1, 4, 384>}, {transform_indices = @transform_2, window_bounds = array<i64: 1, 8, 384>}, {pipeline_mode = #tpu.pipeline_mode<synchronous>, transform_indices = @transform_3, window_bounds = array<i64: 1, 384>}, {pipeline_mode = #tpu.pipeline_mode<synchronous>, transform_indices = @transform_4, window_bounds = array<i64: 1, 128>}, {pipeline_mode = #tpu.pipeline_mode<synchronous>, transform_indices = @transform_5, window_bounds = array<i64: 4, 72>}, {pipeline_mode = #tpu.pipeline_mode<synchronous>, transform_indices = @transform_6, window_bounds = array<i64: 128, 384>}, {pipeline_mode = #tpu.pipeline_mode<synchronous>, transform_indices = @transform_7, window_bounds = array<i64: 16, 56>}, {pipeline_mode = #tpu.pipeline_mode<synchronous>, transform_indices = @transform_8, window_bounds = array<i64: 16, 112>}, {pipeline_mode = #tpu.pipeline_mode<synchronous>, transform_indices = @transform_9, window_bounds = array<i64: 32, 32>}, {transform_indices = @transform_10, window_bounds = array<i64: 1, 4, 8, 384>}]} {
    %c0 = arith.constant 0 : index
    %c0_0 = arith.constant 0 : index
    %0 = vector.load %arg4[%c0, %c0_0] : memref<1x384xf32, #tpu.memory_space<vmem>>, vector<1x384xf32>
    %c0_1 = arith.constant 0 : index
    %c0_2 = arith.constant 0 : index
    %1 = vector.load %arg5[%c0_1, %c0_2] : memref<1x128xf32, #tpu.memory_space<vmem>>, vector<1x128xf32>
    %cst = arith.constant 0.000000e+00 : bf16
    %2 = vector.broadcast %cst : bf16 to vector<4x96xbf16>
    %c0_3 = arith.constant 0 : index
    %c0_4 = arith.constant 0 : index
    %3 = vector.load %arg13[%c0_3, %c0_4] : memref<4x576xbf16, #tpu.memory_space<vmem>>, vector<4x96xbf16>
    tpu.vector_store %arg13[%c0_3, %c0_4], %2 {strides = array<i32>} : memref<4x576xbf16, #tpu.memory_space<vmem>>, vector<4x96xbf16>,
    %cst_5 = arith.constant 0.000000e+00 : bf16
    %4 = vector.broadcast %cst_5 : bf16 to vector<4x96xbf16>
    %c0_6 = arith.constant 0 : index
    %c480 = arith.constant 480 : index
    %5 = vector.load %arg13[%c0_6, %c480] : memref<4x576xbf16, #tpu.memory_space<vmem>>, vector<4x96xbf16>
    tpu.vector_store %arg13[%c0_6, %c480], %4 {strides = array<i32>} : memref<4x576xbf16, #tpu.memory_space<vmem>>, vector<4x96xbf16>,
    %cst_7 = arith.constant 0.000000e+00 : bf16
    %6 = vector.broadcast %cst_7 : bf16 to vector<16x96xbf16>
    %c0_8 = arith.constant 0 : index
    %c0_9 = arith.constant 0 : index
    %7 = vector.load %arg14[%c0_8, %c0_9] : memref<16x576xbf16, #tpu.memory_space<vmem>>, vector<16x96xbf16>
    tpu.vector_store %arg14[%c0_8, %c0_9], %6 {strides = array<i32>} : memref<16x576xbf16, #tpu.memory_space<vmem>>, vector<16x96xbf16>,
    %cst_10 = arith.constant 0.000000e+00 : bf16
    %8 = vector.broadcast %cst_10 : bf16 to vector<16x96xbf16>
    %c0_11 = arith.constant 0 : index
    %c480_12 = arith.constant 480 : index
    %9 = vector.load %arg14[%c0_11, %c480_12] : memref<16x576xbf16, #tpu.memory_space<vmem>>, vector<16x96xbf16>
    tpu.vector_store %arg14[%c0_11, %c480_12], %8 {strides = array<i32>} : memref<16x576xbf16, #tpu.memory_space<vmem>>, vector<16x96xbf16>,
    %c0_13 = arith.constant 0 : index
    %c0_14 = arith.constant 0 : index
    %c47 = arith.constant 47 : index
    %10 = vector.load %arg1[%c0_13, %c0_14, %c47] : memref<1x8x256xbf16, #tpu.memory_space<vmem>>, vector<1x8x128xbf16>
    %11 = vector.shape_cast %10 : vector<1x8x128xbf16> to vector<8x128xbf16>
    %c0_15 = arith.constant 0 : index
    %c0_16 = arith.constant 0 : index
    %12 = vector.load %arg12[%c0_15, %c0_16] : memref<112x384xbf16, #tpu.memory_space<vmem>>, vector<8x128xbf16>
    tpu.vector_store %arg12[%c0_15, %c0_16], %11 {strides = array<i32>} : memref<112x384xbf16, #tpu.memory_space<vmem>>, vector<8x128xbf16>,
    %c0_17 = arith.constant 0 : index
    %c0_18 = arith.constant 0 : index
    %c48 = arith.constant 48 : index
    %13 = vector.load %arg1[%c0_17, %c0_18, %c48] : memref<1x8x256xbf16, #tpu.memory_space<vmem>>, vector<1x8x128xbf16>
    %14 = vector.shape_cast %13 : vector<1x8x128xbf16> to vector<8x128xbf16>
    %c8 = arith.constant 8 : index
    %c0_19 = arith.constant 0 : index
    %15 = vector.load %arg12[%c8, %c0_19] : memref<112x384xbf16, #tpu.memory_space<vmem>>, vector<8x128xbf16>
    tpu.vector_store %arg12[%c8, %c0_19], %14 {strides = array<i32>} : memref<112x384xbf16, #tpu.memory_space<vmem>>, vector<8x128xbf16>,
    %c0_20 = arith.constant 0 : index
    %c0_21 = arith.constant 0 : index
    %c49 = arith.constant 49 : index
    %16 = vector.load %arg1[%c0_20, %c0_21, %c49] : memref<1x8x256xbf16, #tpu.memory_space<vmem>>, vector<1x8x128xbf16>
    %17 = vector.shape_cast %16 : vector<1x8x128xbf16> to vector<8x128xbf16>
    %c16 = arith.constant 16 : index
    %c0_22 = arith.constant 0 : index
    %18 = vector.load %arg12[%c16, %c0_22] : memref<112x384xbf16, #tpu.memory_space<vmem>>, vector<8x128xbf16>
    tpu.vector_store %arg12[%c16, %c0_22], %17 {strides = array<i32>} : memref<112x384xbf16, #tpu.memory_space<vmem>>, vector<8x128xbf16>,
    %c0_23 = arith.constant 0 : index
    %c0_24 = arith.constant 0 : index
    %c63 = arith.constant 63 : index
    %19 = vector.load %arg1[%c0_23, %c0_24, %c63] : memref<1x8x256xbf16, #tpu.memory_space<vmem>>, vector<1x8x128xbf16>
    %20 = vector.shape_cast %19 : vector<1x8x128xbf16> to vector<8x128xbf16>
    %c24 = arith.constant 24 : index
    %c0_25 = arith.constant 0 : index
    %21 = vector.load %arg12[%c24, %c0_25] : memref<112x384xbf16, #tpu.memory_space<vmem>>, vector<8x128xbf16>
    tpu.vector_store %arg12[%c24, %c0_25], %20 {strides = array<i32>} : memref<112x384xbf16, #tpu.memory_space<vmem>>, vector<8x128xbf16>,
    %c0_26 = arith.constant 0 : index
    %c0_27 = arith.constant 0 : index
    %c64 = arith.constant 64 : index
    %22 = vector.load %arg1[%c0_26, %c0_27, %c64] : memref<1x8x256xbf16, #tpu.memory_space<vmem>>, vector<1x8x128xbf16>
    %23 = vector.shape_cast %22 : vector<1x8x128xbf16> to vector<8x128xbf16>
    %c32 = arith.constant 32 : index
    %c0_28 = arith.constant 0 : index
    %24 = vector.load %arg12[%c32, %c0_28] : memref<112x384xbf16, #tpu.memory_space<vmem>>, vector<8x128xbf16>
    tpu.vector_store %arg12[%c32, %c0_28], %23 {strides = array<i32>} : memref<112x384xbf16, #tpu.memory_space<vmem>>, vector<8x128xbf16>,
    %c0_29 = arith.constant 0 : index
    %c0_30 = arith.constant 0 : index
    %c65 = arith.constant 65 : index
    %25 = vector.load %arg1[%c0_29, %c0_30, %c65] : memref<1x8x256xbf16, #tpu.memory_space<vmem>>, vector<1x8x128xbf16>
    %26 = vector.shape_cast %25 : vector<1x8x128xbf16> to vector<8x128xbf16>
    %c40 = arith.constant 40 : index
    %c0_31 = arith.constant 0 : index
    %27 = vector.load %arg12[%c40, %c0_31] : memref<112x384xbf16, #tpu.memory_space<vmem>>, vector<8x128xbf16>
    tpu.vector_store %arg12[%c40, %c0_31], %26 {strides = array<i32>} : memref<112x384xbf16, #tpu.memory_space<vmem>>, vector<8x128xbf16>,
    %c0_32 = arith.constant 0 : index
    %c0_33 = arith.constant 0 : index
    %c79 = arith.constant 79 : index
    %28 = vector.load %arg1[%c0_32, %c0_33, %c79] : memref<1x8x256xbf16, #tpu.memory_space<vmem>>, vector<1x8x128xbf16>
    %29 = vector.shape_cast %28 : vector<1x8x128xbf16> to vector<8x128xbf16>
    %c48_34 = arith.constant 48 : index
    %c0_35 = arith.constant 0 : index
    %30 = vector.load %arg12[%c48_34, %c0_35] : memref<112x384xbf16, #tpu.memory_space<vmem>>, vector<8x128xbf16>
    tpu.vector_store %arg12[%c48_34, %c0_35], %29 {strides = array<i32>} : memref<112x384xbf16, #tpu.memory_space<vmem>>, vector<8x128xbf16>,
    %c0_36 = arith.constant 0 : index
    %c0_37 = arith.constant 0 : index
    %c80 = arith.constant 80 : index
    %31 = vector.load %arg1[%c0_36, %c0_37, %c80] : memref<1x8x256xbf16, #tpu.memory_space<vmem>>, vector<1x8x128xbf16>
    %32 = vector.shape_cast %31 : vector<1x8x128xbf16> to vector<8x128xbf16>
    %c56 = arith.constant 56 : index
    %c0_38 = arith.constant 0 : index
    %33 = vector.load %arg12[%c56, %c0_38] : memref<112x384xbf16, #tpu.memory_space<vmem>>, vector<8x128xbf16>
    tpu.vector_store %arg12[%c56, %c0_38], %32 {strides = array<i32>} : memref<112x384xbf16, #tpu.memory_space<vmem>>, vector<8x128xbf16>,
    %c0_39 = arith.constant 0 : index
    %c0_40 = arith.constant 0 : index
    %c81 = arith.constant 81 : index
    %34 = vector.load %arg1[%c0_39, %c0_40, %c81] : memref<1x8x256xbf16, #tpu.memory_space<vmem>>, vector<1x8x128xbf16>
    %35 = vector.shape_cast %34 : vector<1x8x128xbf16> to vector<8x128xbf16>
    %c64_41 = arith.constant 64 : index
    %c0_42 = arith.constant 0 : index
    %36 = vector.load %arg12[%c64_41, %c0_42] : memref<112x384xbf16, #tpu.memory_space<vmem>>, vector<8x128xbf16>
    tpu.vector_store %arg12[%c64_41, %c0_42], %35 {strides = array<i32>} : memref<112x384xbf16, #tpu.memory_space<vmem>>, vector<8x128xbf16>,
    %c0_43 = arith.constant 0 : index
    %c0_44 = arith.constant 0 : index
    %37 = vector.load %arg6[%c0_43, %c0_44] : memref<4x72xbf16, #tpu.memory_space<vmem>>, vector<4x72xbf16>
    %c0_45 = arith.constant 0 : index
    %c0_46 = arith.constant 0 : index
    %38 = vector.load %arg12[%c0_45, %c0_46] : memref<112x384xbf16, #tpu.memory_space<vmem>>, vector<72x128xbf16>
    %cst_47 = arith.constant dense<0.000000e+00> : vector<4x128xf32>
    %39 = tpu.matmul %37, %38, %cst_47 {dimension_numbers = #tpu.dot_dimension_numbers<[1], [0], [0], [1], [0, 0, 1, 1], [], []>} : vector<4x72xbf16>, vector<72x128xbf16>, vector<4x128xf32> -> vector<4x128xf32>
    %40 = vector.broadcast %1 : vector<1x128xf32> to vector<4x128xf32>
    %41 = arith.mulf %39, %40 : vector<4x128xf32>
    %cst_48 = arith.constant dense<0.000000e+00> : vector<4xf32>
    %42 = vector.multi_reduction <add>, %41, %cst_48 [1] : vector<4x128xf32> to vector<4xf32>
    %43 = vector.shape_cast %42 : vector<4xf32> to vector<4x1xf32>
    %cst_49 = arith.constant 1.562500e-02 : f32
    %44 = vector.broadcast %cst_49 : f32 to vector<4x1xf32>
    %45 = arith.mulf %43, %44 : vector<4x1xf32>
    %46 = arith.mulf %39, %41 : vector<4x128xf32>
    %cst_50 = arith.constant dense<0.000000e+00> : vector<4xf32>
    %47 = vector.multi_reduction <add>, %46, %cst_50 [1] : vector<4x128xf32> to vector<4xf32>
    %48 = vector.shape_cast %47 : vector<4xf32> to vector<4x1xf32>
    %cst_51 = arith.constant 1.562500e-02 : f32
    %49 = vector.broadcast %cst_51 : f32 to vector<4x1xf32>
    %50 = arith.mulf %48, %49 : vector<4x1xf32>
    %51 = arith.mulf %45, %45 : vector<4x1xf32>
    %52 = arith.subf %50, %51 : vector<4x1xf32>
    %cst_52 = arith.constant 0.000000e+00 : f32
    %53 = vector.broadcast %cst_52 : f32 to vector<4x1xf32>
    %54 = arith.maximumf %52, %53 : vector<4x1xf32>
    %55 = vector.broadcast %45 : vector<4x1xf32> to vector<4x128xf32>
    %56 = arith.subf %39, %55 : vector<4x128xf32>
    %cst_53 = arith.constant 9.99999974E-6 : f32
    %57 = vector.broadcast %cst_53 : f32 to vector<4x1xf32>
    %58 = arith.addf %54, %57 : vector<4x1xf32>
    %59 = math.rsqrt %58 : vector<4x1xf32>
    %60 = vector.broadcast %59 : vector<4x1xf32> to vector<4x128xf32>
    %61 = arith.mulf %56, %60 : vector<4x128xf32>
    %cst_54 = arith.constant 0.000000e+00 : f32
    %62 = vector.broadcast %cst_54 : f32 to vector<4x128xf32>
    %63 = arith.maximumf %61, %62 : vector<4x128xf32>
    %64 = arith.truncf %63 : vector<4x128xf32> to vector<4x128xbf16>
    %c0_55 = arith.constant 0 : index
    %c0_56 = arith.constant 0 : index
    %65 = vector.load %arg7[%c0_55, %c0_56] : memref<128x384xbf16, #tpu.memory_space<vmem>>, vector<128x384xbf16>
    %cst_57 = arith.constant dense<0.000000e+00> : vector<4x384xf32>
    %66 = tpu.matmul %64, %65, %cst_57 {dimension_numbers = #tpu.dot_dimension_numbers<[1], [0], [0], [1], [0, 0, 1, 1], [], []>} : vector<4x128xbf16>, vector<128x384xbf16>, vector<4x384xf32> -> vector<4x384xf32>
    %c0_58 = arith.constant 0 : index
    %c0_59 = arith.constant 0 : index
    %c0_60 = arith.constant 0 : index
    %67 = vector.load %arg2[%c0_58, %c0_59, %c0_60] : memref<1x4x384xbf16, #tpu.memory_space<vmem>>, vector<1x4x384xbf16>
    %68 = vector.shape_cast %67 : vector<1x4x384xbf16> to vector<4x384xbf16>
    %69 = arith.extf %68 : vector<4x384xbf16> to vector<4x384xf32>
    %70 = arith.mulf %66, %69 : vector<4x384xf32>
    %71 = arith.truncf %70 : vector<4x384xf32> to vector<4x384xbf16>
    %c0_61 = arith.constant 0 : index
    %c96 = arith.constant 96 : index
    %72 = vector.load %arg13[%c0_61, %c96] : memref<4x576xbf16, #tpu.memory_space<vmem>>, vector<4x384xbf16>
    tpu.vector_store %arg13[%c0_61, %c96], %71 {strides = array<i32>} : memref<4x576xbf16, #tpu.memory_space<vmem>>, vector<4x384xbf16>,
    %c0_62 = arith.constant 0 : index
    %c24_63 = arith.constant 24 : index
    %73 = vector.load %arg13[%c0_62, %c24_63] : memref<4x576xbf16, #tpu.memory_space<vmem>>, vector<4x384xbf16>
    %c0_64 = arith.constant 0 : index
    %c0_65 = arith.constant 0 : index
    %74 = vector.load %arg12[%c0_64, %c0_65] : memref<112x384xbf16, #tpu.memory_space<vmem>>, vector<4x384xbf16>
    tpu.vector_store %arg12[%c0_64, %c0_65], %73 {strides = array<i32>} : memref<112x384xbf16, #tpu.memory_space<vmem>>, vector<4x384xbf16>,
    %c0_66 = arith.constant 0 : index
    %c48_67 = arith.constant 48 : index
    %75 = vector.load %arg13[%c0_66, %c48_67] : memref<4x576xbf16, #tpu.memory_space<vmem>>, vector<4x384xbf16>
    %c4 = arith.constant 4 : index
    %c0_68 = arith.constant 0 : index
    %76 = vector.load %arg12[%c4, %c0_68] : memref<112x384xbf16, #tpu.memory_space<vmem>>, vector<4x384xbf16>
    tpu.vector_store %arg12[%c4, %c0_68], %75 {strides = array<i32>} : memref<112x384xbf16, #tpu.memory_space<vmem>>, vector<4x384xbf16>,
    %c0_69 = arith.constant 0 : index
    %c72 = arith.constant 72 : index
    %77 = vector.load %arg13[%c0_69, %c72] : memref<4x576xbf16, #tpu.memory_space<vmem>>, vector<4x384xbf16>
    %c8_70 = arith.constant 8 : index
    %c0_71 = arith.constant 0 : index
    %78 = vector.load %arg12[%c8_70, %c0_71] : memref<112x384xbf16, #tpu.memory_space<vmem>>, vector<4x384xbf16>
    tpu.vector_store %arg12[%c8_70, %c0_71], %77 {strides = array<i32>} : memref<112x384xbf16, #tpu.memory_space<vmem>>, vector<4x384xbf16>,
    %c0_72 = arith.constant 0 : index
    %c96_73 = arith.constant 96 : index
    %79 = vector.load %arg13[%c0_72, %c96_73] : memref<4x576xbf16, #tpu.memory_space<vmem>>, vector<4x384xbf16>
    %c12 = arith.constant 12 : index
    %c0_74 = arith.constant 0 : index
    %80 = vector.load %arg12[%c12, %c0_74] : memref<112x384xbf16, #tpu.memory_space<vmem>>, vector<4x384xbf16>
    tpu.vector_store %arg12[%c12, %c0_74], %79 {strides = array<i32>} : memref<112x384xbf16, #tpu.memory_space<vmem>>, vector<4x384xbf16>,
    %c0_75 = arith.constant 0 : index
    %c120 = arith.constant 120 : index
    %81 = vector.load %arg13[%c0_75, %c120] : memref<4x576xbf16, #tpu.memory_space<vmem>>, vector<4x384xbf16>
    %c16_76 = arith.constant 16 : index
    %c0_77 = arith.constant 0 : index
    %82 = vector.load %arg12[%c16_76, %c0_77] : memref<112x384xbf16, #tpu.memory_space<vmem>>, vector<4x384xbf16>
    tpu.vector_store %arg12[%c16_76, %c0_77], %81 {strides = array<i32>} : memref<112x384xbf16, #tpu.memory_space<vmem>>, vector<4x384xbf16>,
    %c0_78 = arith.constant 0 : index
    %c144 = arith.constant 144 : index
    %83 = vector.load %arg13[%c0_78, %c144] : memref<4x576xbf16, #tpu.memory_space<vmem>>, vector<4x384xbf16>
    %c20 = arith.constant 20 : index
    %c0_79 = arith.constant 0 : index
    %84 = vector.load %arg12[%c20, %c0_79] : memref<112x384xbf16, #tpu.memory_space<vmem>>, vector<4x384xbf16>
    tpu.vector_store %arg12[%c20, %c0_79], %83 {strides = array<i32>} : memref<112x384xbf16, #tpu.memory_space<vmem>>, vector<4x384xbf16>,
    %c0_80 = arith.constant 0 : index
    %c168 = arith.constant 168 : index
    %85 = vector.load %arg13[%c0_80, %c168] : memref<4x576xbf16, #tpu.memory_space<vmem>>, vector<4x384xbf16>
    %c24_81 = arith.constant 24 : index
    %c0_82 = arith.constant 0 : index
    %86 = vector.load %arg12[%c24_81, %c0_82] : memref<112x384xbf16, #tpu.memory_space<vmem>>, vector<4x384xbf16>
    tpu.vector_store %arg12[%c24_81, %c0_82], %85 {strides = array<i32>} : memref<112x384xbf16, #tpu.memory_space<vmem>>, vector<4x384xbf16>,
    %c0_83 = arith.constant 0 : index
    %c93 = arith.constant 93 : index
    %87 = vector.load %arg13[%c0_83, %c93] : memref<4x576xbf16, #tpu.memory_space<vmem>>, vector<4x384xbf16>
    %c28 = arith.constant 28 : index
    %c0_84 = arith.constant 0 : index
    %88 = vector.load %arg12[%c28, %c0_84] : memref<112x384xbf16, #tpu.memory_space<vmem>>, vector<4x384xbf16>
    tpu.vector_store %arg12[%c28, %c0_84], %87 {strides = array<i32>} : memref<112x384xbf16, #tpu.memory_space<vmem>>, vector<4x384xbf16>,
    %c0_85 = arith.constant 0 : index
    %c94 = arith.constant 94 : index
    %89 = vector.load %arg13[%c0_85, %c94] : memref<4x576xbf16, #tpu.memory_space<vmem>>, vector<4x384xbf16>
    %c32_86 = arith.constant 32 : index
    %c0_87 = arith.constant 0 : index
    %90 = vector.load %arg12[%c32_86, %c0_87] : memref<112x384xbf16, #tpu.memory_space<vmem>>, vector<4x384xbf16>
    tpu.vector_store %arg12[%c32_86, %c0_87], %89 {strides = array<i32>} : memref<112x384xbf16, #tpu.memory_space<vmem>>, vector<4x384xbf16>,
    %c0_88 = arith.constant 0 : index
    %c95 = arith.constant 95 : index
    %91 = vector.load %arg13[%c0_88, %c95] : memref<4x576xbf16, #tpu.memory_space<vmem>>, vector<4x384xbf16>
    %c36 = arith.constant 36 : index
    %c0_89 = arith.constant 0 : index
    %92 = vector.load %arg12[%c36, %c0_89] : memref<112x384xbf16, #tpu.memory_space<vmem>>, vector<4x384xbf16>
    tpu.vector_store %arg12[%c36, %c0_89], %91 {strides = array<i32>} : memref<112x384xbf16, #tpu.memory_space<vmem>>, vector<4x384xbf16>,
    %c0_90 = arith.constant 0 : index
    %c96_91 = arith.constant 96 : index
    %93 = vector.load %arg13[%c0_90, %c96_91] : memref<4x576xbf16, #tpu.memory_space<vmem>>, vector<4x384xbf16>
    %c40_92 = arith.constant 40 : index
    %c0_93 = arith.constant 0 : index
    %94 = vector.load %arg12[%c40_92, %c0_93] : memref<112x384xbf16, #tpu.memory_space<vmem>>, vector<4x384xbf16>
    tpu.vector_store %arg12[%c40_92, %c0_93], %93 {strides = array<i32>} : memref<112x384xbf16, #tpu.memory_space<vmem>>, vector<4x384xbf16>,
    %c0_94 = arith.constant 0 : index
    %c97 = arith.constant 97 : index
    %95 = vector.load %arg13[%c0_94, %c97] : memref<4x576xbf16, #tpu.memory_space<vmem>>, vector<4x384xbf16>
    %c44 = arith.constant 44 : index
    %c0_95 = arith.constant 0 : index
    %96 = vector.load %arg12[%c44, %c0_95] : memref<112x384xbf16, #tpu.memory_space<vmem>>, vector<4x384xbf16>
    tpu.vector_store %arg12[%c44, %c0_95], %95 {strides = array<i32>} : memref<112x384xbf16, #tpu.memory_space<vmem>>, vector<4x384xbf16>,
    %c0_96 = arith.constant 0 : index
    %c98 = arith.constant 98 : index
    %97 = vector.load %arg13[%c0_96, %c98] : memref<4x576xbf16, #tpu.memory_space<vmem>>, vector<4x384xbf16>
    %c48_97 = arith.constant 48 : index
    %c0_98 = arith.constant 0 : index
    %98 = vector.load %arg12[%c48_97, %c0_98] : memref<112x384xbf16, #tpu.memory_space<vmem>>, vector<4x384xbf16>
    tpu.vector_store %arg12[%c48_97, %c0_98], %97 {strides = array<i32>} : memref<112x384xbf16, #tpu.memory_space<vmem>>, vector<4x384xbf16>,
    %c0_99 = arith.constant 0 : index
    %c99 = arith.constant 99 : index
    %99 = vector.load %arg13[%c0_99, %c99] : memref<4x576xbf16, #tpu.memory_space<vmem>>, vector<4x384xbf16>
    %c52 = arith.constant 52 : index
    %c0_100 = arith.constant 0 : index
    %100 = vector.load %arg12[%c52, %c0_100] : memref<112x384xbf16, #tpu.memory_space<vmem>>, vector<4x384xbf16>
    tpu.vector_store %arg12[%c52, %c0_100], %99 {strides = array<i32>} : memref<112x384xbf16, #tpu.memory_space<vmem>>, vector<4x384xbf16>,
    %c0_101 = arith.constant 0 : index
    %c0_102 = arith.constant 0 : index
    %101 = vector.load %arg8[%c0_101, %c0_102] : memref<16x56xbf16, #tpu.memory_space<vmem>>, vector<16x56xbf16>
    %c0_103 = arith.constant 0 : index
    %c0_104 = arith.constant 0 : index
    %102 = vector.load %arg12[%c0_103, %c0_104] : memref<112x384xbf16, #tpu.memory_space<vmem>>, vector<56x384xbf16>
    %cst_105 = arith.constant dense<0.000000e+00> : vector<16x384xf32>
    %103 = tpu.matmul %101, %102, %cst_105 {dimension_numbers = #tpu.dot_dimension_numbers<[1], [0], [0], [1], [0, 0, 1, 1], [], []>} : vector<16x56xbf16>, vector<56x384xbf16>, vector<16x384xf32> -> vector<16x384xf32>
    %104 = vector.broadcast %0 : vector<1x384xf32> to vector<16x384xf32>
    %105 = arith.mulf %103, %104 : vector<16x384xf32>
    %cst_106 = arith.constant dense<0.000000e+00> : vector<16xf32>
    %106 = vector.multi_reduction <add>, %105, %cst_106 [1] : vector<16x384xf32> to vector<16xf32>
    %107 = vector.shape_cast %106 : vector<16xf32> to vector<16x1xf32>
    %cst_107 = arith.constant 3.906250e-03 : f32
    %108 = vector.broadcast %cst_107 : f32 to vector<16x1xf32>
    %109 = arith.mulf %107, %108 : vector<16x1xf32>
    %110 = arith.mulf %103, %105 : vector<16x384xf32>
    %cst_108 = arith.constant dense<0.000000e+00> : vector<16xf32>
    %111 = vector.multi_reduction <add>, %110, %cst_108 [1] : vector<16x384xf32> to vector<16xf32>
    %112 = vector.shape_cast %111 : vector<16xf32> to vector<16x1xf32>
    %cst_109 = arith.constant 3.906250e-03 : f32
    %113 = vector.broadcast %cst_109 : f32 to vector<16x1xf32>
    %114 = arith.mulf %112, %113 : vector<16x1xf32>
    %115 = arith.mulf %109, %109 : vector<16x1xf32>
    %116 = arith.subf %114, %115 : vector<16x1xf32>
    %cst_110 = arith.constant 0.000000e+00 : f32
    %117 = vector.broadcast %cst_110 : f32 to vector<16x1xf32>
    %118 = arith.maximumf %116, %117 : vector<16x1xf32>
    %119 = vector.broadcast %109 : vector<16x1xf32> to vector<16x384xf32>
    %120 = arith.subf %103, %119 : vector<16x384xf32>
    %cst_111 = arith.constant 9.99999974E-6 : f32
    %121 = vector.broadcast %cst_111 : f32 to vector<16x1xf32>
    %122 = arith.addf %118, %121 : vector<16x1xf32>
    %123 = math.rsqrt %122 : vector<16x1xf32>
    %124 = vector.broadcast %123 : vector<16x1xf32> to vector<16x384xf32>
    %125 = arith.mulf %120, %124 : vector<16x384xf32>
    %cst_112 = arith.constant 0.000000e+00 : f32
    %126 = vector.broadcast %cst_112 : f32 to vector<16x384xf32>
    %127 = arith.maximumf %125, %126 : vector<16x384xf32>
    %128 = vector.broadcast %0 : vector<1x384xf32> to vector<16x384xf32>
    %129 = arith.mulf %127, %128 : vector<16x384xf32>
    %130 = arith.truncf %129 : vector<16x384xf32> to vector<16x384xbf16>
    %c0_113 = arith.constant 0 : index
    %c96_114 = arith.constant 96 : index
    %131 = vector.load %arg14[%c0_113, %c96_114] : memref<16x576xbf16, #tpu.memory_space<vmem>>, vector<16x384xbf16>
    tpu.vector_store %arg14[%c0_113, %c96_114], %130 {strides = array<i32>} : memref<16x576xbf16, #tpu.memory_space<vmem>>, vector<16x384xbf16>,
    %c0_115 = arith.constant 0 : index
    %c93_116 = arith.constant 93 : index
    %132 = vector.load %arg14[%c0_115, %c93_116] : memref<16x576xbf16, #tpu.memory_space<vmem>>, vector<8x384xbf16>
    %c0_117 = arith.constant 0 : index
    %c0_118 = arith.constant 0 : index
    %133 = vector.load %arg12[%c0_117, %c0_118] : memref<112x384xbf16, #tpu.memory_space<vmem>>, vector<8x384xbf16>
    tpu.vector_store %arg12[%c0_117, %c0_118], %132 {strides = array<i32>} : memref<112x384xbf16, #tpu.memory_space<vmem>>, vector<8x384xbf16>,
    %c0_119 = arith.constant 0 : index
    %c94_120 = arith.constant 94 : index
    %134 = vector.load %arg14[%c0_119, %c94_120] : memref<16x576xbf16, #tpu.memory_space<vmem>>, vector<8x384xbf16>
    %c8_121 = arith.constant 8 : index
    %c0_122 = arith.constant 0 : index
    %135 = vector.load %arg12[%c8_121, %c0_122] : memref<112x384xbf16, #tpu.memory_space<vmem>>, vector<8x384xbf16>
    tpu.vector_store %arg12[%c8_121, %c0_122], %134 {strides = array<i32>} : memref<112x384xbf16, #tpu.memory_space<vmem>>, vector<8x384xbf16>,
    %c0_123 = arith.constant 0 : index
    %c95_124 = arith.constant 95 : index
    %136 = vector.load %arg14[%c0_123, %c95_124] : memref<16x576xbf16, #tpu.memory_space<vmem>>, vector<8x384xbf16>
    %c16_125 = arith.constant 16 : index
    %c0_126 = arith.constant 0 : index
    %137 = vector.load %arg12[%c16_125, %c0_126] : memref<112x384xbf16, #tpu.memory_space<vmem>>, vector<8x384xbf16>
    tpu.vector_store %arg12[%c16_125, %c0_126], %136 {strides = array<i32>} : memref<112x384xbf16, #tpu.memory_space<vmem>>, vector<8x384xbf16>,
    %c0_127 = arith.constant 0 : index
    %c96_128 = arith.constant 96 : index
    %138 = vector.load %arg14[%c0_127, %c96_128] : memref<16x576xbf16, #tpu.memory_space<vmem>>, vector<8x384xbf16>
    %c24_129 = arith.constant 24 : index
    %c0_130 = arith.constant 0 : index
    %139 = vector.load %arg12[%c24_129, %c0_130] : memref<112x384xbf16, #tpu.memory_space<vmem>>, vector<8x384xbf16>
    tpu.vector_store %arg12[%c24_129, %c0_130], %138 {strides = array<i32>} : memref<112x384xbf16, #tpu.memory_space<vmem>>, vector<8x384xbf16>,
    %c0_131 = arith.constant 0 : index
    %c97_132 = arith.constant 97 : index
    %140 = vector.load %arg14[%c0_131, %c97_132] : memref<16x576xbf16, #tpu.memory_space<vmem>>, vector<8x384xbf16>
    %c32_133 = arith.constant 32 : index
    %c0_134 = arith.constant 0 : index
    %141 = vector.load %arg12[%c32_133, %c0_134] : memref<112x384xbf16, #tpu.memory_space<vmem>>, vector<8x384xbf16>
    tpu.vector_store %arg12[%c32_133, %c0_134], %140 {strides = array<i32>} : memref<112x384xbf16, #tpu.memory_space<vmem>>, vector<8x384xbf16>,
    %c0_135 = arith.constant 0 : index
    %c98_136 = arith.constant 98 : index
    %142 = vector.load %arg14[%c0_135, %c98_136] : memref<16x576xbf16, #tpu.memory_space<vmem>>, vector<8x384xbf16>
    %c40_137 = arith.constant 40 : index
    %c0_138 = arith.constant 0 : index
    %143 = vector.load %arg12[%c40_137, %c0_138] : memref<112x384xbf16, #tpu.memory_space<vmem>>, vector<8x384xbf16>
    tpu.vector_store %arg12[%c40_137, %c0_138], %142 {strides = array<i32>} : memref<112x384xbf16, #tpu.memory_space<vmem>>, vector<8x384xbf16>,
    %c0_139 = arith.constant 0 : index
    %c99_140 = arith.constant 99 : index
    %144 = vector.load %arg14[%c0_139, %c99_140] : memref<16x576xbf16, #tpu.memory_space<vmem>>, vector<8x384xbf16>
    %c48_141 = arith.constant 48 : index
    %c0_142 = arith.constant 0 : index
    %145 = vector.load %arg12[%c48_141, %c0_142] : memref<112x384xbf16, #tpu.memory_space<vmem>>, vector<8x384xbf16>
    tpu.vector_store %arg12[%c48_141, %c0_142], %144 {strides = array<i32>} : memref<112x384xbf16, #tpu.memory_space<vmem>>, vector<8x384xbf16>,
    %c8_143 = arith.constant 8 : index
    %c24_144 = arith.constant 24 : index
    %146 = vector.load %arg14[%c8_143, %c24_144] : memref<16x576xbf16, #tpu.memory_space<vmem>>, vector<8x384xbf16>
    %c56_145 = arith.constant 56 : index
    %c0_146 = arith.constant 0 : index
    %147 = vector.load %arg12[%c56_145, %c0_146] : memref<112x384xbf16, #tpu.memory_space<vmem>>, vector<8x384xbf16>
    tpu.vector_store %arg12[%c56_145, %c0_146], %146 {strides = array<i32>} : memref<112x384xbf16, #tpu.memory_space<vmem>>, vector<8x384xbf16>,
    %c8_147 = arith.constant 8 : index
    %c48_148 = arith.constant 48 : index
    %148 = vector.load %arg14[%c8_147, %c48_148] : memref<16x576xbf16, #tpu.memory_space<vmem>>, vector<8x384xbf16>
    %c64_149 = arith.constant 64 : index
    %c0_150 = arith.constant 0 : index
    %149 = vector.load %arg12[%c64_149, %c0_150] : memref<112x384xbf16, #tpu.memory_space<vmem>>, vector<8x384xbf16>
    tpu.vector_store %arg12[%c64_149, %c0_150], %148 {strides = array<i32>} : memref<112x384xbf16, #tpu.memory_space<vmem>>, vector<8x384xbf16>,
    %c8_151 = arith.constant 8 : index
    %c72_152 = arith.constant 72 : index
    %150 = vector.load %arg14[%c8_151, %c72_152] : memref<16x576xbf16, #tpu.memory_space<vmem>>, vector<8x384xbf16>
    %c72_153 = arith.constant 72 : index
    %c0_154 = arith.constant 0 : index
    %151 = vector.load %arg12[%c72_153, %c0_154] : memref<112x384xbf16, #tpu.memory_space<vmem>>, vector<8x384xbf16>
    tpu.vector_store %arg12[%c72_153, %c0_154], %150 {strides = array<i32>} : memref<112x384xbf16, #tpu.memory_space<vmem>>, vector<8x384xbf16>,
    %c8_155 = arith.constant 8 : index
    %c96_156 = arith.constant 96 : index
    %152 = vector.load %arg14[%c8_155, %c96_156] : memref<16x576xbf16, #tpu.memory_space<vmem>>, vector<8x384xbf16>
    %c80_157 = arith.constant 80 : index
    %c0_158 = arith.constant 0 : index
    %153 = vector.load %arg12[%c80_157, %c0_158] : memref<112x384xbf16, #tpu.memory_space<vmem>>, vector<8x384xbf16>
    tpu.vector_store %arg12[%c80_157, %c0_158], %152 {strides = array<i32>} : memref<112x384xbf16, #tpu.memory_space<vmem>>, vector<8x384xbf16>,
    %c8_159 = arith.constant 8 : index
    %c120_160 = arith.constant 120 : index
    %154 = vector.load %arg14[%c8_159, %c120_160] : memref<16x576xbf16, #tpu.memory_space<vmem>>, vector<8x384xbf16>
    %c88 = arith.constant 88 : index
    %c0_161 = arith.constant 0 : index
    %155 = vector.load %arg12[%c88, %c0_161] : memref<112x384xbf16, #tpu.memory_space<vmem>>, vector<8x384xbf16>
    tpu.vector_store %arg12[%c88, %c0_161], %154 {strides = array<i32>} : memref<112x384xbf16, #tpu.memory_space<vmem>>, vector<8x384xbf16>,
    %c8_162 = arith.constant 8 : index
    %c144_163 = arith.constant 144 : index
    %156 = vector.load %arg14[%c8_162, %c144_163] : memref<16x576xbf16, #tpu.memory_space<vmem>>, vector<8x384xbf16>
    %c96_164 = arith.constant 96 : index
    %c0_165 = arith.constant 0 : index
    %157 = vector.load %arg12[%c96_164, %c0_165] : memref<112x384xbf16, #tpu.memory_space<vmem>>, vector<8x384xbf16>
    tpu.vector_store %arg12[%c96_164, %c0_165], %156 {strides = array<i32>} : memref<112x384xbf16, #tpu.memory_space<vmem>>, vector<8x384xbf16>,
    %c8_166 = arith.constant 8 : index
    %c168_167 = arith.constant 168 : index
    %158 = vector.load %arg14[%c8_166, %c168_167] : memref<16x576xbf16, #tpu.memory_space<vmem>>, vector<8x384xbf16>
    %c104 = arith.constant 104 : index
    %c0_168 = arith.constant 0 : index
    %159 = vector.load %arg12[%c104, %c0_168] : memref<112x384xbf16, #tpu.memory_space<vmem>>, vector<8x384xbf16>
    tpu.vector_store %arg12[%c104, %c0_168], %158 {strides = array<i32>} : memref<112x384xbf16, #tpu.memory_space<vmem>>, vector<8x384xbf16>,
    %c0_169 = arith.constant 0 : index
    %c0_170 = arith.constant 0 : index
    %160 = vector.load %arg9[%c0_169, %c0_170] : memref<16x112xbf16, #tpu.memory_space<vmem>>, vector<16x112xbf16>
    %c0_171 = arith.constant 0 : index
    %c0_172 = arith.constant 0 : index
    %161 = vector.load %arg12[%c0_171, %c0_172] : memref<112x384xbf16, #tpu.memory_space<vmem>>, vector<112x384xbf16>
    %cst_173 = arith.constant dense<0.000000e+00> : vector<16x384xf32>
    %162 = tpu.matmul %160, %161, %cst_173 {dimension_numbers = #tpu.dot_dimension_numbers<[1], [0], [0], [1], [0, 0, 1, 1], [], []>} : vector<16x112xbf16>, vector<112x384xbf16>, vector<16x384xf32> -> vector<16x384xf32>
    %163 = vector.broadcast %0 : vector<1x384xf32> to vector<16x384xf32>
    %164 = arith.mulf %162, %163 : vector<16x384xf32>
    %cst_174 = arith.constant dense<0.000000e+00> : vector<16xf32>
    %165 = vector.multi_reduction <add>, %164, %cst_174 [1] : vector<16x384xf32> to vector<16xf32>
    %166 = vector.shape_cast %165 : vector<16xf32> to vector<16x1xf32>
    %cst_175 = arith.constant 3.906250e-03 : f32
    %167 = vector.broadcast %cst_175 : f32 to vector<16x1xf32>
    %168 = arith.mulf %166, %167 : vector<16x1xf32>
    %169 = arith.mulf %162, %164 : vector<16x384xf32>
    %cst_176 = arith.constant dense<0.000000e+00> : vector<16xf32>
    %170 = vector.multi_reduction <add>, %169, %cst_176 [1] : vector<16x384xf32> to vector<16xf32>
    %171 = vector.shape_cast %170 : vector<16xf32> to vector<16x1xf32>
    %cst_177 = arith.constant 3.906250e-03 : f32
    %172 = vector.broadcast %cst_177 : f32 to vector<16x1xf32>
    %173 = arith.mulf %171, %172 : vector<16x1xf32>
    %174 = arith.mulf %168, %168 : vector<16x1xf32>
    %175 = arith.subf %173, %174 : vector<16x1xf32>
    %cst_178 = arith.constant 0.000000e+00 : f32
    %176 = vector.broadcast %cst_178 : f32 to vector<16x1xf32>
    %177 = arith.maximumf %175, %176 : vector<16x1xf32>
    %178 = vector.broadcast %168 : vector<16x1xf32> to vector<16x384xf32>
    %179 = arith.subf %162, %178 : vector<16x384xf32>
    %cst_179 = arith.constant 9.99999974E-6 : f32
    %180 = vector.broadcast %cst_179 : f32 to vector<16x1xf32>
    %181 = arith.addf %177, %180 : vector<16x1xf32>
    %182 = math.rsqrt %181 : vector<16x1xf32>
    %183 = vector.broadcast %182 : vector<16x1xf32> to vector<16x384xf32>
    %184 = arith.mulf %179, %183 : vector<16x384xf32>
    %cst_180 = arith.constant 0.000000e+00 : f32
    %185 = vector.broadcast %cst_180 : f32 to vector<16x384xf32>
    %186 = arith.maximumf %184, %185 : vector<16x384xf32>
    %187 = vector.broadcast %0 : vector<1x384xf32> to vector<16x384xf32>
    %188 = arith.mulf %186, %187 : vector<16x384xf32>
    %189 = vector.extract_strided_slice %188 {offsets = [0, 0], sizes = [8, 384], strides = [1, 1]} : vector<16x384xf32> to vector<8x384xf32>
    %190 = vector.extract_strided_slice %188 {offsets = [8, 0], sizes = [8, 384], strides = [1, 1]} : vector<16x384xf32> to vector<8x384xf32>
    %191 = arith.addf %189, %190 : vector<8x384xf32>
    %c0_181 = arith.constant 0 : index
    %c0_182 = arith.constant 0 : index
    %c0_183 = arith.constant 0 : index
    %192 = vector.load %arg3[%c0_181, %c0_182, %c0_183] : memref<1x8x384xbf16, #tpu.memory_space<vmem>>, vector<1x8x384xbf16>
    %193 = vector.shape_cast %192 : vector<1x8x384xbf16> to vector<8x384xbf16>
    %194 = arith.extf %193 : vector<8x384xbf16> to vector<8x384xf32>
    %195 = arith.addf %191, %194 : vector<8x384xf32>
    %196 = arith.truncf %195 : vector<8x384xf32> to vector<8x384xbf16>
    %c0_184 = arith.constant 0 : index
    %c96_185 = arith.constant 96 : index
    %197 = vector.load %arg14[%c0_184, %c96_185] : memref<16x576xbf16, #tpu.memory_space<vmem>>, vector<8x384xbf16>
    tpu.vector_store %arg14[%c0_184, %c96_185], %196 {strides = array<i32>} : memref<16x576xbf16, #tpu.memory_space<vmem>>, vector<8x384xbf16>,
    %c0_186 = arith.constant 0 : index
    %c96_187 = arith.constant 96 : index
    %198 = vector.load %arg14[%c0_186, %c96_187] : memref<16x576xbf16, #tpu.memory_space<vmem>>, vector<8x384xbf16>
    %c0_188 = arith.constant 0 : index
    %c0_189 = arith.constant 0 : index
    %199 = vector.load %arg12[%c0_188, %c0_189] : memref<112x384xbf16, #tpu.memory_space<vmem>>, vector<8x384xbf16>
    tpu.vector_store %arg12[%c0_188, %c0_189], %198 {strides = array<i32>} : memref<112x384xbf16, #tpu.memory_space<vmem>>, vector<8x384xbf16>,
    %c0_190 = arith.constant 0 : index
    %c97_191 = arith.constant 97 : index
    %200 = vector.load %arg14[%c0_190, %c97_191] : memref<16x576xbf16, #tpu.memory_space<vmem>>, vector<8x384xbf16>
    %c8_192 = arith.constant 8 : index
    %c0_193 = arith.constant 0 : index
    %201 = vector.load %arg12[%c8_192, %c0_193] : memref<112x384xbf16, #tpu.memory_space<vmem>>, vector<8x384xbf16>
    tpu.vector_store %arg12[%c8_192, %c0_193], %200 {strides = array<i32>} : memref<112x384xbf16, #tpu.memory_space<vmem>>, vector<8x384xbf16>,
    %c0_194 = arith.constant 0 : index
    %c120_195 = arith.constant 120 : index
    %202 = vector.load %arg14[%c0_194, %c120_195] : memref<16x576xbf16, #tpu.memory_space<vmem>>, vector<8x384xbf16>
    %c16_196 = arith.constant 16 : index
    %c0_197 = arith.constant 0 : index
    %203 = vector.load %arg12[%c16_196, %c0_197] : memref<112x384xbf16, #tpu.memory_space<vmem>>, vector<8x384xbf16>
    tpu.vector_store %arg12[%c16_196, %c0_197], %202 {strides = array<i32>} : memref<112x384xbf16, #tpu.memory_space<vmem>>, vector<8x384xbf16>,
    %c0_198 = arith.constant 0 : index
    %c121 = arith.constant 121 : index
    %204 = vector.load %arg14[%c0_198, %c121] : memref<16x576xbf16, #tpu.memory_space<vmem>>, vector<8x384xbf16>
    %c24_199 = arith.constant 24 : index
    %c0_200 = arith.constant 0 : index
    %205 = vector.load %arg12[%c24_199, %c0_200] : memref<112x384xbf16, #tpu.memory_space<vmem>>, vector<8x384xbf16>
    tpu.vector_store %arg12[%c24_199, %c0_200], %204 {strides = array<i32>} : memref<112x384xbf16, #tpu.memory_space<vmem>>, vector<8x384xbf16>,
    %c0_201 = arith.constant 0 : index
    %c0_202 = arith.constant 0 : index
    %206 = vector.load %arg10[%c0_201, %c0_202] : memref<32x32xbf16, #tpu.memory_space<vmem>>, vector<32x32xbf16>
    %c0_203 = arith.constant 0 : index
    %c0_204 = arith.constant 0 : index
    %207 = vector.load %arg12[%c0_203, %c0_204] : memref<112x384xbf16, #tpu.memory_space<vmem>>, vector<32x384xbf16>
    %cst_205 = arith.constant dense<0.000000e+00> : vector<32x384xf32>
    %208 = tpu.matmul %206, %207, %cst_205 {dimension_numbers = #tpu.dot_dimension_numbers<[1], [0], [0], [1], [0, 0, 1, 1], [], []>} : vector<32x32xbf16>, vector<32x384xbf16>, vector<32x384xf32> -> vector<32x384xf32>
    %209 = vector.broadcast %0 : vector<1x384xf32> to vector<32x384xf32>
    %210 = arith.mulf %208, %209 : vector<32x384xf32>
    %cst_206 = arith.constant dense<0.000000e+00> : vector<32xf32>
    %211 = vector.multi_reduction <add>, %210, %cst_206 [1] : vector<32x384xf32> to vector<32xf32>
    %212 = vector.shape_cast %211 : vector<32xf32> to vector<32x1xf32>
    %213 = arith.mulf %208, %210 : vector<32x384xf32>
    %cst_207 = arith.constant dense<0.000000e+00> : vector<32xf32>
    %214 = vector.multi_reduction <add>, %213, %cst_207 [1] : vector<32x384xf32> to vector<32xf32>
    %215 = vector.shape_cast %214 : vector<32xf32> to vector<32x1xf32>
    %216 = vector.extract_strided_slice %212 {offsets = [0, 0], sizes = [8, 1], strides = [1, 1]} : vector<32x1xf32> to vector<8x1xf32>
    %217 = vector.extract_strided_slice %212 {offsets = [8, 0], sizes = [8, 1], strides = [1, 1]} : vector<32x1xf32> to vector<8x1xf32>
    %218 = arith.addf %216, %217 : vector<8x1xf32>
    %219 = vector.extract_strided_slice %212 {offsets = [16, 0], sizes = [8, 1], strides = [1, 1]} : vector<32x1xf32> to vector<8x1xf32>
    %220 = arith.addf %218, %219 : vector<8x1xf32>
    %221 = vector.extract_strided_slice %212 {offsets = [24, 0], sizes = [8, 1], strides = [1, 1]} : vector<32x1xf32> to vector<8x1xf32>
    %222 = arith.addf %220, %221 : vector<8x1xf32>
    %223 = vector.extract_strided_slice %215 {offsets = [0, 0], sizes = [8, 1], strides = [1, 1]} : vector<32x1xf32> to vector<8x1xf32>
    %224 = vector.extract_strided_slice %215 {offsets = [8, 0], sizes = [8, 1], strides = [1, 1]} : vector<32x1xf32> to vector<8x1xf32>
    %225 = arith.addf %223, %224 : vector<8x1xf32>
    %226 = vector.extract_strided_slice %215 {offsets = [16, 0], sizes = [8, 1], strides = [1, 1]} : vector<32x1xf32> to vector<8x1xf32>
    %227 = arith.addf %225, %226 : vector<8x1xf32>
    %228 = vector.extract_strided_slice %215 {offsets = [24, 0], sizes = [8, 1], strides = [1, 1]} : vector<32x1xf32> to vector<8x1xf32>
    %229 = arith.addf %227, %228 : vector<8x1xf32>
    %cst_208 = arith.constant 9.765625E-4 : f32
    %230 = vector.broadcast %cst_208 : f32 to vector<8x1xf32>
    %231 = arith.mulf %222, %230 : vector<8x1xf32>
    %cst_209 = arith.constant 9.765625E-4 : f32
    %232 = vector.broadcast %cst_209 : f32 to vector<8x1xf32>
    %233 = arith.mulf %229, %232 : vector<8x1xf32>
    %234 = arith.mulf %231, %231 : vector<8x1xf32>
    %235 = arith.subf %233, %234 : vector<8x1xf32>
    %cst_210 = arith.constant 0.000000e+00 : f32
    %236 = vector.broadcast %cst_210 : f32 to vector<8x1xf32>
    %237 = arith.maximumf %235, %236 : vector<8x1xf32>
    %cst_211 = arith.constant 9.99999974E-6 : f32
    %238 = vector.broadcast %cst_211 : f32 to vector<8x1xf32>
    %239 = arith.addf %237, %238 : vector<8x1xf32>
    %240 = math.rsqrt %239 : vector<8x1xf32>
    %241 = vector.extract_strided_slice %208 {offsets = [0, 0], sizes = [8, 384], strides = [1, 1]} : vector<32x384xf32> to vector<8x384xf32>
    %242 = vector.broadcast %231 : vector<8x1xf32> to vector<8x384xf32>
    %243 = arith.subf %241, %242 : vector<8x384xf32>
    %244 = vector.broadcast %240 : vector<8x1xf32> to vector<8x384xf32>
    %245 = arith.mulf %243, %244 : vector<8x384xf32>
    %cst_212 = arith.constant 0.000000e+00 : f32
    %246 = vector.broadcast %cst_212 : f32 to vector<8x384xf32>
    %247 = arith.maximumf %245, %246 : vector<8x384xf32>
    %c0_213 = arith.constant 0 : index
    %c0_214 = arith.constant 0 : index
    %c0_215 = arith.constant 0 : index
    %c0_216 = arith.constant 0 : index
    %248 = vector.load %arg11[%c0_213, %c0_214, %c0_215, %c0_216] : memref<1x4x8x384xf32, #tpu.memory_space<vmem>>, vector<1x1x8x384xf32>
    %249 = vector.shape_cast %248 : vector<1x1x8x384xf32> to vector<8x384xf32>
    %250 = vector.shape_cast %247 : vector<8x384xf32> to vector<1x1x8x384xf32>
    tpu.vector_store %arg11[%c0_213, %c0_214, %c0_215, %c0_216], %250 {strides = array<i32>} : memref<1x4x8x384xf32, #tpu.memory_space<vmem>>, vector<1x1x8x384xf32>,
    %251 = vector.extract_strided_slice %208 {offsets = [8, 0], sizes = [8, 384], strides = [1, 1]} : vector<32x384xf32> to vector<8x384xf32>
    %252 = vector.broadcast %231 : vector<8x1xf32> to vector<8x384xf32>
    %253 = arith.subf %251, %252 : vector<8x384xf32>
    %254 = vector.broadcast %240 : vector<8x1xf32> to vector<8x384xf32>
    %255 = arith.mulf %253, %254 : vector<8x384xf32>
    %cst_217 = arith.constant 0.000000e+00 : f32
    %256 = vector.broadcast %cst_217 : f32 to vector<8x384xf32>
    %257 = arith.maximumf %255, %256 : vector<8x384xf32>
    %c0_218 = arith.constant 0 : index
    %c1 = arith.constant 1 : index
    %c0_219 = arith.constant 0 : index
    %c0_220 = arith.constant 0 : index
    %258 = vector.load %arg11[%c0_218, %c1, %c0_219, %c0_220] : memref<1x4x8x384xf32, #tpu.memory_space<vmem>>, vector<1x1x8x384xf32>
    %259 = vector.shape_cast %258 : vector<1x1x8x384xf32> to vector<8x384xf32>
    %260 = vector.shape_cast %257 : vector<8x384xf32> to vector<1x1x8x384xf32>
    tpu.vector_store %arg11[%c0_218, %c1, %c0_219, %c0_220], %260 {strides = array<i32>} : memref<1x4x8x384xf32, #tpu.memory_space<vmem>>, vector<1x1x8x384xf32>,
    %261 = vector.extract_strided_slice %208 {offsets = [16, 0], sizes = [8, 384], strides = [1, 1]} : vector<32x384xf32> to vector<8x384xf32>
    %262 = vector.broadcast %231 : vector<8x1xf32> to vector<8x384xf32>
    %263 = arith.subf %261, %262 : vector<8x384xf32>
    %264 = vector.broadcast %240 : vector<8x1xf32> to vector<8x384xf32>
    %265 = arith.mulf %263, %264 : vector<8x384xf32>
    %cst_221 = arith.constant 0.000000e+00 : f32
    %266 = vector.broadcast %cst_221 : f32 to vector<8x384xf32>
    %267 = arith.maximumf %265, %266 : vector<8x384xf32>
    %c0_222 = arith.constant 0 : index
    %c2 = arith.constant 2 : index
    %c0_223 = arith.constant 0 : index
    %c0_224 = arith.constant 0 : index
    %268 = vector.load %arg11[%c0_222, %c2, %c0_223, %c0_224] : memref<1x4x8x384xf32, #tpu.memory_space<vmem>>, vector<1x1x8x384xf32>
    %269 = vector.shape_cast %268 : vector<1x1x8x384xf32> to vector<8x384xf32>
    %270 = vector.shape_cast %267 : vector<8x384xf32> to vector<1x1x8x384xf32>
    tpu.vector_store %arg11[%c0_222, %c2, %c0_223, %c0_224], %270 {strides = array<i32>} : memref<1x4x8x384xf32, #tpu.memory_space<vmem>>, vector<1x1x8x384xf32>,
    %271 = vector.extract_strided_slice %208 {offsets = [24, 0], sizes = [8, 384], strides = [1, 1]} : vector<32x384xf32> to vector<8x384xf32>
    %272 = vector.broadcast %231 : vector<8x1xf32> to vector<8x384xf32>
    %273 = arith.subf %271, %272 : vector<8x384xf32>
    %274 = vector.broadcast %240 : vector<8x1xf32> to vector<8x384xf32>
    %275 = arith.mulf %273, %274 : vector<8x384xf32>
    %cst_225 = arith.constant 0.000000e+00 : f32
    %276 = vector.broadcast %cst_225 : f32 to vector<8x384xf32>
    %277 = arith.maximumf %275, %276 : vector<8x384xf32>
    %c0_226 = arith.constant 0 : index
    %c3 = arith.constant 3 : index
    %c0_227 = arith.constant 0 : index
    %c0_228 = arith.constant 0 : index
    %278 = vector.load %arg11[%c0_226, %c3, %c0_227, %c0_228] : memref<1x4x8x384xf32, #tpu.memory_space<vmem>>, vector<1x1x8x384xf32>
    %279 = vector.shape_cast %278 : vector<1x1x8x384xf32> to vector<8x384xf32>
    %280 = vector.shape_cast %277 : vector<8x384xf32> to vector<1x1x8x384xf32>
    tpu.vector_store %arg11[%c0_226, %c3, %c0_227, %c0_228], %280 {strides = array<i32>} : memref<1x4x8x384xf32, #tpu.memory_space<vmem>>, vector<1x1x8x384xf32>,
    return
  }
  func.func @transform_0(%arg0: i32) -> (i32, i32, i32) {
    %c0_i32 = arith.constant 0 : i32
    %c0_i32_0 = arith.constant 0 : i32
    %c0_i32_1 = arith.constant 0 : i32
    return %arg0, %c0_i32, %c0_i32_0 : i32, i32, i32
  }
  func.func @transform_1(%arg0: i32) -> (i32, i32, i32) {
    %c0_i32 = arith.constant 0 : i32
    %c0_i32_0 = arith.constant 0 : i32
    %c0_i32_1 = arith.constant 0 : i32
    return %arg0, %c0_i32, %c0_i32_0 : i32, i32, i32
  }
  func.func @transform_2(%arg0: i32) -> (i32, i32, i32) {
    %c0_i32 = arith.constant 0 : i32
    %c0_i32_0 = arith.constant 0 : i32
    %c0_i32_1 = arith.constant 0 : i32
    return %arg0, %c0_i32, %c0_i32_0 : i32, i32, i32
  }
  func.func @transform_3(%arg0: i32) -> (i32, i32) {
    %c0_i32 = arith.constant 0 : i32
    %c0_i32_0 = arith.constant 0 : i32
    %c0_i32_1 = arith.constant 0 : i32
    return %c0_i32, %c0_i32_0 : i32, i32
  }
  func.func @transform_4(%arg0: i32) -> (i32, i32) {
    %c0_i32 = arith.constant 0 : i32
    %c0_i32_0 = arith.constant 0 : i32
    %c0_i32_1 = arith.constant 0 : i32
    return %c0_i32, %c0_i32_0 : i32, i32
  }
  func.func @transform_5(%arg0: i32) -> (i32, i32) {
    %c0_i32 = arith.constant 0 : i32
    %c0_i32_0 = arith.constant 0 : i32
    %c0_i32_1 = arith.constant 0 : i32
    return %c0_i32, %c0_i32_0 : i32, i32
  }
  func.func @transform_6(%arg0: i32) -> (i32, i32) {
    %c0_i32 = arith.constant 0 : i32
    %c0_i32_0 = arith.constant 0 : i32
    %c0_i32_1 = arith.constant 0 : i32
    return %c0_i32, %c0_i32_0 : i32, i32
  }
  func.func @transform_7(%arg0: i32) -> (i32, i32) {
    %c0_i32 = arith.constant 0 : i32
    %c0_i32_0 = arith.constant 0 : i32
    %c0_i32_1 = arith.constant 0 : i32
    return %c0_i32, %c0_i32_0 : i32, i32
  }
  func.func @transform_8(%arg0: i32) -> (i32, i32) {
    %c0_i32 = arith.constant 0 : i32
    %c0_i32_0 = arith.constant 0 : i32
    %c0_i32_1 = arith.constant 0 : i32
    return %c0_i32, %c0_i32_0 : i32, i32
  }
  func.func @transform_9(%arg0: i32) -> (i32, i32) {
    %c0_i32 = arith.constant 0 : i32
    %c0_i32_0 = arith.constant 0 : i32
    %c0_i32_1 = arith.constant 0 : i32
    return %c0_i32, %c0_i32_0 : i32, i32
  }
  func.func @transform_10(%arg0: i32) -> (i32, i32, i32, i32) {
    %c0_i32 = arith.constant 0 : i32
    %c0_i32_0 = arith.constant 0 : i32
    %c0_i32_1 = arith.constant 0 : i32
    %c0_i32_2 = arith.constant 0 : i32
    return %arg0, %c0_i32, %c0_i32_0, %c0_i32_1 : i32, i32, i32, i32
  }
}

</mosaic_0001>

<bundles_post_ra>
// kernel: exfuse_level_forward.1
= control target key start
LH: loop header
LB: loop body
LE: loop exit
PB: predicated region body
PF: predicated region fallthrough
CT: control target
= control target key end

     0   :  { %s3035_s13 = smov 0   ;;  %s3722_s0 = inlined_call_operand.vmem [shape: bf16[2,8,256], index: 0, kind: input, shape index: {}]   ;;  %s3723_s1 = inlined_call_operand.vmem [shape: bf16[2,4,384], index: 1, kind: input, shape index: {}]   ;;  %s3724_s2 = inlined_call_operand.vmem [shape: bf16[2,8,384], index: 2, kind: input, shape index: {}]   ;;  %s3725_s3 = inlined_call_operand.vmem [shape: f32[1,384], index: 3, kind: input, shape index: {}]   ;;  %s3726_s4 = inlined_call_operand.vmem [shape: f32[1,128], index: 4, kind: input, shape index: {}]   ;;  %s3727_s5 = inlined_call_operand.vmem [shape: bf16[4,72], index: 5, kind: input, shape index: {}]   ;;  %s3728_s6 = inlined_call_operand.vmem [shape: bf16[128,384], index: 6, kind: input, shape index: {}]   ;;  %s3729_s7 = inlined_call_operand.vmem [shape: bf16[16,56], index: 7, kind: input, shape index: {}]   ;;  %s3730_s8 = inlined_call_operand.vmem [shape: bf16[16,112], index: 8, kind: input, shape index: {}]   ;;  %s3731_s9 = inlined_call_operand.vmem [shape: bf16[32,32], index: 9, kind: input, shape index: {}]   ;;  %s3732_s10 = inlined_call_operand.vmem [shape: f32[2,4,8,384], index: 10, kind: output, shape index: {}]  }
   0x1 LB: > { %s2669_s14 = sadd.s32 4294967295, %s2951_s13   ;;  %p2673_p0 = scmp.ge.s32.totalorder %s2951_s13, 1  ;;  %s2951_s13 = sphi %s3035_s13, %s20_s13  }
   0x2   : > { %p332_p1 = scmp.lt.s32.totalorder %s2951_s13, 3 }
   0x4   : > { %p333_p2 = pnand %p2673_p0, %p332_p1 }
   0x5   : > { %p380_p3 = scmp.lt.s32.totalorder (!%p333_p2), %s2669_s14, 1  ;;  %v2953_v2 = vmov (!%p333_p2), 0.0   ;;  %s2954_s19 = smov (!%p333_p2), 80   ;;  %vm413_vm0 = vcmask (!%p333_p2), 523264   ;;  %v2956_v4 = vmov (!%p333_p2), 0   ;;  %vm2963_vm1 = vmmov (!%p333_p2), 0  }
   0x6   : > { %336 = sbr.rel (%p333_p2) target bundleno = 2986 (0xbaa), region = 60  ;;  %2781 = vmatprep.subr.bf16.mxu0 (!%p333_p2), %v2953_v2  ;;  %s2955_s20 = smov (!%p333_p2), 81   ;;  %414 = vst.msk [vmem:[#allocation4 + $0x20] sm:$0xff] (!%p333_p2), %vm413_vm0, %v2956_v4  ;;  %812 = vmatprep.mubr.bf16.mxu1 (!%p333_p2), %v2956_v4  ;;  %vm439_vm2 = vcmask (!%p333_p2), 654336   ;;  %vm425_vm3 = vcmask (!%p333_p2), 662528   ;;  %vm453_vm4 = vcmask (!%p333_p2), 646144  }
   0x7   : > { %s2957_s21 = smov (!%p333_p2), 79   ;;  %s2958_s22 = smov (!%p333_p2), 65   ;;  %2791 = vmatprep.mubr.msk.bf16.mxu0 (!%p333_p2), %vm2963_vm1, %v2953_v2  ;;  %vm467_vm5 = vcmask (!%p333_p2), 531456   ;;  %vm495_vm6 = vcmask (!%p333_p2), 515072   ;;  %vm509_vm7 = vcmask (!%p333_p2), 400384   ;;  %vm523_vm8 = vcmask (!%p333_p2), 392192  }
   0x8   : > { %s2959_s23 = smov (!%p333_p2), 64   ;;  %s2960_s24 = smov (!%p333_p2), 63   ;;  %vm537_vm9 = vcmask (!%p333_p2), 384000   ;;  %vm551_vm10 = vcmask (!%p333_p2), 1043456   ;;  %v541_v38 = vld [vmem:[%s3727_s5] sm:$0x3] (!%p333_p2) }
   0x9   : > { %s2961_s25 = smov (!%p333_p2), 49   ;;  %s2962_s26 = smov (!%p333_p2), 48   ;;  %vm547_vm11 = vcmask (!%p333_p2), 588800   ;;  %v2893_v39 = vld [vmem:[%s3728_s6 + $0x4] ss:$12 sps:$4 sm:$0xff] (!%p333_p2)   ;;  %vm403_vm12 = vcmask (!%p333_p2), 779264  }
   0xa   : > { %s2964_s27 = smov (!%p333_p2), 47   ;;  %v2895_v40 = vld [vmem:[%s3728_s6] ss:$12 sps:$4 sm:$0xff] (!%p333_p2)   ;;  %v2896_v41 = vld [vmem:[%s3728_s6 + $0x8] ss:$12 sps:$4 sm:$0xff] (!%p333_p2)   ;;  %780 = vmatprep.subr.bf16.mxu1 (!%p333_p2), %v2893_v39  ;;  %vm405_vm13 = vcmask (!%p333_p2), 1042176  }
   0xb   : > { %v2897_v42 = vld [vmem:[%s3728_s6 + $0x1c] ss:$12 sps:$4 sm:$0xff] (!%p333_p2)   ;;  %781 = vmatpush1.bf16.msra.mxu1 (!%p333_p2), %v2895_v40  ;;  %v2698_v43 = vld [vmem:[%s3726_s4] ss:$0 sm:$0xff] (!%p333_p2)  ;;  %v2899_v52 = vld [vmem:[%s3728_s6 + $0x18] ss:$12 sps:$4 sm:$0xff] (!%p333_p2)  }
   0xc   : > { %782 = vmatprep.subr.bf16.mxu1 (!%p333_p2), %v2897_v42  ;;  %v2900_v53 = vld [vmem:[%s3728_s6 + $0x20] ss:$12 sps:$4 sm:$0xff] (!%p333_p2)   ;;  %v2903_v55 = vld [vmem:[%s3728_s6 + $0x30] ss:$12 sps:$4 sm:$0xff] (!%p333_p2)   ;;  %v2904_v56 = vld [vmem:[%s3728_s6 + $0x38] ss:$12 sps:$4 sm:$0xff] (!%p333_p2)  }
   0xd   : > { %s3734_s14 = smov (!%p380_p3, %s2669_s14), 1  ;;  %v2901_v54 = vld [vmem:[%s3728_s6 + $0x34] ss:$12 sps:$4 sm:$0xff]   ;;  %v2905_v57 = vld [vmem:[%s3728_s6 + $0x4c] ss:$12 sps:$4 sm:$0xff]   ;;  %vm406_vm14 = vcmask 519170  }
   0xe   : > { %s2748_s15 = sshll.u32 %s3734_s14, 3  ;;  %v2907_v58 = vld [vmem:[%s3728_s6 + $0x48] ss:$12 sps:$4 sm:$0xff]   ;;  %v2908_v59 = vld [vmem:[%s3728_s6 + $0x50] ss:$12 sps:$4 sm:$0xff]   ;;  %vm409_vm15 = vcmask 785408  }
   0xf   : > { %s384_s18 = scalar_lea.vmem %s3722_s0, %s2748_s15  ;;  %783 = vmatpush1.bf16.msra.mxu1 %v2899_v52  ;;  %v2909_v60 = vld [vmem:[%s3728_s6 + $0x64] ss:$12 sps:$4 sm:$0xff]   ;;  %v2911_v61 = vld [vmem:[%s3728_s6 + $0x60] ss:$12 sps:$4 sm:$0xff]   ;;  %v2912_v62 = vld [vmem:[%s3728_s6 + $0x68] ss:$12 sps:$4 sm:$0xff]  }
  0x10   : > { %v429_v0 = vld [vmem:[%s384_s18] sm:$0xff]  ;;  %784 = vmatprep.subr.bf16.mxu1 %v2901_v54  ;;  %v2913_v63 = vld [vmem:[%s3728_s6 + $0x7c] ss:$12 sps:$4 sm:$0xff]   ;;  %404 = vst.msk [vmem:[#allocation3] sm:$0x3] %vm403_vm12, %v2956_v4  ;;  %s2853_s29 = smul.u32 6, %s3734_s14 }
  0x11   : > { %v2681_v1 = vcombine.low %v429_v0, %v429_v0  ;;  %v2682_v3 = vcombine.high %v429_v0, %v429_v0  ;;  %v2915_v0 = vld [vmem:[%s3728_s6 + $0x78] ss:$12 sps:$4 sm:$0xff]   ;;  %410 = vst.msk [vmem:[#allocation4] sm:$0xff] %vm409_vm15, %v2956_v4  ;;  %s2966_s15 = smov 96   ;;  %s2967_s16 = smov 56   ;;  %vm1005_vm12 = vcmask 457728  }
  0x12   : > { %s389_s12 = scalar_lea.vmem %s3723_s1, %s2853_s29  ;;  %s2968_s17 = smov 112  }
  0x13   : > { %435 = vrot.lane.b32.xlu1 %v2681_v1, %s2954_s19  ;;  %421 = vrot.lane.b32.xlu0 %v2681_v1, %s2955_s20  ;;  %s2969_s18 = smov 104   ;;  %s2978_s28 = smov 31  }
  0x14   : > { %785 = vmatpush1.bf16.msra.mxu1 %v2903_v55 }
  0x15   : > { %786 = vmatprep.subr.bf16.mxu1 %v2905_v57 }
  0x17   : > { %437 = vrot.lane.b32.xlu1 %v2682_v3, %s2954_s19  ;;  %423 = vrot.lane.b32.xlu0 %v2682_v3, %s2955_s20  ;;  %s2970_s20 = smov 33  }
  0x18   : > { %787 = vmatpush1.bf16.msra.mxu1 %v2907_v58 }
  0x19   : > { %788 = vmatprep.subr.bf16.mxu1 %v2909_v60 }
  0x1b   : > { %451 = vrot.lane.b32.xlu1 %v2682_v3, %s2957_s21  ;;  %449 = vrot.lane.b32.xlu0 %v2681_v1, %s2957_s21  ;;  %s2971_s21 = smov 88  }
  0x1c   : > { %789 = vmatpush1.bf16.msra.mxu1 %v2911_v61 }
  0x1d   : > { %790 = vmatprep.subr.bf16.mxu1 %v2913_v63 }
  0x1f   : > { %465 = vrot.lane.b32.xlu1 %v2682_v3, %s2958_s22  ;;  %463 = vrot.lane.b32.xlu0 %v2681_v1, %s2958_s22  ;;  %s2972_s22 = smov 29  }
  0x20   : > { %791 = vmatpush1.bf16.msra.mxu1 %v2915_v0 }
  0x23   : > { %479 = vrot.lane.b32.xlu1 %v2682_v3, %s2959_s23  ;;  %477 = vrot.lane.b32.xlu0 %v2681_v1, %s2959_s23  ;;  %s2973_s23 = smov 8  }
  0x27   : > { %493 = vrot.lane.b32.xlu1 %v2682_v3, %s2960_s24  ;;  %491 = vrot.lane.b32.xlu0 %v2681_v1, %s2960_s24  ;;  %s2974_s24 = smov 32  }
  0x2b   : > { %507 = vrot.lane.b32.xlu1 %v2682_v3, %s2961_s25  ;;  %505 = vrot.lane.b32.xlu0 %v2681_v1, %s2961_s25  ;;  %s2975_s25 = smov 34  }
  0x2f   : > { %521 = vrot.lane.b32.xlu1 %v2682_v3, %s2962_s26  ;;  %519 = vrot.lane.b32.xlu0 %v2681_v1, %s2962_s26  ;;  %s2976_s26 = smov 30  }
  0x33   : > { %535 = vrot.lane.b32.xlu1 %v2682_v3, %s2964_s27  ;;  %533 = vrot.lane.b32.xlu0 %v2681_v1, %s2964_s27  ;;  %v2916_v1 = vld [vmem:[%s3728_s6 + $0x80] ss:$12 sps:$4 sm:$0xff]   ;;  %s2977_s27 = smov 35  }
  0x34   : > { %v2917_v3 = vld [vmem:[%s3728_s6 + $0x94] ss:$12 sps:$4 sm:$0xff]  }
  0x35   : > { %792 = vmatprep.subr.bf16.mxu1 %v2917_v3 }
  0x85   : > { %v436_v5 = vpop.permute.xlu1 %435  ;;  %v422_v6 = vpop.permute.xlu0 %421 }
  0x89   : > { %v438_v7 = vpop.permute.xlu1 %437  ;;  %v424_v8 = vpop.permute.xlu0 %423 }
  0x8a   : > { %v440_v9 = vsel %vm439_vm2, %v436_v5, %v438_v7  ;;  %v426_v10 = vsel %vm425_vm3, %v422_v6, %v424_v8  ;;  %v2919_v5 = vld [vmem:[%s3728_s6 + $0x90] ss:$12 sps:$4 sm:$0xff]   ;;  %v2920_v6 = vld [vmem:[%s3728_s6 + $0x98] ss:$12 sps:$4 sm:$0xff]   ;;  %v2923_v8 = vld [vmem:[%s3728_s6 + $0xa8] ss:$12 sps:$4 sm:$0xff]  }
  0x8b   : > { %442 = vst [vmem:[#allocation2] sm:$0xf0] %v440_v9  ;;  %428 = vst [vmem:[#allocation2] sm:$0xf] %v426_v10  ;;  %v2921_v7 = vld [vmem:[%s3728_s6 + $0xac] ss:$12 sps:$4 sm:$0xff]   ;;  %793 = vmatpush1.bf16.msra.mxu1 %v2919_v5 }
  0x8c   : > { %v2924_v9 = vld [vmem:[%s3728_s6 + $0xb0] ss:$12 sps:$4 sm:$0xff]   ;;  %794 = vmatprep.subr.bf16.mxu1 %v2921_v7  ;;  %vm898_vm3 = vcmask 1043458  }
  0x8d   : > { %v452_v11 = vpop.permute.xlu1 %451  ;;  %v450_v12 = vpop.permute.xlu0 %449 }
  0x8e   : > { %v454_v13 = vsel %vm453_vm4, %v450_v12, %v452_v11  ;;  %vm899_vm4 = vmor %vm898_vm3, %vm405_vm13  ;;  %vm1227_vm3 = vcmask 277504  }
  0x8f   : > { %456 = vst [vmem:[#allocation2 + $0x18] sm:$0xf] %v454_v13  ;;  %795 = vmatpush1.bf16.msra.mxu1 %v2923_v8 }
  0x91   : > { %v466_v14 = vpop.permute.xlu1 %465  ;;  %v464_v15 = vpop.permute.xlu0 %463 }
  0x92   : > { %v468_v16 = vsel %vm467_vm5, %v464_v15, %v466_v14  ;;  %v542_v17 = vld [vmem:[#allocation2] sm:$0xff]  ;;  %vm900_vm5 = vcmask 1045508  }
  0x93   : > { %470 = vst [vmem:[#allocation2 + $0x18] sm:$0xf0] %v468_v16  ;;  %2782 = vmatpush3.bf16.msra.mxu0 %v542_v17 }
  0x94   : > { %2783 = vmatprep.subr.bf16.mxu0 %v2953_v2 }
  0x95   : > { %v480_v18 = vpop.permute.xlu1 %479  ;;  %v478_v19 = vpop.permute.xlu0 %477 }
  0x96   : > { %v482_v20 = vsel %vm413_vm0, %v478_v19, %v480_v18  ;;  %vm407_vm0 = vmor %vm406_vm14, %vm405_vm13  ;;  %vm1079_vm13 = vcmask 64512   ;;  %vm1190_vm14 = vcmask 285696  }
  0x97   : > { %484 = vst [vmem:[#allocation2 + $0x30] sm:$0xf] %v482_v20  ;;  %408 = vst.msk [vmem:[#allocation3 + $0x6] sm:$0xf] %vm407_vm0, %v2956_v4  ;;  %vm1153_vm0 = vcmask 719872  }
  0x99   : > { %v494_v21 = vpop.permute.xlu1 %493  ;;  %v492_v22 = vpop.permute.xlu0 %491 }
  0x9a   : > { %v496_v23 = vsel %vm495_vm6, %v492_v22, %v494_v21  ;;  %v543_v24 = vld [vmem:[#allocation2 + $0x18] sm:$0xff]  ;;  %vm901_vm6 = vmor %vm900_vm5, %vm899_vm4  ;;  %vm1337_vm4 = vcmask 252928   ;;  %vm1374_vm5 = vcmask 244736  }
  0x9b   : > { %498 = vst [vmem:[#allocation2 + $0x30] sm:$0xf0] %v496_v23  ;;  %2784 = vmatpush3.bf16.msra.mxu0 %v543_v24  ;;  %v861_v23 = vld [vmem:[%s389_s12] sm:$0x3f]  ;;  %v2965_v24 = vmov 1983009808  }
  0x9c   : > { %2785 = vmatprep.subr.bf16.mxu0 %v2953_v2 }
  0x9d   : > { %v508_v25 = vpop.permute.xlu1 %507  ;;  %v506_v26 = vpop.permute.xlu0 %505 }
  0x9e   : > { %v510_v27 = vsel %vm509_vm7, %v506_v26, %v508_v25  ;;  %v878_v25 = vunpack.c.l.s4 %v2965_v24  ;;  %v880_v26 = vlaneseq  ;;  %vm902_vm7 = vcmask 785414  }
  0x9f   : > { %512 = vst [vmem:[#allocation2 + $0x48] sm:$0xf] %v510_v27  ;;  %v862_v27 = vunpack.c.l.bf16 %v861_v23 }
  0xa1   : > { %v522_v28 = vpop.permute.xlu1 %521  ;;  %v520_v29 = vpop.permute.xlu0 %519 }
  0xa2   : > { %v524_v30 = vsel %vm523_vm8, %v520_v29, %v522_v28  ;;  %v544_v31 = vld [vmem:[#allocation2 + $0x30] sm:$0xff]  ;;  %v863_v28 = vunpack.c.h.bf16 %v861_v23  ;;  %v879_v29 = vunpack.c.0.s8 %v878_v25  ;;  %vm903_vm8 = vmor %vm902_vm7, %vm901_vm6  ;;  %vm1116_vm6 = vcmask 916480  }
  0xa3   : > { %526 = vst [vmem:[#allocation2 + $0x48] sm:$0xf0] %v524_v30  ;;  %2786 = vmatpush3.bf16.msra.mxu0 %v544_v31  ;;  %v3170_v30 = vshrl.u32 %v880_v26, 7  ;;  %v865_v31 = vcombine.high %v862_v27, %v862_v27  ;;  %vm1264_vm7 = vcmask 269312  }
  0xa4   : > { %2787 = vmatprep.subr.bf16.mxu0 %v2953_v2 }
  0xa5   : > { %v536_v32 = vpop.permute.xlu1 %535  ;;  %v534_v33 = vpop.permute.xlu0 %533 }
  0xa6   : > { %v538_v34 = vsel %vm537_vm9, %v534_v33, %v536_v32  ;;  %vm1042_vm9 = vcmask 261120  }
  0xa7   : > { %540 = vst [vmem:[#allocation2 + $0x60] sm:$0xf] %v538_v34 }
  0xaa   : > { %v545_v35 = vld [vmem:[#allocation2 + $0x48] sm:$0xff] }
  0xab   : > { %2788 = vmatpush3.bf16.msra.mxu0 %v545_v35 }
  0xac   : > { %2789 = vmatprep.subr.bf16.mxu0 %v2953_v2 }
  0xae   : > { %v546_v36 = vld [vmem:[#allocation2 + $0x60] sm:$0xf] }
  0xaf   : > { %v553_v37 = vsel %vm551_vm10, %v546_v36, 0  ;;  %v3173_v36 = vsub.s32 %v879_v29, %v3170_v30 }
  0xb0   : > { %2790 = vmatpush3.bf16.msra.mxu0 %v553_v37 }
  0xb1   : > { %2795 = vmatprep.subr.bf16.mxu0 %v2953_v2 }
  0xb3   : > { %2792 = vmatmul.mubr.msk.bf16.vlgmr.msra.gmra.mrb[0].mxu0 %vm547_vm11, %v541_v38  ;;  %vm932_vm11 = vcmask 850944  }
  0xb4   : > { %2811 = vmatprep.mubr.msk.bf16.mxu0 %vm2963_vm1, %v2953_v2  ;;  %2796 = vmatpush3.bf16.msra.mxu0 %v2896_v41 }
  0xb5   : > { %2797 = vmatprep.subr.bf16.mxu0 %v2953_v2 }
  0xb8   : > { %2798 = vmatpush3.bf16.msra.mxu0 %v2900_v53 }
  0xb9   : > { %2799 = vmatprep.subr.bf16.mxu0 %v2953_v2 }
  0xbc   : > { %2800 = vmatpush3.bf16.msra.mxu0 %v2904_v56 }
  0xbd   : > { %2801 = vmatprep.subr.bf16.mxu0 %v2953_v2 }
  0xc0   : > { %2802 = vmatpush3.bf16.msra.mxu0 %v2908_v59 }
  0xc1   : > { %2803 = vmatprep.subr.bf16.mxu0 %v2953_v2 }
  0xc4   : > { %2804 = vmatpush3.bf16.msra.mxu0 %v2912_v62 }
  0xc5   : > { %2805 = vmatprep.subr.bf16.mxu0 %v2953_v2 }
  0xc8   : > { %2806 = vmatpush3.bf16.msra.mxu0 %v2916_v1 }
  0xc9   : > { %2807 = vmatprep.subr.bf16.mxu0 %v2953_v2 }
  0xcc   : > { %2808 = vmatpush3.bf16.msra.mxu0 %v2920_v6 }
  0xcd   : > { %2809 = vmatprep.subr.bf16.mxu0 %v2953_v2 }
  0xd0   : > { %2810 = vmatpush3.bf16.msra.mxu0 %v2924_v9 }
 0x186   : > { %v3086_v44 = vpop.f32.mrb[0].mxu0 }
 0x187   : > { %v2793_v45 = vpop.f32.mrb[1].mxu0  ;;  %v601_v46 = vmul.f32 %v2698_v43, %v3086_v44 }
 0x188   : > { %v592_v47 = vpop.f32.mrb[2].mxu0 }
 0x189   : > { %v2794_v48 = vpop.f32.mrb[3].mxu0  ;;  %v602_v49 = vsel %vm551_vm10, %v601_v46, 0.0  ;;  %v606_v50 = vmul.f32 %v601_v46, %v3086_v44 }
 0x18a   : > { %603 = vadd.xlane.f32.xlu0 %v602_v49 }
 0x18b   : > { %v607_v51 = vsel %vm551_vm10, %v606_v50, 0.0 }
 0x18c   : > { %608 = vadd.xlane.f32.xlu1 %v607_v51 }
 0x217   : > { %v604_v10 = vpop.xlane.xlu0 %603 }
 0x218   : > { %v605_v11 = vmul.f32 0.015625, %v604_v10 }
 0x219   : > { %v609_v12 = vpop.xlane.xlu1 %608 }
 0x21a   : > { %v611_v13 = vmul.f32 %v605_v11, %v605_v11  ;;  %v610_v14 = vmul.f32 0.015625, %v609_v12  ;;  %v614_v18 = vsub.f32 %v3086_v44, %v605_v11 }
 0x21c   : > { %v612_v15 = vsub.f32 %v610_v14, %v611_v13 }
 0x21e   : > { %v613_v16 = vmax.f32 %v612_v15, 0.0 }
 0x220   : > { %v615_v17 = vadd.f32 1e-05, %v613_v16 }
 0x222   : > { %2933 = vrsqrt.f32 %v615_v17 }
 0x22c   : > { %v2934_v19 = vpop.eup %2933 }
 0x22d   : > { %v617_v20 = vmul.f32 %v2934_v19, %v614_v18 }
 0x22f   : > { %v618_v21 = vmax.f32 %v617_v20, 0.0 }
 0x231   : > { %v619_v22 = vpack.c.bf16 %v618_v21, %v618_v21 }
 0x233   : > { %813 = vmatmul.mubr.bf16.vlgmr.msra.gmra.mrb[0].mxu1 %v619_v22  ;;  %2812 = vmatmul.mubr.bf16.vlgmr.msra.gmra.mrb[4].mxu0 %v619_v22 }
 0x234   : > { %1485 = vmatprep.mubr.bf16.mxu1 %v2956_v4  ;;  %2079 = vmatprep.mubr.bf16.mxu0 %v2956_v4 }
 0x306   : > { %v814_v32 = vpop.f32.mrb[0].mxu1  ;;  %v855_v33 = vpop.f32.mrb[4].mxu0 }
 0x307   : > { %v867_v34 = vmul.f32 %v862_v27, %v814_v32  ;;  %v869_v35 = vmul.f32 %v863_v28, %v855_v33  ;;  %v816_v37 = vpop.f32.mrb[1].mxu1  ;;  %v2813_v38 = vpop.f32.mrb[5].mxu0 }
 0x308   : > { %v868_v39 = vmul.f32 %v865_v31, %v816_v37  ;;  %v818_v40 = vpop.f32.mrb[2].mxu1  ;;  %v858_v41 = vpop.f32.mrb[6].mxu0 }
 0x309   : > { %v872_v42 = vpack.c.bf16 %v869_v35, %v869_v35  ;;  %v819_v43 = vpop.f32.mrb[3].mxu1  ;;  %v2814_v44 = vpop.f32.mrb[7].mxu0 }
 0x30a   : > { %v2723_v45 = vpack.c.bf16 %v868_v39, %v867_v34 }
 0x30b   : > { %v890_v46 = vrot.slane %v872_v42, %v3173_v36 }
 0x30c   : > { %v883_v47 = vrot.slane %v2723_v45, %v3173_v36 }
 0x30e   : > { %v891_v48 = vcombine.low %v883_v47, %v890_v46 }
 0x310   : > { %892 = vrot.lane.b32.xlu0 %v891_v48, %s2966_s15 }
 0x382   : > { %v893_v49 = vpop.permute.xlu0 %892 }
 0x383   : > { %v894_v50 = vrot.slane %v893_v49, 6 }
 0x385   : > { %v896_v51 = vsel %vm409_vm15, %v894_v50, %v893_v49 }
 0x386   : > { %904 = vst.msk [vmem:[#allocation3] sm:$0xff] %vm903_vm8, %v896_v51  ;;  %vm1411_vm8 = vcmask 236544  }
 0x38d   : > { %v978_v52 = vld [vmem:[#allocation3] sm:$0xff] }
 0x38e   : > { %v3181_v53 = vrot.slane %v978_v52, %v3173_v36  ;;  %v3183_v54 = vld [vmem:[#allocation3 + $0x2] sm:$0xff]  ;;  %v1276_v56 = vcombine.high %v978_v52, %v978_v52  ;;  %v944_v59 = vcombine.low %v978_v52, %v978_v52 }
 0x38f   : > { %v3191_v55 = vrot.slane %v3183_v54, %v3173_v36  ;;  %v1091_v62 = vcombine.low %v3183_v54, %v3183_v54  ;;  %v1128_v1 = vcombine.high %v3183_v54, %v3183_v54 }
 0x390   : > { %999 = vrot.lane.b32.xlu1 %v3181_v53, %s2967_s16  ;;  %965 = vrot.lane.b32.xlu0 %v3181_v53, %s2954_s19  ;;  %v921_v57 = vrot.slane %v1276_v56, %v3173_v36  ;;  %v1033_v58 = vcombine.low %v3181_v53, %v3181_v53  ;;  %v922_v60 = vcombine.high %v3181_v53, %v3181_v53 }
 0x391   : > { %v951_v61 = vrot.slane %v944_v59, %v3173_v36  ;;  %v1098_v63 = vrot.slane %v1091_v62, %v3173_v36  ;;  %v1143_v0 = vcombine.low %v3191_v55, %v3191_v55  ;;  %v1142_v7 = vrot.slane %v1128_v1, %v3173_v36 }
 0x392   : > { %v996_v3 = vcombine.low %v921_v57, %v921_v57  ;;  %v1107_v10 = vcombine.high %v3191_v55, %v3191_v55  ;;  %v923_v11 = vcombine.high %v921_v57, %v921_v57 }
 0x393   : > { %v959_v5 = vcombine.high %v951_v61, %v951_v61  ;;  %v1032_v6 = vcombine.low %v951_v61, %v951_v61  ;;  %v1106_v8 = vcombine.high %v1098_v63, %v1098_v63  ;;  %v1144_v9 = vcombine.low %v1142_v7, %v1142_v7 }
 0x394   : > { %1112 = vrot.lane.b32.xlu0 %v3191_v55, %s2968_s17  ;;  %924 = vrot.lane.b32.xlu1 %v3181_v53, %s2969_s18 }
 0x398   : > { %1260 = vrot.lane.b32.xlu0 %v3181_v53, %s2970_s20  ;;  %1147 = vrot.lane.b32.xlu1 %v3191_v55, %s2971_s21 }
 0x39c   : > { %1407 = vrot.lane.b32.xlu0 %v3181_v53, %s2972_s22  ;;  %1071 = vrot.lane.b32.xlu1 %v3181_v53, %s2973_s23 }
 0x3a0   : > { %1040 = vrot.lane.b32.xlu0 %v3181_v53, %s2974_s24  ;;  %1295 = vrot.lane.b32.xlu1 %v3181_v53, %s2974_s24 }
 0x3a4   : > { %1219 = vrot.lane.b32.xlu1 %v3181_v53, %s2975_s25  ;;  %928 = vrot.lane.b32.xlu0 %v921_v57, %s2969_s18 }
 0x3a8   : > { %1366 = vrot.lane.b32.xlu1 %v3181_v53, %s2976_s26  ;;  %1038 = vrot.lane.b32.xlu0 %v1033_v58, %s2974_s24 }
 0x3ac   : > { %926 = vrot.lane.b32.xlu1 %v922_v60, %s2969_s18  ;;  %961 = vrot.lane.b32.xlu0 %v951_v61, %s2954_s19 }
 0x3b0   : > { %1036 = vrot.lane.b32.xlu1 %v951_v61, %s2974_s24  ;;  %1075 = vrot.lane.b32.xlu0 %v921_v57, %s2973_s23 }
 0x3b4   : > { %997 = vrot.lane.b32.xlu1 %v1033_v58, %s2967_s16  ;;  %1186 = vrot.lane.b32.xlu0 %v1033_v58, %s2977_s27 }
 0x3b8   : > { %1073 = vrot.lane.b32.xlu1 %v922_v60, %s2973_s23  ;;  %1108 = vrot.lane.b32.xlu0 %v1098_v63, %s2968_s17 }
 0x3bc   : > { %1184 = vrot.lane.b32.xlu1 %v951_v61, %s2977_s27  ;;  %1223 = vrot.lane.b32.xlu0 %v921_v57, %s2975_s25 }
 0x3c0   : > { %1145 = vrot.lane.b32.xlu1 %v1143_v0, %s2971_s21  ;;  %1333 = vrot.lane.b32.xlu0 %v1033_v58, %s2978_s28 }
 0x3c4   : > { %1221 = vrot.lane.b32.xlu1 %v922_v60, %s2975_s25  ;;  %1256 = vrot.lane.b32.xlu0 %v951_v61, %s2970_s20 }
 0x3c8   : > { %1331 = vrot.lane.b32.xlu1 %v951_v61, %s2978_s28  ;;  %1368 = vrot.lane.b32.xlu0 %v922_v60, %s2976_s26 }
 0x3cc   : > { %1293 = vrot.lane.b32.xlu1 %v1033_v58, %s2974_s24  ;;  %1403 = vrot.lane.b32.xlu0 %v951_v61, %s2972_s22 }
 0x3d0   : > { %1370 = vrot.lane.b32.xlu1 %v921_v57, %s2976_s26  ;;  %967 = vrot.lane.b32.xlu0 %v922_v60, %s2954_s19 }
 0x3d4   : > { %1003 = vrot.lane.b32.xlu1 %v921_v57, %s2967_s16  ;;  %1001 = vrot.lane.b32.xlu0 %v996_v3, %s2967_s16 }
 0x3d8   : > { %963 = vrot.lane.b32.xlu1 %v959_v5, %s2954_s19  ;;  %1034 = vrot.lane.b32.xlu0 %v1032_v6, %s2974_s24 }
 0x3dc   : > { %1110 = vrot.lane.b32.xlu1 %v1106_v8, %s2968_s17  ;;  %1149 = vrot.lane.b32.xlu0 %v1144_v9, %s2971_s21 }
 0x3e0   : > { %1258 = vrot.lane.b32.xlu1 %v959_v5, %s2970_s20  ;;  %1182 = vrot.lane.b32.xlu0 %v1032_v6, %s2977_s27 }
 0x3e4   : > { %1151 = vrot.lane.b32.xlu1 %v1142_v7, %s2971_s21  ;;  %1297 = vrot.lane.b32.xlu0 %v996_v3, %s2974_s24 }
 0x3e8   : > { %1299 = vrot.lane.b32.xlu1 %v921_v57, %s2974_s24  ;;  %1329 = vrot.lane.b32.xlu0 %v1032_v6, %s2978_s28 }
 0x3ec   : > { %1405 = vrot.lane.b32.xlu1 %v959_v5, %s2972_s22  ;;  %1114 = vrot.lane.b32.xlu0 %v1107_v10, %s2968_s17 }
 0x3f0   : > { %1188 = vrot.lane.b32.xlu0 %v3181_v53, %s2977_s27  ;;  %930 = vrot.lane.b32.xlu1 %v923_v11, %s2969_s18 }
 0x3f4   : > { %1262 = vrot.lane.b32.xlu0 %v922_v60, %s2970_s20  ;;  %1077 = vrot.lane.b32.xlu1 %v923_v11, %s2973_s23 }
 0x3f8   : > { %1335 = vrot.lane.b32.xlu0 %v3181_v53, %s2978_s28  ;;  %1225 = vrot.lane.b32.xlu1 %v923_v11, %s2975_s25 }
 0x3fc   : > { %1409 = vrot.lane.b32.xlu0 %v922_v60, %s2972_s22  ;;  %1372 = vrot.lane.b32.xlu1 %v923_v11, %s2976_s26 }
 0x402   : > { %v3275_v12 = vpop.permute.xlu1 %999  ;;  %v3277_v13 = vpop.permute.xlu0 %965 }
 0x406   : > { %v3279_v14 = vpop.permute.xlu0 %1112  ;;  %v925_v15 = vpop.permute.xlu1 %924 }
 0x40a   : > { %v3281_v16 = vpop.permute.xlu0 %1260  ;;  %v3283_v17 = vpop.permute.xlu1 %1147 }
 0x40e   : > { %v3285_v18 = vpop.permute.xlu0 %1407  ;;  %v1072_v19 = vpop.permute.xlu1 %1071 }
 0x412   : > { %v1041_v20 = vpop.permute.xlu0 %1040  ;;  %v3287_v21 = vpop.permute.xlu1 %1295 }
 0x416   : > { %v1220_v22 = vpop.permute.xlu1 %1219  ;;  %v3289_v23 = vpop.permute.xlu0 %928 }
 0x41a   : > { %v1367_v24 = vpop.permute.xlu1 %1366  ;;  %v1039_v25 = vpop.permute.xlu0 %1038 }
 0x41b   : > { %v1045_v26 = vsel %vm1042_vm9, %v1039_v25, %v1041_v20 }
 0x41c   : > { %1051 = vst [vmem:[#allocation2 + $0x10] sm:$0xc0] %v1045_v26 }
 0x41e   : > { %v927_v27 = vpop.permute.xlu1 %926  ;;  %v3292_v28 = vpop.permute.xlu0 %961 }
 0x41f   : > { %v933_v29 = vsel %vm932_vm11, %v925_v15, %v927_v27  ;;  %v934_v31 = vsel %vm932_vm11, %v927_v27, %v3289_v23 }
 0x420   : > { %939 = vst [vmem:[#allocation2] sm:$0x3] %v933_v29  ;;  %940 = vst [vmem:[#allocation2 + $0x8] sm:$0x3] %v934_v31 }
 0x422   : > { %v1037_v32 = vpop.permute.xlu1 %1036  ;;  %v3297_v33 = vpop.permute.xlu0 %1075 }
 0x423   : > { %v1044_v34 = vsel %vm1042_vm9, %v1037_v32, %v1039_v25 }
 0x424   : > { %1050 = vst [vmem:[#allocation2 + $0x8] sm:$0xc0] %v1044_v34 }
 0x426   : > { %v998_v35 = vpop.permute.xlu1 %997  ;;  %v3300_v36 = vpop.permute.xlu0 %1186 }
 0x427   : > { %v1006_v37 = vsel %vm1005_vm12, %v998_v35, %v3275_v12 }
 0x428   : > { %1012 = vst [vmem:[#allocation2] sm:$0x30] %v1006_v37 }
 0x42a   : > { %v1074_v38 = vpop.permute.xlu1 %1073  ;;  %v1109_v39 = vpop.permute.xlu0 %1108 }
 0x42b   : > { %v1080_v40 = vsel %vm1079_vm13, %v1072_v19, %v1074_v38  ;;  %v1081_v41 = vsel %vm1079_vm13, %v1074_v38, %v3297_v33 }
 0x42c   : > { %1086 = vst [vmem:[#allocation2 + $0x18] sm:$0x3] %v1080_v40  ;;  %1087 = vst [vmem:[#allocation2 + $0x20] sm:$0x3] %v1081_v41 }
 0x42e   : > { %v3307_v42 = vpop.permute.xlu1 %1184  ;;  %v3309_v43 = vpop.permute.xlu0 %1223 }
 0x42f   : > { %v1192_v44 = vsel %vm1190_vm14, %v3307_v42, %v3300_v36 }
 0x430   : > { %1198 = vst [vmem:[#allocation2 + $0x20] sm:$0xc0] %v1192_v44 }
 0x432   : > { %v1146_v45 = vpop.permute.xlu1 %1145  ;;  %v3314_v46 = vpop.permute.xlu0 %1333 }
 0x433   : > { %v1154_v47 = vsel %vm1153_vm0, %v1146_v45, %v3283_v17 }
 0x434   : > { %1160 = vst [vmem:[#allocation2 + $0x18] sm:$0x30] %v1154_v47 }
 0x436   : > { %v1222_v48 = vpop.permute.xlu1 %1221  ;;  %v1257_v49 = vpop.permute.xlu0 %1256 }
 0x437   : > { %v1228_v50 = vsel %vm1227_vm3, %v1220_v22, %v1222_v48  ;;  %v1229_v51 = vsel %vm1227_vm3, %v1222_v48, %v3309_v43 }
 0x438   : > { %1234 = vst [vmem:[#allocation2 + $0x30] sm:$0x3] %v1228_v50  ;;  %1235 = vst [vmem:[#allocation2 + $0x38] sm:$0x3] %v1229_v51 }
 0x43a   : > { %v3321_v52 = vpop.permute.xlu1 %1331  ;;  %v1369_v53 = vpop.permute.xlu0 %1368 }
 0x43b   : > { %v1339_v54 = vsel %vm1337_vm4, %v3321_v52, %v3314_v46  ;;  %v1375_v55 = vsel %vm1374_vm5, %v1367_v24, %v1369_v53 }
 0x43c   : > { %1345 = vst [vmem:[#allocation2 + $0x38] sm:$0xc0] %v1339_v54  ;;  %1381 = vst [vmem:[#allocation2 + $0x48] sm:$0x3] %v1375_v55 }
 0x43e   : > { %v1294_v56 = vpop.permute.xlu1 %1293  ;;  %v3327_v57 = vpop.permute.xlu0 %1403 }
 0x43f   : > { %v1301_v58 = vsel %vm1042_vm9, %v1294_v56, %v3287_v21 }
 0x440   : > { %1307 = vst [vmem:[#allocation2 + $0x30] sm:$0x30] %v1301_v58 }
 0x442   : > { %v3331_v59 = vpop.permute.xlu1 %1370  ;;  %v968_v60 = vpop.permute.xlu0 %967 }
 0x443   : > { %v1376_v61 = vsel %vm1374_vm5, %v1369_v53, %v3331_v59  ;;  %v971_v62 = vsel %vm439_vm2, %v3277_v13, %v968_v60 }
 0x444   : > { %1382 = vst [vmem:[#allocation2 + $0x50] sm:$0x3] %v1376_v61  ;;  %977 = vst [vmem:[#allocation2 + $0x10] sm:$0xc] %v971_v62 }
 0x446   : > { %v1004_v63 = vpop.permute.xlu1 %1003  ;;  %v1002_v0 = vpop.permute.xlu0 %1001 }
 0x447   : > { %v1007_v1 = vsel %vm1005_vm12, %v3275_v12, %v1002_v0  ;;  %v1008_v3 = vsel %vm1005_vm12, %v1002_v0, %v1004_v63 }
 0x448   : > { %1013 = vst [vmem:[#allocation2 + $0x8] sm:$0x30] %v1007_v1  ;;  %1014 = vst [vmem:[#allocation2 + $0x10] sm:$0x30] %v1008_v3 }
 0x44a   : > { %v964_v5 = vpop.permute.xlu1 %963  ;;  %v1035_v6 = vpop.permute.xlu0 %1034 }
 0x44b   : > { %v969_v7 = vsel %vm439_vm2, %v3292_v28, %v964_v5  ;;  %v970_v8 = vsel %vm439_vm2, %v964_v5, %v3277_v13  ;;  %v1043_v9 = vsel %vm1042_vm9, %v1035_v6, %v1037_v32  ;;  %v1544_v5 = vsub.s32 1, %v3170_v30 }
 0x44c   : > { %975 = vst [vmem:[#allocation2] sm:$0xc] %v969_v7  ;;  %976 = vst [vmem:[#allocation2 + $0x8] sm:$0xc] %v970_v8 }
 0x44d   : > { %1049 = vst [vmem:[#allocation2] sm:$0xc0] %v1043_v9 }
 0x44e   : > { %v1111_v10 = vpop.permute.xlu1 %1110  ;;  %v1150_v11 = vpop.permute.xlu0 %1149 }
 0x44f   : > { %v1117_v12 = vsel %vm1116_vm6, %v1109_v39, %v1111_v10  ;;  %v1118_v15 = vsel %vm1116_vm6, %v1111_v10, %v3279_v14  ;;  %v1155_v19 = vsel %vm1153_vm0, %v3283_v17, %v1150_v11 }
 0x450   : > { %1123 = vst [vmem:[#allocation2 + $0x18] sm:$0xc] %v1117_v12  ;;  %1124 = vst [vmem:[#allocation2 + $0x20] sm:$0xc] %v1118_v15 }
 0x451   : > { %1161 = vst [vmem:[#allocation2 + $0x20] sm:$0x30] %v1155_v19 }
 0x452   : > { %v1259_v13 = vpop.permute.xlu1 %1258  ;;  %v1183_v20 = vpop.permute.xlu0 %1182 }
 0x453   : > { %v1265_v22 = vsel %vm1264_vm7, %v1257_v49, %v1259_v13  ;;  %v1266_v24 = vsel %vm1264_vm7, %v1259_v13, %v3281_v16  ;;  %v1191_v25 = vsel %vm1190_vm14, %v1183_v20, %v3307_v42  ;;  %v1424_v26 = vld [vmem:[#allocation2 + $0x8] sm:$0xff] }
 0x454   : > { %v1423_v27 = vld [vmem:[#allocation2] sm:$0xff]  ;;  %1271 = vst [vmem:[#allocation2 + $0x30] sm:$0xc] %v1265_v22  ;;  %1272 = vst [vmem:[#allocation2 + $0x38] sm:$0xc] %v1266_v24  ;;  %1453 = vmatprep.subr.bf16.mxu1 %v1424_v26 }
 0x455   : > { %1197 = vst [vmem:[#allocation2 + $0x18] sm:$0xc0] %v1191_v25  ;;  %1454 = vmatpush1.bf16.msra.mxu1 %v1423_v27 }
 0x456   : > { %v1152_v17 = vpop.permute.xlu1 %1151  ;;  %v1298_v28 = vpop.permute.xlu0 %1297 }
 0x457   : > { %v1156_v29 = vsel %vm1153_vm0, %v1150_v11, %v1152_v17  ;;  %v1302_v31 = vsel %vm1042_vm9, %v3287_v21, %v1298_v28 }
 0x458   : > { %v1427_v32 = vld [vmem:[#allocation2 + $0x20] sm:$0xff]  ;;  %1162 = vst [vmem:[#allocation2 + $0x28] sm:$0x30] %v1156_v29  ;;  %1308 = vst [vmem:[#allocation2 + $0x38] sm:$0x30] %v1302_v31  ;;  %v1548_v29 = vsub.s32 2, %v3170_v30 }
 0x459   : > { %1455 = vmatprep.subr.bf16.mxu1 %v1427_v32 }
 0x45a   : > { %v1300_v34 = vpop.permute.xlu1 %1299  ;;  %v1330_v35 = vpop.permute.xlu0 %1329 }
 0x45b   : > { %v1303_v37 = vsel %vm1042_vm9, %v1298_v28, %v1300_v34  ;;  %v1338_v38 = vsel %vm1337_vm4, %v1330_v35, %v3321_v52 }
 0x45c   : > { %v1426_v39 = vld [vmem:[#allocation2 + $0x18] sm:$0xff]  ;;  %1309 = vst [vmem:[#allocation2 + $0x40] sm:$0x30] %v1303_v37  ;;  %1344 = vst [vmem:[#allocation2 + $0x30] sm:$0xc0] %v1338_v38 }
 0x45d   : > { %1456 = vmatpush1.bf16.msra.mxu1 %v1426_v39 }
 0x45e   : > { %v1406_v40 = vpop.permute.xlu1 %1405  ;;  %v1115_v41 = vpop.permute.xlu0 %1114 }
 0x45f   : > { %v1412_v21 = vsel %vm1411_vm8, %v3327_v57, %v1406_v40  ;;  %v1413_v42 = vsel %vm1411_vm8, %v1406_v40, %v3285_v18  ;;  %v1119_v44 = vsel %vm1116_vm6, %v3279_v14, %v1115_v41  ;;  %v1430_v45 = vld [vmem:[#allocation2 + $0x38] sm:$0xff] }
 0x460   : > { %1418 = vst [vmem:[#allocation2 + $0x48] sm:$0xc] %v1412_v21  ;;  %1419 = vst [vmem:[#allocation2 + $0x50] sm:$0xc] %v1413_v42  ;;  %1457 = vmatprep.subr.bf16.mxu1 %v1430_v45 }
 0x461   : > { %1125 = vst [vmem:[#allocation2 + $0x28] sm:$0xc] %v1119_v44 }
 0x462   : > { %v1189_v47 = vpop.permute.xlu0 %1188  ;;  %v931_v48 = vpop.permute.xlu1 %930 }
 0x463   : > { %v1193_v49 = vsel %vm1190_vm14, %v3300_v36, %v1189_v47  ;;  %v935_v50 = vsel %vm932_vm11, %v3289_v23, %v931_v48  ;;  %v1429_v51 = vld [vmem:[#allocation2 + $0x30] sm:$0xff]  ;;  %v2929_v36 = vld [vmem:[%s3729_s7] sm:$0xff]  }
 0x464   : > { %1199 = vst [vmem:[#allocation2 + $0x28] sm:$0xc0] %v1193_v49  ;;  %941 = vst [vmem:[#allocation2 + $0x10] sm:$0x3] %v935_v50  ;;  %1458 = vmatpush1.bf16.msra.mxu1 %v1429_v51 }
 0x466   : > { %v1263_v52 = vpop.permute.xlu0 %1262  ;;  %v1078_v53 = vpop.permute.xlu1 %1077 }
 0x467   : > { %v1267_v14 = vsel %vm1264_vm7, %v3281_v16, %v1263_v52  ;;  %v1082_v54 = vsel %vm1079_vm13, %v3297_v33, %v1078_v53  ;;  %v1433_v55 = vld [vmem:[#allocation2 + $0x50] sm:$0xf]  ;;  %v1432_v56 = vld [vmem:[#allocation2 + $0x48] sm:$0xf] }
 0x468   : > { %1273 = vst [vmem:[#allocation2 + $0x40] sm:$0xc] %v1267_v14  ;;  %1088 = vst [vmem:[#allocation2 + $0x28] sm:$0x3] %v1082_v54  ;;  %2725 = vmatprep.subr.msk.bf16.mxu1 %vm551_vm10, %v1433_v55  ;;  %v1445_v23 = vsel %vm551_vm10, %v1432_v56, 0 }
 0x469   : > { %1460 = vmatpush1.bf16.msra.mxu1 %v1445_v23 }
 0x46a   : > { %v1336_v57 = vpop.permute.xlu0 %1335  ;;  %v1226_v58 = vpop.permute.xlu1 %1225  ;;  %2815 = vmatprep.subr.bf16.mxu1 %v2953_v2 }
 0x46b   : > { %v1340_v16 = vsel %vm1337_vm4, %v3314_v46, %v1336_v57  ;;  %v1230_v33 = vsel %vm1227_vm3, %v3309_v43, %v1226_v58  ;;  %v1425_v60 = vld [vmem:[#allocation2 + $0x10] sm:$0xff] }
 0x46c   : > { %1346 = vst [vmem:[#allocation2 + $0x40] sm:$0xc0] %v1340_v16  ;;  %1236 = vst [vmem:[#allocation2 + $0x40] sm:$0x3] %v1230_v33  ;;  %2726 = vmatmul.mubr.msk.bf16.vlgmr.msra.gmra.mrb[4].mxu1 %vm1005_vm12, %v2929_v36 }
 0x46d   : > { %2816 = vmatpush3.bf16.msra.mxu1 %v1425_v60  ;;  %2823 = vmatprep.mubr.msk.bf16.mxu1 %vm2963_vm1, %v2953_v2 }
 0x46e   : > { %v1410_v61 = vpop.permute.xlu0 %1409  ;;  %v1373_v62 = vpop.permute.xlu1 %1372  ;;  %2817 = vmatprep.subr.bf16.mxu1 %v2953_v2 }
 0x46f   : > { %v1414_v63 = vsel %vm1411_vm8, %v3285_v18, %v1410_v61  ;;  %v1377_v46 = vsel %vm1374_vm5, %v3331_v59, %v1373_v62  ;;  %v1428_v43 = vld [vmem:[#allocation2 + $0x28] sm:$0xff]  ;;  %v1540_v18 = vsub.s32 0, %v3170_v30  ;;  %v401_v59 = vld [vmem:[%s3725_s3] sm:$0x7] }
 0x470   : > { %1420 = vst [vmem:[#allocation2 + $0x58] sm:$0xc] %v1414_v63  ;;  %1383 = vst [vmem:[#allocation2 + $0x58] sm:$0x3] %v1377_v46  ;;  %v3407_v7 = vrot.slane %v401_v59, %v1544_v5  ;;  %v3422_v31 = vrot.slane %v401_v59, %v1548_v29 }
 0x471   : > { %2818 = vmatpush3.bf16.msra.mxu1 %v1428_v43  ;;  %v3405_v6 = vrot.slane %v401_v59, %v1540_v18 }
 0x472   : > { %2819 = vmatprep.subr.bf16.mxu1 %v2953_v2 }
 0x473   : > { %v1431_v0 = vld [vmem:[#allocation2 + $0x40] sm:$0xff] }
 0x475   : > { %2820 = vmatpush3.bf16.msra.mxu1 %v1431_v0 }
 0x476   : > { %2821 = vmatprep.subr.bf16.mxu1 %v2953_v2 }
 0x477   : > { %v1434_v1 = vld [vmem:[#allocation2 + $0x58] sm:$0xf] }
 0x478   : > { %v1451_v3 = vsel %vm551_vm10, %v1434_v1, 0  ;;  %vm2230_vm10 = vcmask 781312  }
 0x479   : > { %2822 = vmatpush3.bf16.msra.mxu1 %v1451_v3 }
 0x47a   : > { %2827 = vmatprep.subr.bf16.mxu1 %v2953_v2 }
 0x47c   : > { %2824 = vmatmul.mubr.msk.bf16.vlgmr.msra.gmra.mrb[8].mxu1 %vm1005_vm12, %v2929_v36 }
 0x47d   : > { %2841 = vmatprep.mubr.msk.bf16.mxu1 %vm2963_vm1, %v2953_v2  ;;  %vm411_vm1 = vcmask 1048320  }
 0x47e   : > { %412 = vst.msk [vmem:[#allocation4 + $0x18] sm:$0xff] %vm411_vm1, %v2956_v4 }
 0x53f   : > { %v3409_v8 = vpop.f32.mrb[4].mxu1 }
 0x540   : > { %v1553_v9 = vmul.f32 %v3405_v6, %v3409_v8  ;;  %v3413_v10 = vpop.f32.mrb[5].mxu1 }
 0x541   : > { %v1554_v11 = vmul.f32 %v3407_v7, %v3413_v10  ;;  %v1491_v12 = vpop.f32.mrb[6].mxu1 }
 0x542   : > { %v1569_v15 = vmul.f32 %v1553_v9, %v3409_v8  ;;  %v1556_v19 = vmul.f32 %v3405_v6, %v1491_v12  ;;  %v1493_v13 = vpop.f32.mrb[7].mxu1 }
 0x543   : > { %v1570_v20 = vmul.f32 %v1554_v11, %v3413_v10  ;;  %v1557_v22 = vmul.f32 %v3407_v7, %v1493_v13  ;;  %v1559_v24 = vadd.f32 %v1554_v11, %v1553_v9 }
 0x544   : > { %v1572_v25 = vmul.f32 %v1556_v19, %v1491_v12 }
 0x545   : > { %v1573_v26 = vmul.f32 %v1557_v22, %v1493_v13  ;;  %v1563_v27 = vadd.f32 %v1557_v22, %v1556_v19  ;;  %v1575_v17 = vadd.f32 %v1570_v20, %v1569_v15 }
 0x547   : > { %v1579_v28 = vadd.f32 %v1573_v26, %v1572_v25 }
 0x54f   : > { %v1530_v32 = vpop.f32.mrb[8].mxu1 }
 0x550   : > { %v2825_v34 = vpop.f32.mrb[9].mxu1  ;;  %v1555_v35 = vmul.f32 %v3422_v31, %v1530_v32 }
 0x551   : > { %v1533_v37 = vpop.f32.mrb[10].mxu1 }
 0x552   : > { %v2826_v38 = vpop.f32.mrb[11].mxu1  ;;  %v1560_v39 = vadd.f32 %v1559_v24, %v1555_v35  ;;  %v1558_v40 = vmul.f32 %v3422_v31, %v1533_v37  ;;  %v1571_v41 = vmul.f32 %v1555_v35, %v1530_v32 }
 0x554   : > { %1561 = vadd.xlane.f32.xlu1 %v1560_v39  ;;  %v1564_v21 = vadd.f32 %v1563_v27, %v1558_v40  ;;  %v1574_v42 = vmul.f32 %v1558_v40, %v1533_v37  ;;  %v1576_v44 = vadd.f32 %v1575_v17, %v1571_v41 }
 0x556   : > { %1565 = vadd.xlane.f32.xlu0 %v1564_v21  ;;  %v1580_v45 = vadd.f32 %v1579_v28, %v1574_v42 }
 0x558   : > { %1581 = vadd.xlane.f32.xlu1 %v1580_v45 }
 0x55a   : > { %1577 = vadd.xlane.f32.xlu0 %v1576_v44 }
 0x5e1   : > { %v1562_v30 = vpop.xlane.xlu1 %1561 }
 0x5e2   : > { %v1567_v48 = vmul.f32 0.00390625, %v1562_v30 }
 0x5e3   : > { %v1566_v47 = vpop.xlane.xlu0 %1565 }
 0x5e4   : > { %v1568_v49 = vmul.f32 0.00390625, %v1566_v47  ;;  %v1585_v14 = vmul.f32 %v1567_v48, %v1567_v48  ;;  %v1591_v62 = vsub.f32 %v3409_v8, %v1567_v48  ;;  %v1592_v63 = vsub.f32 %v3413_v10, %v1567_v48 }
 0x5e5   : > { %v1582_v50 = vpop.xlane.xlu1 %1581  ;;  %v1593_v46 = vsub.f32 %v1530_v32, %v1567_v48 }
 0x5e6   : > { %v1584_v51 = vmul.f32 0.00390625, %v1582_v50  ;;  %v1586_v52 = vmul.f32 %v1568_v49, %v1568_v49  ;;  %v1594_v16 = vsub.f32 %v1491_v12, %v1568_v49  ;;  %v1595_v33 = vsub.f32 %v1493_v13, %v1568_v49 }
 0x5e7   : > { %v1578_v53 = vpop.xlane.xlu0 %1577  ;;  %v1596_v60 = vsub.f32 %v1533_v37, %v1568_v49 }
 0x5e8   : > { %v1583_v54 = vmul.f32 0.00390625, %v1578_v53  ;;  %v1588_v55 = vsub.f32 %v1584_v51, %v1586_v52 }
 0x5ea   : > { %v1587_v56 = vsub.f32 %v1583_v54, %v1585_v14  ;;  %v1590_v23 = vmax.f32 %v1588_v55, 0.0 }
 0x5ec   : > { %v1589_v36 = vmax.f32 %v1587_v56, 0.0  ;;  %v1598_v57 = vadd.f32 1e-05, %v1590_v23 }
 0x5ee   : > { %v1597_v58 = vadd.f32 1e-05, %v1589_v36  ;;  %2935 = vrsqrt.f32 %v1598_v57 }
 0x5f0   : > { %2937 = vrsqrt.f32 %v1597_v58 }
 0x5f8   : > { %v2936_v61 = vpop.eup %2935 }
 0x5f9   : > { %v1605_v0 = vmul.f32 %v2936_v61, %v1595_v33  ;;  %v1604_v1 = vmul.f32 %v2936_v61, %v1594_v16  ;;  %v1606_v3 = vmul.f32 %v2936_v61, %v1596_v60 }
 0x5fa   : > { %v2938_v43 = vpop.eup %2937 }
 0x5fb   : > { %v1602_v18 = vmul.f32 %v2938_v43, %v1592_v63  ;;  %v1601_v59 = vmul.f32 %v2938_v43, %v1591_v62  ;;  %v1603_v5 = vmul.f32 %v2938_v43, %v1593_v46  ;;  %v1611_v9 = vmax.f32 %v1605_v0, 0.0 }
 0x5fc   : > { %v1610_v11 = vmax.f32 %v1604_v1, 0.0  ;;  %v1612_v15 = vmax.f32 %v1606_v3, 0.0 }
 0x5fd   : > { %v1608_v19 = vmax.f32 %v1602_v18, 0.0  ;;  %v1607_v12 = vmax.f32 %v1601_v59, 0.0  ;;  %v1609_v13 = vmax.f32 %v1603_v5, 0.0  ;;  %v1617_v20 = vmul.f32 %v1611_v9, %v3407_v7 }
 0x5fe   : > { %v1616_v8 = vmul.f32 %v1610_v11, %v3405_v6  ;;  %v1618_v25 = vmul.f32 %v1612_v15, %v3422_v31 }
 0x5ff   : > { %v1614_v10 = vmul.f32 %v1608_v19, %v3407_v7  ;;  %v1613_v22 = vmul.f32 %v1607_v12, %v3405_v6  ;;  %v1615_v24 = vmul.f32 %v1609_v13, %v3422_v31 }
 0x601   : > { %v1620_v26 = vpack.c.bf16 %v1617_v20, %v1614_v10  ;;  %v1619_v27 = vpack.c.bf16 %v1616_v8, %v1613_v22  ;;  %v1621_v17 = vpack.c.bf16 %v1618_v25, %v1615_v24 }
 0x603   : > { %1627 = vrot.lane.b32.xlu1 %v1620_v26, %s2966_s15  ;;  %1625 = vrot.lane.b32.xlu0 %v1619_v27, %s2966_s15 }
 0x607   : > { %1629 = vrot.lane.b32.xlu1 %v1621_v17, %s2966_s15 }
 0x675   : > { %v1628_v28 = vpop.permute.xlu1 %1627  ;;  %v1626_v29 = vpop.permute.xlu0 %1625 }
 0x676   : > { %v1631_v32 = vsel %vm409_vm15, %v1626_v29, %v1628_v28  ;;  %1637 = vst.msk [vmem:[#allocation4] sm:$0xff] %vm411_vm1, %v1626_v29 }
 0x677   : > { %1638 = vst [vmem:[#allocation4 + $0x8] sm:$0xff] %v1631_v32 }
 0x679   : > { %v1630_v34 = vpop.permute.xlu1 %1629 }
 0x67a   : > { %v1632_v35 = vsel %vm409_vm15, %v1628_v28, %v1630_v34  ;;  %1640 = vst.msk [vmem:[#allocation4 + $0x18] sm:$0xff] %vm409_vm15, %v1630_v34 }
 0x67b   : > { %1639 = vst [vmem:[#allocation4 + $0x10] sm:$0xff] %v1632_v35 }
 0x67d   : > { %v1828_v37 = vld [vmem:[#allocation4] sm:$0xf0]  ;;  %v1641_v38 = vld [vmem:[#allocation4] sm:$0xf] }
 0x67e   : > { %1836 = vrot.lane.b32.xlu1 %v1828_v37, %s2969_s18  ;;  %1649 = vrot.lane.b32.xlu0 %v1641_v38, %s2977_s27  ;;  %v1882_v41 = vld [vmem:[#allocation4] sm:$0xf0]  ;;  %v1695_v21 = vld [vmem:[#allocation4] sm:$0xf]  ;;  %v1642_v14 = vld [vmem:[#allocation4 + $0x8] sm:$0xf] }
 0x67f   : > { %v1936_v45 = vld [vmem:[#allocation4] sm:$0xf0]  ;;  %v1749_v30 = vld [vmem:[#allocation4] sm:$0xf]  ;;  %v1696_v55 = vld [vmem:[#allocation4 + $0x8] sm:$0xf] }
 0x680   : > { %v1803_v50 = vld [vmem:[#allocation4] sm:$0xf]  ;;  %v1750_v23 = vld [vmem:[#allocation4 + $0x8] sm:$0xf]  ;;  %v1829_v16 = vld [vmem:[#allocation4 + $0x8] sm:$0xf0] }
 0x681   : > { %v1831_v39 = vld [vmem:[#allocation4 + $0x18] sm:$0xf0]  ;;  %v1644_v40 = vld [vmem:[#allocation4 + $0x18] sm:$0xf]  ;;  %v1804_v57 = vld [vmem:[#allocation4 + $0x8] sm:$0xf] }
 0x682   : > { %1842 = vrot.lane.b32.xlu1 %v1831_v39, %s2969_s18  ;;  %1655 = vrot.lane.b32.xlu0 %v1644_v40, %s2977_s27  ;;  %v1885_v42 = vld [vmem:[#allocation4 + $0x18] sm:$0xf0]  ;;  %v1698_v44 = vld [vmem:[#allocation4 + $0x18] sm:$0xf]  ;;  %v1643_v49 = vld [vmem:[#allocation4 + $0x10] sm:$0xf] }
 0x683   : > { %v1939_v47 = vld [vmem:[#allocation4 + $0x18] sm:$0xf0]  ;;  %v1752_v48 = vld [vmem:[#allocation4 + $0x18] sm:$0xf]  ;;  %v1697_v51 = vld [vmem:[#allocation4 + $0x10] sm:$0xf] }
 0x684   : > { %v1806_v52 = vld [vmem:[#allocation4 + $0x18] sm:$0xf]  ;;  %v1751_v53 = vld [vmem:[#allocation4 + $0x10] sm:$0xf]  ;;  %v1830_v56 = vld [vmem:[#allocation4 + $0x10] sm:$0xf0] }
 0x685   : > { %v1805_v54 = vld [vmem:[#allocation4 + $0x10] sm:$0xf]  ;;  %v1884_v36 = vld [vmem:[#allocation4 + $0x10] sm:$0xf0]  ;;  %v1666_v33 = vld [vmem:[#allocation4] sm:$0xf] }
 0x686   : > { %1890 = vrot.lane.b32.xlu1 %v1882_v41, %s2967_s16  ;;  %1703 = vrot.lane.b32.xlu0 %v1695_v21, %s2970_s20  ;;  %v1938_v58 = vld [vmem:[#allocation4 + $0x10] sm:$0xf0]  ;;  %v1674_v60 = vrot.slane %v1666_v33, 4  ;;  %v1883_v61 = vld [vmem:[#allocation4 + $0x8] sm:$0xf0] }
 0x687   : > { %v1669_v62 = vld [vmem:[#allocation4 + $0x18] sm:$0xf]  ;;  %v1937_v46 = vld [vmem:[#allocation4 + $0x8] sm:$0xf0]  ;;  %v1720_v43 = vld [vmem:[#allocation4] sm:$0xf] }
 0x688   : > { %v1677_v63 = vrot.slane %v1669_v62, 4  ;;  %v1728_v0 = vrot.slane %v1720_v43, 4  ;;  %v1991_v1 = vld [vmem:[#allocation4 + $0x10] sm:$0xf0]  ;;  %v1723_v3 = vld [vmem:[#allocation4 + $0x18] sm:$0xf] }
 0x689   : > { %v1853_v18 = vld [vmem:[#allocation4] sm:$0xf0]  ;;  %v1731_v59 = vrot.slane %v1723_v3, 4  ;;  %v1774_v9 = vld [vmem:[#allocation4] sm:$0xf] }
 0x68a   : > { %1896 = vrot.lane.b32.xlu1 %v1885_v42, %s2967_s16  ;;  %1709 = vrot.lane.b32.xlu0 %v1698_v44, %s2970_s20  ;;  %v1861_v5 = vrot.slane %v1853_v18, 4  ;;  %v1856_v11 = vld [vmem:[#allocation4 + $0x18] sm:$0xf0]  ;;  %v1782_v15 = vrot.slane %v1774_v9, 4  ;;  %v1777_v12 = vld [vmem:[#allocation4 + $0x18] sm:$0xf] }
 0x68b   : > { %v1864_v19 = vrot.slane %v1856_v11, 4  ;;  %v1907_v13 = vld [vmem:[#allocation4] sm:$0xf0]  ;;  %v1785_v20 = vrot.slane %v1777_v12, 4  ;;  %v1963_v10 = vld [vmem:[#allocation4 + $0x18] sm:$0xf0] }
 0x68c   : > { %v1915_v8 = vrot.slane %v1907_v13, 4  ;;  %v1910_v22 = vld [vmem:[#allocation4 + $0x18] sm:$0xf0]  ;;  %v1971_v24 = vrot.slane %v1963_v10, 4  ;;  %v1668_v26 = vld [vmem:[#allocation4 + $0x10] sm:$0xf] }
 0x68d   : > { %v1918_v25 = vrot.slane %v1910_v22, 4  ;;  %v1667_v27 = vld [vmem:[#allocation4 + $0x8] sm:$0xf]  ;;  %v1676_v17 = vrot.slane %v1668_v26, 4  ;;  %v1722_v29 = vld [vmem:[#allocation4 + $0x10] sm:$0xf] }
 0x68e   : > { %1944 = vrot.lane.b32.xlu1 %v1936_v45, %s2973_s23  ;;  %1757 = vrot.lane.b32.xlu0 %v1749_v30, %s2978_s28  ;;  %v1675_v28 = vrot.slane %v1667_v27, 4  ;;  %v1721_v32 = vld [vmem:[#allocation4 + $0x8] sm:$0xf]  ;;  %v1730_v34 = vrot.slane %v1722_v29, 4  ;;  %v1776_v37 = vld [vmem:[#allocation4 + $0x10] sm:$0xf] }
 0x68f   : > { %v1729_v35 = vrot.slane %v1721_v32, 4  ;;  %v1775_v38 = vld [vmem:[#allocation4 + $0x8] sm:$0xf]  ;;  %v1784_v39 = vrot.slane %v1776_v37, 4  ;;  %v1854_v41 = vld [vmem:[#allocation4 + $0x8] sm:$0xf0] }
 0x690   : > { %v1783_v40 = vrot.slane %v1775_v38, 4  ;;  %v1862_v21 = vrot.slane %v1854_v41, 4  ;;  %v1992_v42 = vld [vmem:[#allocation4 + $0x18] sm:$0xf0]  ;;  %v1855_v44 = vld [vmem:[#allocation4 + $0x10] sm:$0xf0] }
 0x691   : > { %v1908_v45 = vld [vmem:[#allocation4 + $0x8] sm:$0xf0]  ;;  %v1863_v30 = vrot.slane %v1855_v44, 4 }
 0x692   : > { %1950 = vrot.lane.b32.xlu1 %v1939_v47, %s2973_s23  ;;  %1763 = vrot.lane.b32.xlu0 %v1752_v48, %s2978_s28  ;;  %v1916_v47 = vrot.slane %v1908_v45, 4  ;;  %v1909_v48 = vld [vmem:[#allocation4 + $0x10] sm:$0xf0] }
 0x696   : > { %1653 = vrot.lane.b32.xlu1 %v1643_v49, %s2977_s27  ;;  %1811 = vrot.lane.b32.xlu0 %v1803_v50, %s2972_s22  ;;  %v1962_v49 = vld [vmem:[#allocation4 + $0x10] sm:$0xf0]  ;;  %v1917_v50 = vrot.slane %v1909_v48, 4 }
 0x69a   : > { %1707 = vrot.lane.b32.xlu1 %v1697_v51, %s2970_s20  ;;  %1817 = vrot.lane.b32.xlu0 %v1806_v52, %s2972_s22  ;;  %v1970_v51 = vrot.slane %v1962_v49, 4  ;;  %v1961_v52 = vld [vmem:[#allocation4 + $0x8] sm:$0xf0] }
 0x69e   : > { %1761 = vrot.lane.b32.xlu1 %v1751_v53, %s2978_s28  ;;  %1651 = vrot.lane.b32.xlu0 %v1642_v14, %s2977_s27  ;;  %v1964_v53 = vld [vmem:[#allocation4 + $0x20] sm:$0xf0]  ;;  %v1969_v14 = vrot.slane %v1961_v52, 4 }
 0x6a2   : > { %1815 = vrot.lane.b32.xlu1 %v1805_v54, %s2972_s22  ;;  %1705 = vrot.lane.b32.xlu0 %v1696_v55, %s2970_s20  ;;  %v1990_v54 = vld [vmem:[#allocation4 + $0x8] sm:$0xf0]  ;;  %v1972_v55 = vrot.slane %v1964_v53, 4 }
 0x6a6   : > { %1840 = vrot.lane.b32.xlu1 %v1830_v56, %s2969_s18  ;;  %1759 = vrot.lane.b32.xlu0 %v1750_v23, %s2978_s28  ;;  %v1993_v56 = vld [vmem:[#allocation4 + $0x20] sm:$0xf0] }
 0x6aa   : > { %1894 = vrot.lane.b32.xlu1 %v1884_v36, %s2967_s16  ;;  %1813 = vrot.lane.b32.xlu0 %v1804_v57, %s2972_s22 }
 0x6ae   : > { %1948 = vrot.lane.b32.xlu1 %v1938_v58, %s2973_s23  ;;  %1838 = vrot.lane.b32.xlu0 %v1829_v16, %s2969_s18 }
 0x6b2   : > { %1678 = vrot.lane.b32.xlu1 %v1674_v60, %s2975_s25  ;;  %1892 = vrot.lane.b32.xlu0 %v1883_v61, %s2967_s16 }
 0x6b6   : > { %1684 = vrot.lane.b32.xlu1 %v1677_v63, %s2975_s25  ;;  %1946 = vrot.lane.b32.xlu0 %v1937_v46, %s2973_s23 }
 0x6ba   : > { %1732 = vrot.lane.b32.xlu1 %v1728_v0, %s2974_s24  ;;  %2000 = vrot.lane.b32.xlu0 %v1991_v1, %s2971_s21 }
 0x6be   : > { %1738 = vrot.lane.b32.xlu1 %v1731_v59, %s2974_s24  ;;  %1865 = vrot.lane.b32.xlu0 %v1861_v5, %s2954_s19 }
 0x6c2   : > { %1786 = vrot.lane.b32.xlu1 %v1782_v15, %s2976_s26  ;;  %1871 = vrot.lane.b32.xlu0 %v1864_v19, %s2954_s19 }
 0x6c6   : > { %1792 = vrot.lane.b32.xlu1 %v1785_v20, %s2976_s26  ;;  %1919 = vrot.lane.b32.xlu0 %v1915_v8, %s2974_s24 }
 0x6ca   : > { %1977 = vrot.lane.b32.xlu1 %v1971_v24, %s2968_s17  ;;  %1925 = vrot.lane.b32.xlu0 %v1918_v25, %s2974_s24 }
 0x6ce   : > { %1682 = vrot.lane.b32.xlu1 %v1676_v17, %s2975_s25  ;;  %1680 = vrot.lane.b32.xlu0 %v1675_v28, %s2975_s25 }
 0x6d2   : > { %1736 = vrot.lane.b32.xlu1 %v1730_v34, %s2974_s24  ;;  %1734 = vrot.lane.b32.xlu0 %v1729_v35, %s2974_s24 }
 0x6d6   : > { %1790 = vrot.lane.b32.xlu1 %v1784_v39, %s2976_s26  ;;  %1788 = vrot.lane.b32.xlu0 %v1783_v40, %s2976_s26  ;;  %s2855_s26 = smul.u32 96, %s3734_s14 }
 0x6da   : > { %2002 = vrot.lane.b32.xlu1 %v1992_v42, %s2971_s21  ;;  %1867 = vrot.lane.b32.xlu0 %v1862_v21, %s2954_s19 }
 0x6de   : > { %1869 = vrot.lane.b32.xlu1 %v1863_v30, %s2954_s19  ;;  %1921 = vrot.lane.b32.xlu0 %v1916_v47, %s2974_s24 }
 0x6e2   : > { %1923 = vrot.lane.b32.xlu1 %v1917_v50, %s2974_s24  ;;  %1975 = vrot.lane.b32.xlu0 %v1970_v51, %s2968_s17 }
 0x6e6   : > { %1998 = vrot.lane.b32.xlu1 %v1990_v54, %s2971_s21  ;;  %1973 = vrot.lane.b32.xlu0 %v1969_v14, %s2968_s17 }
 0x6ea   : > { %2004 = vrot.lane.b32.xlu1 %v1993_v56, %s2971_s21  ;;  %1979 = vrot.lane.b32.xlu0 %v1972_v55, %s2968_s17  ;;  %s2854_s17 = smul.u32 12, %s3734_s14 }
 0x6ec   : > { %s394_s21 = scalar_lea.vmem %s3724_s2, %s2854_s17 }
 0x6f0   : > { %v1837_v23 = vpop.permute.xlu1 %1836  ;;  %v1650_v36 = vpop.permute.xlu0 %1649 }
 0x6f4   : > { %v1843_v57 = vpop.permute.xlu1 %1842  ;;  %v1656_v58 = vpop.permute.xlu0 %1655 }
 0x6f8   : > { %v1891_v16 = vpop.permute.xlu1 %1890  ;;  %v1704_v33 = vpop.permute.xlu0 %1703 }
 0x6fc   : > { %v1897_v60 = vpop.permute.xlu1 %1896  ;;  %v1710_v61 = vpop.permute.xlu0 %1709 }
 0x700   : > { %v1945_v62 = vpop.permute.xlu1 %1944  ;;  %v1758_v63 = vpop.permute.xlu0 %1757 }
 0x704   : > { %v1951_v46 = vpop.permute.xlu1 %1950  ;;  %v1764_v43 = vpop.permute.xlu0 %1763 }
 0x708   : > { %v1654_v0 = vpop.permute.xlu1 %1653  ;;  %v1812_v1 = vpop.permute.xlu0 %1811 }
 0x709   : > { %v1659_v3 = vsel %vm1190_vm14, %v1654_v0, %v1656_v58 }
 0x70a   : > { %1665 = vst [vmem:[#allocation2 + $0x10] sm:$0xf] %v1659_v3 }
 0x70c   : > { %v1708_v18 = vpop.permute.xlu1 %1707  ;;  %v1818_v59 = vpop.permute.xlu0 %1817 }
 0x70d   : > { %v1713_v5 = vsel %vm1264_vm7, %v1708_v18, %v1710_v61 }
 0x70e   : > { %1719 = vst [vmem:[#allocation2 + $0x28] sm:$0xf] %v1713_v5 }
 0x710   : > { %v1762_v9 = vpop.permute.xlu1 %1761  ;;  %v1652_v11 = vpop.permute.xlu0 %1651 }
 0x711   : > { %v1767_v15 = vsel %vm1337_vm4, %v1762_v9, %v1764_v43  ;;  %v1657_v19 = vsel %vm1190_vm14, %v1650_v36, %v1652_v11  ;;  %v1658_v12 = vsel %vm1190_vm14, %v1652_v11, %v1654_v0 }
 0x712   : > { %1773 = vst [vmem:[#allocation2 + $0x40] sm:$0xf] %v1767_v15  ;;  %1663 = vst [vmem:[#allocation2] sm:$0xf] %v1657_v19 }
 0x713   : > { %1664 = vst [vmem:[#allocation2 + $0x8] sm:$0xf] %v1658_v12 }
 0x714   : > { %v1816_v13 = vpop.permute.xlu1 %1815  ;;  %v1706_v20 = vpop.permute.xlu0 %1705 }
 0x715   : > { %v1821_v8 = vsel %vm1411_vm8, %v1816_v13, %v1818_v59  ;;  %v1711_v10 = vsel %vm1264_vm7, %v1704_v33, %v1706_v20  ;;  %v1712_v22 = vsel %vm1264_vm7, %v1706_v20, %v1708_v18 }
 0x716   : > { %1827 = vst [vmem:[#allocation2 + $0x58] sm:$0xf] %v1821_v8  ;;  %1717 = vst [vmem:[#allocation2 + $0x18] sm:$0xf] %v1711_v10 }
 0x717   : > { %1718 = vst [vmem:[#allocation2 + $0x20] sm:$0xf] %v1712_v22 }
 0x718   : > { %v1841_v24 = vpop.permute.xlu1 %1840  ;;  %v1760_v25 = vpop.permute.xlu0 %1759 }
 0x719   : > { %v1846_v26 = vsel %vm932_vm11, %v1841_v24, %v1843_v57  ;;  %v1765_v27 = vsel %vm1337_vm4, %v1758_v63, %v1760_v25  ;;  %v1766_v17 = vsel %vm1337_vm4, %v1760_v25, %v1762_v9 }
 0x71a   : > { %1852 = vst [vmem:[#allocation2 + $0x58] sm:$0xf0] %v1846_v26  ;;  %1771 = vst [vmem:[#allocation2 + $0x30] sm:$0xf] %v1765_v27 }
 0x71b   : > { %1772 = vst [vmem:[#allocation2 + $0x38] sm:$0xf] %v1766_v17 }
 0x71c   : > { %v1895_v28 = vpop.permute.xlu1 %1894  ;;  %v1814_v29 = vpop.permute.xlu0 %1813 }
 0x71d   : > { %v1900_v32 = vsel %vm1005_vm12, %v1895_v28, %v1897_v60  ;;  %v1819_v34 = vsel %vm1411_vm8, %v1812_v1, %v1814_v29  ;;  %v1820_v35 = vsel %vm1411_vm8, %v1814_v29, %v1816_v13 }
 0x71e   : > { %1906 = vst [vmem:[#allocation2 + $0x70] sm:$0xf0] %v1900_v32  ;;  %1825 = vst [vmem:[#allocation2 + $0x48] sm:$0xf] %v1819_v34 }
 0x71f   : > { %1826 = vst [vmem:[#allocation2 + $0x50] sm:$0xf] %v1820_v35 }
 0x720   : > { %v1949_v37 = vpop.permute.xlu1 %1948  ;;  %v1839_v38 = vpop.permute.xlu0 %1838 }
 0x721   : > { %v1954_v39 = vsel %vm1079_vm13, %v1949_v37, %v1951_v46  ;;  %v1844_v40 = vsel %vm932_vm11, %v1837_v23, %v1839_v38  ;;  %v1845_v41 = vsel %vm932_vm11, %v1839_v38, %v1841_v24 }
 0x722   : > { %1960 = vst [vmem:[#allocation2 + $0x88] sm:$0xf0] %v1954_v39  ;;  %1850 = vst [vmem:[#allocation2 + $0x48] sm:$0xf0] %v1844_v40  ;;  %v2028_v40 = vld [vmem:[#allocation2 + $0x58] sm:$0xff] }
 0x723   : > { %1851 = vst [vmem:[#allocation2 + $0x50] sm:$0xf0] %v1845_v41 }
 0x724   : > { %v1679_v21 = vpop.permute.xlu1 %1678  ;;  %v1893_v42 = vpop.permute.xlu0 %1892 }
 0x725   : > { %v1898_v44 = vsel %vm1005_vm12, %v1891_v16, %v1893_v42  ;;  %v1899_v45 = vsel %vm1005_vm12, %v1893_v42, %v1895_v28 }
 0x726   : > { %1904 = vst [vmem:[#allocation2 + $0x60] sm:$0xf0] %v1898_v44  ;;  %1905 = vst [vmem:[#allocation2 + $0x68] sm:$0xf0] %v1899_v45 }
 0x728   : > { %v1685_v30 = vpop.permute.xlu1 %1684  ;;  %v1947_v47 = vpop.permute.xlu0 %1946 }
 0x729   : > { %v1952_v48 = vsel %vm1079_vm13, %v1945_v62, %v1947_v47  ;;  %v1953_v49 = vsel %vm1079_vm13, %v1947_v47, %v1949_v37  ;;  %v2026_v41 = vld [vmem:[#allocation2 + $0x48] sm:$0xff] }
 0x72a   : > { %1958 = vst [vmem:[#allocation2 + $0x78] sm:$0xf0] %v1952_v48  ;;  %1959 = vst [vmem:[#allocation2 + $0x80] sm:$0xf0] %v1953_v49  ;;  %v2027_v32 = vld [vmem:[#allocation2 + $0x50] sm:$0xff] }
 0x72c   : > { %v1733_v50 = vpop.permute.xlu1 %1732  ;;  %v3520_v51 = vpop.permute.xlu0 %2000 }
 0x730   : > { %v1739_v52 = vpop.permute.xlu1 %1738  ;;  %v1866_v53 = vpop.permute.xlu0 %1865 }
 0x734   : > { %v1787_v14 = vpop.permute.xlu1 %1786  ;;  %v1872_v54 = vpop.permute.xlu0 %1871 }
 0x738   : > { %v1793_v55 = vpop.permute.xlu1 %1792  ;;  %v1920_v56 = vpop.permute.xlu0 %1919 }
 0x73c   : > { %v3522_v23 = vpop.permute.xlu1 %1977  ;;  %v3524_v36 = vpop.permute.xlu0 %1925 }
 0x740   : > { %v1683_v57 = vpop.permute.xlu1 %1682  ;;  %v1681_v58 = vpop.permute.xlu0 %1680 }
 0x741   : > { %v1688_v16 = vsel %vm1227_vm3, %v1683_v57, %v1685_v30  ;;  %v1686_v33 = vsel %vm1227_vm3, %v1679_v21, %v1681_v58  ;;  %v1687_v60 = vsel %vm1227_vm3, %v1681_v58, %v1683_v57 }
 0x742   : > { %1694 = vst [vmem:[#allocation2 + $0x10] sm:$0xf0] %v1688_v16  ;;  %1692 = vst [vmem:[#allocation2] sm:$0xf0] %v1686_v33 }
 0x743   : > { %1693 = vst [vmem:[#allocation2 + $0x8] sm:$0xf0] %v1687_v60 }
 0x744   : > { %v1737_v61 = vpop.permute.xlu1 %1736  ;;  %v1735_v62 = vpop.permute.xlu0 %1734 }
 0x745   : > { %v1742_v63 = vsel %vm1042_vm9, %v1737_v61, %v1739_v52  ;;  %v1740_v46 = vsel %vm1042_vm9, %v1733_v50, %v1735_v62  ;;  %v1741_v43 = vsel %vm1042_vm9, %v1735_v62, %v1737_v61 }
 0x746   : > { %1748 = vst [vmem:[#allocation2 + $0x28] sm:$0xf0] %v1742_v63  ;;  %1746 = vst [vmem:[#allocation2 + $0x18] sm:$0xf0] %v1740_v46 }
 0x747   : > { %1747 = vst [vmem:[#allocation2 + $0x20] sm:$0xf0] %v1741_v43 }
 0x748   : > { %v1791_v0 = vpop.permute.xlu1 %1790  ;;  %v1789_v1 = vpop.permute.xlu0 %1788 }
 0x749   : > { %v1796_v3 = vsel %vm1374_vm5, %v1791_v0, %v1793_v55  ;;  %v1794_v18 = vsel %vm1374_vm5, %v1787_v14, %v1789_v1  ;;  %v1795_v59 = vsel %vm1374_vm5, %v1789_v1, %v1791_v0  ;;  %v2019_v9 = vld [vmem:[#allocation2 + $0x10] sm:$0xff]  ;;  %v2017_v11 = vld [vmem:[#allocation2] sm:$0xff] }
 0x74a   : > { %v2018_v5 = vld [vmem:[#allocation2 + $0x8] sm:$0xff]  ;;  %1802 = vst [vmem:[#allocation2 + $0x40] sm:$0xf0] %v1796_v3  ;;  %1800 = vst [vmem:[#allocation2 + $0x30] sm:$0xf0] %v1794_v18  ;;  %2828 = vmatpush3.bf16.msra.mxu1 %v2019_v9 }
 0x74b   : > { %1801 = vst [vmem:[#allocation2 + $0x38] sm:$0xf0] %v1795_v59  ;;  %2047 = vmatprep.subr.bf16.mxu0 %v2018_v5  ;;  %2829 = vmatprep.subr.bf16.mxu1 %v2953_v2 }
 0x74c   : > { %2048 = vmatpush1.bf16.msra.mxu0 %v2017_v11  ;;  %v2003_v15 = vpop.permute.xlu1 %2002  ;;  %v1868_v19 = vpop.permute.xlu0 %1867 }
 0x74d   : > { %v2007_v12 = vsel %vm1153_vm0, %v3520_v51, %v2003_v15  ;;  %v1873_v13 = vsel %vm439_vm2, %v1866_v53, %v1868_v19  ;;  %v2022_v8 = vld [vmem:[#allocation2 + $0x28] sm:$0xff]  ;;  %v2020_v10 = vld [vmem:[#allocation2 + $0x18] sm:$0xff] }
 0x74e   : > { %v2021_v20 = vld [vmem:[#allocation2 + $0x20] sm:$0xff]  ;;  %2013 = vst [vmem:[#allocation2 + $0x98] sm:$0xf0] %v2007_v12  ;;  %1879 = vst [vmem:[#allocation2 + $0x60] sm:$0xf] %v1873_v13  ;;  %2830 = vmatpush3.bf16.msra.mxu1 %v2022_v8 }
 0x74f   : > { %2049 = vmatprep.subr.bf16.mxu0 %v2021_v20  ;;  %2831 = vmatprep.subr.bf16.mxu1 %v2953_v2 }
 0x750   : > { %2050 = vmatpush1.bf16.msra.mxu0 %v2020_v10  ;;  %v1870_v22 = vpop.permute.xlu1 %1869  ;;  %v1922_v24 = vpop.permute.xlu0 %1921 }
 0x751   : > { %v1874_v25 = vsel %vm439_vm2, %v1868_v19, %v1870_v22  ;;  %v1875_v26 = vsel %vm439_vm2, %v1870_v22, %v1872_v54  ;;  %v1927_v27 = vsel %vm1042_vm9, %v1920_v56, %v1922_v24  ;;  %v2025_v28 = vld [vmem:[#allocation2 + $0x40] sm:$0xff]  ;;  %v2023_v29 = vld [vmem:[#allocation2 + $0x30] sm:$0xff]  ;;  %vm2226_vm2 = vcmask 1044224  }
 0x752   : > { %v2024_v17 = vld [vmem:[#allocation2 + $0x38] sm:$0xff]  ;;  %1880 = vst [vmem:[#allocation2 + $0x68] sm:$0xf] %v1874_v25  ;;  %1881 = vst [vmem:[#allocation2 + $0x70] sm:$0xf] %v1875_v26  ;;  %2832 = vmatpush3.bf16.msra.mxu1 %v2025_v28 }
 0x753   : > { %1933 = vst [vmem:[#allocation2 + $0x78] sm:$0xf] %v1927_v27  ;;  %2051 = vmatprep.subr.bf16.mxu0 %v2024_v17  ;;  %2833 = vmatprep.subr.bf16.mxu1 %v2953_v2 }
 0x754   : > { %2052 = vmatpush1.bf16.msra.mxu0 %v2023_v29  ;;  %v1924_v34 = vpop.permute.xlu1 %1923  ;;  %v1976_v35 = vpop.permute.xlu0 %1975 }
 0x755   : > { %2053 = vmatprep.subr.bf16.mxu0 %v2027_v32  ;;  %v1928_v37 = vsel %vm1042_vm9, %v1922_v24, %v1924_v34  ;;  %v1929_v38 = vsel %vm1042_vm9, %v1924_v34, %v3524_v36  ;;  %v1982_v39 = vsel %vm1116_vm6, %v1976_v35, %v3522_v23  ;;  %v2029_v48 = vld [vmem:[#allocation2 + $0x60] sm:$0xff] }
 0x756   : > { %1934 = vst [vmem:[#allocation2 + $0x80] sm:$0xf] %v1928_v37  ;;  %1935 = vst [vmem:[#allocation2 + $0x88] sm:$0xf] %v1929_v38  ;;  %2834 = vmatpush3.bf16.msra.mxu1 %v2028_v40  ;;  %v2930_v36 = vld [vmem:[%s3730_s8] sm:$0xff]  }
 0x757   : > { %1988 = vst [vmem:[#allocation2 + $0x98] sm:$0xf] %v1982_v39  ;;  %2835 = vmatprep.subr.bf16.mxu1 %v2953_v2 }
 0x758   : > { %2054 = vmatpush1.bf16.msra.mxu0 %v2026_v41  ;;  %v1999_v21 = vpop.permute.xlu1 %1998  ;;  %v1974_v42 = vpop.permute.xlu0 %1973 }
 0x759   : > { %v2006_v44 = vsel %vm1153_vm0, %v1999_v21, %v3520_v51  ;;  %v1981_v45 = vsel %vm1116_vm6, %v1974_v42, %v1976_v35  ;;  %v2030_v30 = vld [vmem:[#allocation2 + $0x68] sm:$0xff]  ;;  %v2031_v47 = vld [vmem:[#allocation2 + $0x70] sm:$0xff] }
 0x75a   : > { %2012 = vst [vmem:[#allocation2 + $0x90] sm:$0xf0] %v2006_v44  ;;  %1987 = vst [vmem:[#allocation2 + $0x90] sm:$0xf] %v1981_v45  ;;  %2055 = vmatprep.subr.bf16.mxu0 %v2030_v30  ;;  %2836 = vmatpush3.bf16.msra.mxu1 %v2031_v47  ;;  %v2032_v54 = vld [vmem:[#allocation2 + $0x78] sm:$0xff] }
 0x75b   : > { %2837 = vmatprep.subr.bf16.mxu1 %v2953_v2 }
 0x75c   : > { %2056 = vmatpush1.bf16.msra.mxu0 %v2029_v48  ;;  %v2005_v49 = vpop.permute.xlu1 %2004  ;;  %v1980_v50 = vpop.permute.xlu0 %1979 }
 0x75d   : > { %v2008_v52 = vsel %vm1153_vm0, %v2003_v15, %v2005_v49  ;;  %v1983_v53 = vsel %vm1116_vm6, %v3522_v23, %v1980_v50  ;;  %v2033_v51 = vld [vmem:[#allocation2 + $0x80] sm:$0xff]  ;;  %v2034_v14 = vld [vmem:[#allocation2 + $0x88] sm:$0xff] }
 0x75e   : > { %2014 = vst [vmem:[#allocation2 + $0xa0] sm:$0xf0] %v2008_v52  ;;  %1989 = vst [vmem:[#allocation2 + $0xa0] sm:$0xf] %v1983_v53  ;;  %2057 = vmatprep.subr.bf16.mxu0 %v2033_v51  ;;  %2838 = vmatpush3.bf16.msra.mxu1 %v2034_v14  ;;  %v2036_v55 = vld [vmem:[#allocation2 + $0x98] sm:$0xff] }
 0x75f   : > { %2839 = vmatprep.subr.bf16.mxu1 %v2953_v2 }
 0x760   : > { %2058 = vmatpush1.bf16.msra.mxu0 %v2032_v54 }
 0x761   : > { %2059 = vmatprep.subr.bf16.mxu0 %v2036_v55  ;;  %v2035_v56 = vld [vmem:[#allocation2 + $0x90] sm:$0xff] }
 0x764   : > { %2060 = vmatpush1.bf16.msra.mxu0 %v2035_v56  ;;  %v2200_v56 = vld [vmem:[%s394_s21] sm:$0xff] }
 0x765   : > { %v2037_v57 = vld [vmem:[#allocation2 + $0xa0] sm:$0xff] }
 0x766   : > { %2840 = vmatpush3.bf16.msra.mxu1 %v2037_v57 }
 0x767   : > { %2729 = vmatmul.mubr.msk.bf16.vlgmr.msra.gmra.mrb[8].mxu0 %vm1116_vm6, %v2930_v36 }
 0x768   : > { %2400 = vmatprep.mubr.bf16.mxu0 %v2956_v4 }
 0x769   : > { %2842 = vmatmul.mubr.msk.bf16.vlgmr.msra.gmra.mrb[12].mxu1 %vm1116_vm6, %v2930_v36 }
 0x83a   : > { %v2081_v23 = vpop.f32.mrb[8].mxu0 }
 0x83b   : > { %v2131_v58 = vmul.f32 %v2081_v23, %v3405_v6  ;;  %v2083_v16 = vpop.f32.mrb[9].mxu0 }
 0x83c   : > { %v2132_v2 = vmul.f32 %v2083_v16, %v3407_v7  ;;  %v3566_v33 = vpop.f32.mrb[10].mxu0  ;;  %v2124_v63 = vpop.f32.mrb[12].mxu1 }
 0x83d   : > { %v2147_v60 = vmul.f32 %v2131_v58, %v2081_v23  ;;  %v2134_v61 = vmul.f32 %v3566_v33, %v3405_v6  ;;  %v2087_v62 = vpop.f32.mrb[11].mxu0  ;;  %v2133_v1 = vmul.f32 %v2124_v63, %v3422_v31  ;;  %v2843_v3 = vpop.f32.mrb[13].mxu1 }
 0x83e   : > { %v2137_v46 = vadd.f32 %v2132_v2, %v2131_v58  ;;  %v2148_v43 = vmul.f32 %v2132_v2, %v2083_v16  ;;  %v2135_v0 = vmul.f32 %v2087_v62, %v3407_v7  ;;  %v2127_v59 = vpop.f32.mrb[14].mxu1 }
 0x83f   : > { %v2150_v18 = vmul.f32 %v2134_v61, %v3566_v33  ;;  %v2149_v15 = vmul.f32 %v2133_v1, %v2124_v63  ;;  %v2844_v19 = vpop.f32.mrb[15].mxu1  ;;  %v2136_v12 = vmul.f32 %v2127_v59, %v3422_v31 }
 0x840   : > { %v2153_v5 = vadd.f32 %v2148_v43, %v2147_v60  ;;  %v2141_v9 = vadd.f32 %v2135_v0, %v2134_v61  ;;  %v2151_v11 = vmul.f32 %v2135_v0, %v2087_v62  ;;  %v2138_v13 = vadd.f32 %v2137_v46, %v2133_v1  ;;  %v2201_v46 = vld [vmem:[%s394_s21 + $0x8] sm:$0xf] }
 0x841   : > { %v2152_v10 = vmul.f32 %v2136_v12, %v2127_v59  ;;  %v2203_v60 = vunpack.c.h.bf16 %v2200_v56  ;;  %v2202_v61 = vunpack.c.l.bf16 %v2200_v56 }
 0x842   : > { %v2157_v20 = vadd.f32 %v2151_v11, %v2150_v18  ;;  %v2154_v8 = vadd.f32 %v2153_v5, %v2149_v15  ;;  %2139 = vadd.xlane.f32.xlu0 %v2138_v13  ;;  %v2142_v22 = vadd.f32 %v2141_v9, %v2136_v12  ;;  %v2204_v5 = vunpack.c.l.bf16 %v2201_v46 }
 0x844   : > { %2143 = vadd.xlane.f32.xlu1 %v2142_v22  ;;  %v2158_v24 = vadd.f32 %v2157_v20, %v2152_v10 }
 0x846   : > { %2155 = vadd.xlane.f32.xlu0 %v2154_v8 }
 0x84a   : > { %2159 = vadd.xlane.f32.xlu0 %v2158_v24 }
 0x8cf   : > { %v2140_v25 = vpop.xlane.xlu0 %2139 }
 0x8d0   : > { %v2145_v26 = vmul.f32 0.00390625, %v2140_v25 }
 0x8d1   : > { %v2144_v27 = vpop.xlane.xlu1 %2143 }
 0x8d2   : > { %v2146_v28 = vmul.f32 0.00390625, %v2144_v27  ;;  %v2163_v29 = vmul.f32 %v2145_v26, %v2145_v26  ;;  %v2169_v44 = vsub.f32 %v2081_v23, %v2145_v26  ;;  %v2170_v45 = vsub.f32 %v2083_v16, %v2145_v26 }
 0x8d3   : > { %v2156_v17 = vpop.xlane.xlu0 %2155  ;;  %v2171_v47 = vsub.f32 %v2124_v63, %v2145_v26 }
 0x8d4   : > { %v2161_v32 = vmul.f32 0.00390625, %v2156_v17  ;;  %v2164_v39 = vmul.f32 %v2146_v28, %v2146_v28  ;;  %v2172_v52 = vsub.f32 %v3566_v33, %v2146_v28  ;;  %v2173_v53 = vsub.f32 %v2087_v62, %v2146_v28 }
 0x8d5   : > { %v2174_v14 = vsub.f32 %v2127_v59, %v2146_v28 }
 0x8d6   : > { %v2165_v34 = vsub.f32 %v2161_v32, %v2163_v29 }
 0x8d7   : > { %v2160_v35 = vpop.xlane.xlu0 %2159 }
 0x8d8   : > { %v2167_v37 = vmax.f32 %v2165_v34, 0.0  ;;  %v2162_v38 = vmul.f32 0.00390625, %v2160_v35 }
 0x8da   : > { %v2175_v40 = vadd.f32 1e-05, %v2167_v37  ;;  %v2166_v41 = vsub.f32 %v2162_v38, %v2164_v39 }
 0x8dc   : > { %2939 = vrsqrt.f32 %v2175_v40  ;;  %v2168_v21 = vmax.f32 %v2166_v41, 0.0 }
 0x8de   : > { %v2176_v42 = vadd.f32 1e-05, %v2168_v21 }
 0x8e0   : > { %2941 = vrsqrt.f32 %v2176_v42 }
 0x8e6   : > { %v2940_v30 = vpop.eup %2939 }
 0x8e7   : > { %v2180_v48 = vmul.f32 %v2940_v30, %v2170_v45  ;;  %v2179_v49 = vmul.f32 %v2940_v30, %v2169_v44  ;;  %v2181_v50 = vmul.f32 %v2940_v30, %v2171_v47  ;;  %v3602_v30 = vld [vmem:[%s3731_s9] sm:$0xff]  }
 0x8e8   : > { %2849 = vmatprep.mubr.msk.bf16.mxu1 %vm1042_vm9, %v3602_v30 }
 0x8e9   : > { %v2186_v55 = vmax.f32 %v2180_v48, 0.0  ;;  %v2185_v57 = vmax.f32 %v2179_v49, 0.0  ;;  %v2187_v58 = vmax.f32 %v2181_v50, 0.0 }
 0x8ea   : > { %v2942_v51 = vpop.eup %2941 }
 0x8eb   : > { %v2183_v54 = vmul.f32 %v2942_v51, %v2173_v53  ;;  %v2182_v36 = vmul.f32 %v2942_v51, %v2172_v52  ;;  %v2184_v23 = vmul.f32 %v2942_v51, %v2174_v14  ;;  %v2192_v43 = vmul.f32 %v2186_v55, %v3407_v7 }
 0x8ec   : > { %v2191_v62 = vmul.f32 %v2185_v57, %v3405_v6  ;;  %v2193_v1 = vmul.f32 %v2187_v58, %v3422_v31 }
 0x8ed   : > { %v2189_v16 = vmax.f32 %v2183_v54, 0.0  ;;  %v2188_v2 = vmax.f32 %v2182_v36, 0.0  ;;  %v2190_v63 = vmax.f32 %v2184_v23, 0.0 }
 0x8ef   : > { %v2195_v33 = vmul.f32 %v2189_v16, %v3407_v7  ;;  %v2194_v0 = vmul.f32 %v2188_v2, %v3405_v6  ;;  %v2196_v3 = vmul.f32 %v2190_v63, %v3422_v31 }
 0x8f1   : > { %v2198_v18 = vadd.f32 %v2195_v33, %v2192_v43  ;;  %v2197_v59 = vadd.f32 %v2194_v0, %v2191_v62  ;;  %v2199_v9 = vadd.f32 %v2196_v3, %v2193_v1 }
 0x8f3   : > { %v2206_v11 = vadd.f32 %v2203_v60, %v2198_v18  ;;  %v2205_v15 = vadd.f32 %v2202_v61, %v2197_v59  ;;  %v2207_v13 = vadd.f32 %v2204_v5, %v2199_v9 }
 0x8f5   : > { %v2209_v19 = vpack.c.bf16 %v2206_v11, %v2206_v11  ;;  %v2208_v12 = vpack.c.bf16 %v2205_v15, %v2205_v15  ;;  %v2210_v20 = vpack.c.bf16 %v2207_v13, %v2207_v13 }
 0x8f7   : > { %2216 = vrot.lane.b32.xlu0 %v2209_v19, %s2966_s15  ;;  %2214 = vrot.lane.b32.xlu1 %v2208_v12, %s2966_s15 }
 0x8fb   : > { %2218 = vrot.lane.b32.xlu1 %v2210_v20, %s2966_s15  ;;  %s2979_s15 = smov 7  }
 0x969   : > { %v2217_v8 = vpop.permute.xlu0 %2216  ;;  %v2215_v10 = vpop.permute.xlu1 %2214 }
 0x96a   : > { %v2220_v22 = vsel %vm409_vm15, %v2215_v10, %v2217_v8  ;;  %2227 = vst.msk [vmem:[#allocation4] sm:$0xf] %vm2226_vm2, %v2215_v10 }
 0x96b   : > { %2228 = vst [vmem:[#allocation4 + $0x8] sm:$0xf] %v2220_v22 }
 0x96d   : > { %v2219_v24 = vpop.permute.xlu1 %2218 }
 0x96e   : > { %v2221_v25 = vsel %vm409_vm15, %v2217_v8, %v2219_v24  ;;  %2231 = vst.msk [vmem:[#allocation4 + $0x18] sm:$0xf] %vm2230_vm10, %v2219_v24  ;;  %vm2331_vm15 = vcmask 56320  }
 0x96f   : > { %2229 = vst [vmem:[#allocation4 + $0x10] sm:$0xf] %v2221_v25  ;;  %v2932_v25 = vld [vmem:[%s3731_s9 + $0x8] sm:$0xff]  }
 0x971   : > { %v2232_v26 = vld [vmem:[#allocation4] sm:$0xf] }
 0x972   : > { %2240 = vrot.lane.b32.xlu1 %v2232_v26, %s2974_s24  ;;  %v2286_v27 = vld [vmem:[#allocation4] sm:$0xf]  ;;  %v2233_v28 = vld [vmem:[#allocation4 + $0x8] sm:$0xf] }
 0x973   : > { %v2257_v32 = vld [vmem:[#allocation4] sm:$0xf]  ;;  %v2287_v34 = vld [vmem:[#allocation4 + $0x8] sm:$0xf] }
 0x974   : > { %v2265_v35 = vrot.slane %v2257_v32, 4  ;;  %v2258_v37 = vld [vmem:[#allocation4 + $0x8] sm:$0xf]  ;;  %v2311_v38 = vld [vmem:[#allocation4] sm:$0xf] }
 0x975   : > { %v2266_v39 = vrot.slane %v2258_v37, 4  ;;  %v2319_v40 = vrot.slane %v2311_v38, 4  ;;  %v2312_v41 = vld [vmem:[#allocation4 + $0x8] sm:$0xf]  ;;  %v2235_v47 = vld [vmem:[#allocation4 + $0x18] sm:$0xf] }
 0x976   : > { %2294 = vrot.lane.b32.xlu1 %v2286_v27, %s2973_s23  ;;  %v2234_v17 = vld [vmem:[#allocation4 + $0x10] sm:$0xf]  ;;  %v2320_v42 = vrot.slane %v2312_v41, 4  ;;  %v2260_v49 = vld [vmem:[#allocation4 + $0x18] sm:$0xf] }
 0x977   : > { %2244 = vrot.lane.b32.xlu0 %v2234_v17, %s2974_s24  ;;  %v2288_v29 = vld [vmem:[#allocation4 + $0x10] sm:$0xf]  ;;  %v2289_v50 = vld [vmem:[#allocation4 + $0x18] sm:$0xf]  ;;  %v2268_v52 = vrot.slane %v2260_v49, 4 }
 0x978   : > { %v2259_v21 = vld [vmem:[#allocation4 + $0x10] sm:$0xf]  ;;  %v2314_v53 = vld [vmem:[#allocation4 + $0x18] sm:$0xf] }
 0x979   : > { %v2267_v44 = vrot.slane %v2259_v21, 4  ;;  %v2313_v45 = vld [vmem:[#allocation4 + $0x10] sm:$0xf]  ;;  %v2322_v51 = vrot.slane %v2314_v53, 4 }
 0x97a   : > { %2242 = vrot.lane.b32.xlu1 %v2233_v28, %s2974_s24  ;;  %v2321_v48 = vrot.slane %v2313_v45, 4 }
 0x97b   : > { %2298 = vrot.lane.b32.xlu0 %v2288_v29, %s2973_s23 }
 0x97e   : > { %2296 = vrot.lane.b32.xlu1 %v2287_v34, %s2973_s23 }
 0x97f   : > { %2269 = vrot.lane.b32.xlu0 %v2265_v35, %s2978_s28 }
 0x982   : > { %2271 = vrot.lane.b32.xlu1 %v2266_v39, %s2978_s28 }
 0x983   : > { %2323 = vrot.lane.b32.xlu0 %v2319_v40, %s2979_s15 }
 0x986   : > { %2325 = vrot.lane.b32.xlu1 %v2320_v42, %s2979_s15 }
 0x987   : > { %2273 = vrot.lane.b32.xlu0 %v2267_v44, %s2978_s28 }
 0x98a   : > { %2246 = vrot.lane.b32.xlu1 %v2235_v47, %s2974_s24 }
 0x98b   : > { %2327 = vrot.lane.b32.xlu0 %v2321_v48, %s2979_s15 }
 0x98e   : > { %2300 = vrot.lane.b32.xlu1 %v2289_v50, %s2973_s23 }
 0x98f   : > { %2275 = vrot.lane.b32.xlu0 %v2268_v52, %s2978_s28  ;;  %s3705_s28 = scalar_lea.vmem %s3732_s10, %s2855_s26 }
 0x993   : > { %2329 = vrot.lane.b32.xlu0 %v2322_v51, %s2979_s15 }
 0x9e4   : > { %v2241_v14 = vpop.permute.xlu1 %2240 }
 0x9e8   : > { %v2295_v54 = vpop.permute.xlu1 %2294 }
 0x9e9   : > { %v2245_v55 = vpop.permute.xlu0 %2244 }
 0x9ec   : > { %v2243_v56 = vpop.permute.xlu1 %2242 }
 0x9ed   : > { %v2248_v36 = vsel %vm1042_vm9, %v2241_v14, %v2243_v56  ;;  %v2249_v57 = vsel %vm1042_vm9, %v2243_v56, %v2245_v55  ;;  %v2299_v23 = vpop.permute.xlu0 %2298 }
 0x9ee   : > { %2254 = vst [vmem:[#allocation2] sm:$0xf] %v2248_v36  ;;  %2255 = vst [vmem:[#allocation2 + $0x8] sm:$0xf] %v2249_v57 }
 0x9f0   : > { %v2297_v58 = vpop.permute.xlu1 %2296 }
 0x9f1   : > { %v2302_v16 = vsel %vm1079_vm13, %v2295_v54, %v2297_v58  ;;  %v2303_v2 = vsel %vm1079_vm13, %v2297_v58, %v2299_v23  ;;  %v2270_v60 = vpop.permute.xlu0 %2269 }
 0x9f2   : > { %2308 = vst [vmem:[#allocation2 + $0x18] sm:$0xf] %v2302_v16  ;;  %2309 = vst [vmem:[#allocation2 + $0x20] sm:$0xf] %v2303_v2 }
 0x9f4   : > { %v2272_v61 = vpop.permute.xlu1 %2271 }
 0x9f5   : > { %v2277_v63 = vsel %vm1337_vm4, %v2270_v60, %v2272_v61  ;;  %v2324_v46 = vpop.permute.xlu0 %2323 }
 0x9f6   : > { %2283 = vst [vmem:[#allocation2] sm:$0xf0] %v2277_v63 }
 0x9f8   : > { %v2326_v43 = vpop.permute.xlu1 %2325 }
 0x9f9   : > { %v2332_v33 = vsel %vm2331_vm15, %v2324_v46, %v2326_v43  ;;  %v2274_v62 = vpop.permute.xlu0 %2273 }
 0x9fa   : > { %2338 = vst [vmem:[#allocation2 + $0x18] sm:$0xf0] %v2332_v33  ;;  %v2278_v0 = vsel %vm1337_vm4, %v2272_v61, %v2274_v62 }
 0x9fb   : > { %2284 = vst [vmem:[#allocation2 + $0x8] sm:$0xf0] %v2278_v0 }
 0x9fc   : > { %v2247_v1 = vpop.permute.xlu1 %2246 }
 0x9fd   : > { %v2250_v3 = vsel %vm1042_vm9, %v2245_v55, %v2247_v1  ;;  %v2328_v18 = vpop.permute.xlu0 %2327  ;;  %v2345_v12 = vld [vmem:[#allocation2] sm:$0xff] }
 0x9fe   : > { %2256 = vst [vmem:[#allocation2 + $0x10] sm:$0xf] %v2250_v3  ;;  %v2333_v59 = vsel %vm2331_vm15, %v2326_v43, %v2328_v18 }
 0x9ff   : > { %2339 = vst [vmem:[#allocation2 + $0x20] sm:$0xf0] %v2333_v59 }
 0xa00   : > { %v2301_v5 = vpop.permute.xlu1 %2300 }
 0xa01   : > { %v2304_v9 = vsel %vm1079_vm13, %v2299_v23, %v2301_v5  ;;  %v2276_v11 = vpop.permute.xlu0 %2275  ;;  %v2348_v10 = vld [vmem:[#allocation2 + $0x18] sm:$0xff] }
 0xa02   : > { %2310 = vst [vmem:[#allocation2 + $0x28] sm:$0xf] %v2304_v9  ;;  %v2279_v15 = vsel %vm1337_vm4, %v2274_v62, %v2276_v11  ;;  %v2346_v19 = vld [vmem:[#allocation2 + $0x8] sm:$0xff] }
 0xa03   : > { %2285 = vst [vmem:[#allocation2 + $0x10] sm:$0xf0] %v2279_v15  ;;  %2368 = vmatprep.subr.bf16.mxu0 %v2346_v19 }
 0xa04   : > { %2369 = vmatpush1.bf16.msra.mxu0 %v2345_v12 }
 0xa05   : > { %v2330_v13 = vpop.permute.xlu0 %2329 }
 0xa06   : > { %v2334_v20 = vsel %vm2331_vm15, %v2328_v18, %v2330_v13  ;;  %v2349_v8 = vld [vmem:[#allocation2 + $0x20] sm:$0xff] }
 0xa07   : > { %2340 = vst [vmem:[#allocation2 + $0x28] sm:$0xf0] %v2334_v20  ;;  %2370 = vmatprep.subr.bf16.mxu0 %v2349_v8 }
 0xa08   : > { %2371 = vmatpush1.bf16.msra.mxu0 %v2348_v10 }
 0xa0a   : > { %v2347_v22 = vld [vmem:[#allocation2 + $0x10] sm:$0xff] }
 0xa0b   : > { %2733 = vmatmul.mubr.msk.bf16.vlgmr.msra.gmra.mrb[12].mxu0 %vm1042_vm9, %v3602_v30  ;;  %2845 = vmatprep.subr.bf16.mxu1 %v2347_v22 }
 0xa0c   : > { %2846 = vmatpush3.bf16.msra.mxu1 %v2347_v22  ;;  %2410 = vmatprep.mubr.bf16.mxu0 %v2956_v4 }
 0xa0e   : > { %v2350_v24 = vld [vmem:[#allocation2 + $0x28] sm:$0xff] }
 0xa0f   : > { %2847 = vmatprep.subr.bf16.mxu1 %v2350_v24 }
 0xa10   : > { %2848 = vmatpush3.bf16.msra.mxu1 %v2350_v24 }
 0xa13   : > { %2734 = vmatmul.mubr.msk.bf16.gmra.mrb[16].mxu0 %vm1042_vm9, %v2932_v25  ;;  %2850 = vmatmul.mubr.msk.bf16.vlgmr.msra.gmra.mrb[16].mxu1 %vm1042_vm9, %v2932_v25 }
 0xade   : > { %v3629_v26 = vpop.f32.mrb[12].mxu0 }
 0xadf   : > { %v2470_v27 = vmul.f32 %v3629_v26, %v3405_v6  ;;  %v3633_v17 = vpop.f32.mrb[13].mxu0 }
 0xae0   : > { %v2471_v4 = vmul.f32 %v3633_v17, %v3407_v7  ;;  %v3637_v28 = vpop.f32.mrb[14].mxu0 }
 0xae1   : > { %v2498_v29 = vmul.f32 %v2470_v27, %v3629_v26  ;;  %v2473_v32 = vmul.f32 %v3637_v28, %v3405_v6  ;;  %v3642_v34 = vpop.f32.mrb[15].mxu0 }
 0xae2   : > { %v2482_v35 = vadd.f32 %v2471_v4, %v2470_v27  ;;  %v2499_v37 = vmul.f32 %v2471_v4, %v3633_v17  ;;  %v2474_v38 = vmul.f32 %v3642_v34, %v3407_v7 }
 0xae3   : > { %v2501_v39 = vmul.f32 %v2473_v32, %v3637_v28 }
 0xae4   : > { %v2510_v40 = vadd.f32 %v2499_v37, %v2498_v29  ;;  %v2486_v41 = vadd.f32 %v2474_v38, %v2473_v32  ;;  %v2502_v21 = vmul.f32 %v2474_v38, %v3642_v34 }
 0xae6   : > { %v2514_v42 = vadd.f32 %v2502_v21, %v2501_v39  ;;  %v3649_v44 = vpop.f32.mrb[16].mxu0  ;;  %v3651_v45 = vpop.f32.mrb[16].mxu1 }
 0xae7   : > { %v2476_v30 = vmul.f32 %v3649_v44, %v3405_v6  ;;  %v2478_v47 = vmul.f32 %v3651_v45, %v3422_v31  ;;  %v3657_v48 = vpop.f32.mrb[17].mxu0  ;;  %v3659_v49 = vpop.f32.mrb[17].mxu1 }
 0xae8   : > { %v2477_v50 = vmul.f32 %v3657_v48, %v3407_v7  ;;  %v2472_v52 = vmul.f32 %v3659_v49, %v3422_v31  ;;  %v3665_v53 = vpop.f32.mrb[18].mxu0  ;;  %v3667_v51 = vpop.f32.mrb[18].mxu1 }
 0xae9   : > { %v2504_v14 = vmul.f32 %v2476_v30, %v3649_v44  ;;  %v2479_v54 = vmul.f32 %v3665_v53, %v3405_v6  ;;  %v2481_v55 = vmul.f32 %v3667_v51, %v3422_v31  ;;  %v3674_v56 = vpop.f32.mrb[19].mxu0  ;;  %v3676_v36 = vpop.f32.mrb[19].mxu1  ;;  %v2506_v2 = vmul.f32 %v3651_v45, %v2478_v47 }
 0xaea   : > { %v2490_v57 = vadd.f32 %v2477_v50, %v2476_v30  ;;  %v2505_v23 = vmul.f32 %v2477_v50, %v3657_v48  ;;  %v2500_v58 = vmul.f32 %v2472_v52, %v3659_v49  ;;  %v2480_v16 = vmul.f32 %v3674_v56, %v3407_v7 }
 0xaeb   : > { %v2507_v60 = vmul.f32 %v2479_v54, %v3665_v53  ;;  %v2475_v6 = vmul.f32 %v3676_v36, %v3422_v31  ;;  %v2483_v61 = vadd.f32 %v2482_v35, %v2472_v52  ;;  %v2509_v7 = vmul.f32 %v3667_v51, %v2481_v55 }
 0xaec   : > { %v2518_v63 = vadd.f32 %v2505_v23, %v2504_v14  ;;  %v2494_v46 = vadd.f32 %v2480_v16, %v2479_v54  ;;  %v2508_v43 = vmul.f32 %v2480_v16, %v3674_v56  ;;  %v2511_v33 = vadd.f32 %v2510_v40, %v2500_v58 }
 0xaed   : > { %v2487_v62 = vadd.f32 %v2486_v41, %v2475_v6  ;;  %v2503_v0 = vmul.f32 %v2475_v6, %v3676_v36  ;;  %2484 = vadd.xlane.f32.xlu1 %v2483_v61  ;;  %v2491_v1 = vadd.f32 %v2490_v57, %v2478_v47 }
 0xaee   : > { %v2522_v3 = vadd.f32 %v2508_v43, %v2507_v60  ;;  %v2495_v18 = vadd.f32 %v2494_v46, %v2481_v55  ;;  %v2519_v59 = vadd.f32 %v2518_v63, %v2506_v2 }
 0xaef   : > { %v2515_v5 = vadd.f32 %v2514_v42, %v2503_v0  ;;  %2488 = vadd.xlane.f32.xlu0 %v2487_v62 }
 0xaf0   : > { %v2523_v9 = vadd.f32 %v2522_v3, %v2509_v7 }
 0xaf1   : > { %2512 = vadd.xlane.f32.xlu1 %v2511_v33 }
 0xaf3   : > { %2516 = vadd.xlane.f32.xlu0 %v2515_v5 }
 0xaf5   : > { %2496 = vadd.xlane.f32.xlu1 %v2495_v18 }
 0xaf7   : > { %2492 = vadd.xlane.f32.xlu0 %v2491_v1 }
 0xaf9   : > { %2524 = vadd.xlane.f32.xlu1 %v2523_v9 }
 0xafb   : > { %2520 = vadd.xlane.f32.xlu0 %v2519_v59 }
 0xb7a   : > { %v2485_v31 = vpop.xlane.xlu1 %2484 }
 0xb7c   : > { %v2489_v11 = vpop.xlane.xlu0 %2488 }
 0xb7d   : > { %v2526_v12 = vadd.f32 %v2489_v11, %v2485_v31 }
 0xb7e   : > { %v2513_v19 = vpop.xlane.xlu1 %2512 }
 0xb80   : > { %v2517_v15 = vpop.xlane.xlu0 %2516 }
 0xb81   : > { %v2529_v10 = vadd.f32 %v2517_v15, %v2513_v19 }
 0xb82   : > { %v2497_v8 = vpop.xlane.xlu1 %2496 }
 0xb84   : > { %v2493_v13 = vpop.xlane.xlu0 %2492 }
 0xb85   : > { %v2527_v20 = vadd.f32 %v2526_v12, %v2493_v13 }
 0xb86   : > { %v2525_v4 = vpop.xlane.xlu1 %2524 }
 0xb87   : > { %v2528_v22 = vadd.f32 %v2527_v20, %v2497_v8 }
 0xb88   : > { %v2521_v24 = vpop.xlane.xlu0 %2520 }
 0xb89   : > { %v2530_v25 = vadd.f32 %v2529_v10, %v2521_v24  ;;  %v2532_v27 = vmul.f32 0.0009765625, %v2528_v22 }
 0xb8b   : > { %v2531_v29 = vadd.f32 %v2530_v25, %v2525_v4  ;;  %v2534_v32 = vmul.f32 %v2532_v27, %v2532_v27  ;;  %v2539_v40 = vsub.f32 %v3629_v26, %v2532_v27  ;;  %v2540_v41 = vsub.f32 %v3633_v17, %v2532_v27 }
 0xb8c   : > { %v2541_v21 = vsub.f32 %v3659_v49, %v2532_v27  ;;  %v2551_v42 = vsub.f32 %v3637_v28, %v2532_v27  ;;  %v2552_v30 = vsub.f32 %v3642_v34, %v2532_v27  ;;  %v2553_v47 = vsub.f32 %v3676_v36, %v2532_v27 }
 0xb8d   : > { %v2533_v35 = vmul.f32 0.0009765625, %v2531_v29  ;;  %v2564_v50 = vsub.f32 %v3649_v44, %v2532_v27  ;;  %v2565_v52 = vsub.f32 %v3657_v48, %v2532_v27  ;;  %v2566_v54 = vsub.f32 %v3651_v45, %v2532_v27 }
 0xb8e   : > { %v2577_v55 = vsub.f32 %v3665_v53, %v2532_v27  ;;  %v2578_v26 = vsub.f32 %v3674_v56, %v2532_v27  ;;  %v2579_v17 = vsub.f32 %v3667_v51, %v2532_v27 }
 0xb8f   : > { %v2535_v37 = vsub.f32 %v2533_v35, %v2534_v32 }
 0xb91   : > { %v2536_v38 = vmax.f32 %v2535_v37, 0.0 }
 0xb93   : > { %v2537_v39 = vadd.f32 1e-05, %v2536_v38 }
 0xb95   : > { %2943 = vrsqrt.f32 %v2537_v39 }
 0xb9f   : > { %v2944_v14 = vpop.eup %2943 }
 0xba0   : > { %v2542_v49 = vmul.f32 %v2944_v14, %v2539_v40  ;;  %v2543_v57 = vmul.f32 %v2944_v14, %v2540_v41  ;;  %v2544_v28 = vmul.f32 %v2944_v14, %v2541_v21  ;;  %v2554_v23 = vmul.f32 %v2944_v14, %v2551_v42 }
 0xba1   : > { %v2555_v34 = vmul.f32 %v2944_v14, %v2552_v30  ;;  %v2556_v44 = vmul.f32 %v2944_v14, %v2553_v47  ;;  %v2567_v45 = vmul.f32 %v2944_v14, %v2564_v50  ;;  %v2568_v48 = vmul.f32 %v2944_v14, %v2565_v52 }
 0xba2   : > { %v2545_v53 = vmax.f32 %v2542_v49, 0.0  ;;  %v2546_v51 = vmax.f32 %v2543_v57, 0.0  ;;  %v2547_v56 = vmax.f32 %v2544_v28, 0.0  ;;  %v2557_v36 = vmax.f32 %v2554_v23, 0.0 }
 0xba3   : > { %v2558_v58 = vmax.f32 %v2555_v34, 0.0  ;;  %v2559_v16 = vmax.f32 %v2556_v44, 0.0  ;;  %v2569_v2 = vmul.f32 %v2944_v14, %v2566_v54  ;;  %v2570_v60 = vmax.f32 %v2567_v45, 0.0 }
 0xba4   : > { %2548 = vst [vmem:[%s3705_s28] sm:$0xff] %v2545_v53  ;;  %2549 = vst [vmem:[%s3705_s28 + $0x8] sm:$0xff] %v2546_v51  ;;  %v2571_v6 = vmax.f32 %v2568_v48, 0.0  ;;  %v2580_v61 = vmul.f32 %v2944_v14, %v2577_v55  ;;  %v2581_v63 = vmul.f32 %v2944_v14, %v2578_v26  ;;  %v2582_v46 = vmul.f32 %v2944_v14, %v2579_v17 }
 0xba5   : > { %2550 = vst [vmem:[%s3705_s28 + $0x10] sm:$0xff] %v2547_v56  ;;  %2737 = vst [vmem:[%s3705_s28 + $0x18] sm:$0xff] %v2557_v36  ;;  %v2572_v43 = vmax.f32 %v2569_v2, 0.0 }
 0xba6   : > { %2738 = vst [vmem:[%s3705_s28 + $0x20] sm:$0xff] %v2558_v58  ;;  %2739 = vst [vmem:[%s3705_s28 + $0x28] sm:$0xff] %v2559_v16  ;;  %v2583_v33 = vmax.f32 %v2580_v61, 0.0  ;;  %v2584_v62 = vmax.f32 %v2581_v63, 0.0  ;;  %v2585_v0 = vmax.f32 %v2582_v46, 0.0 }
 0xba7   : > { %2740 = vst [vmem:[%s3705_s28 + $0x30] sm:$0xff] %v2570_v60  ;;  %2741 = vst [vmem:[%s3705_s28 + $0x38] sm:$0xff] %v2571_v6 }
 0xba8   : > { %2742 = vst [vmem:[%s3705_s28 + $0x40] sm:$0xff] %v2572_v43  ;;  %2743 = vst [vmem:[%s3705_s28 + $0x48] sm:$0xff] %v2583_v33 }
 0xba9   : > { %2744 = vst [vmem:[%s3705_s28 + $0x50] sm:$0xff] %v2584_v62  ;;  %2745 = vst [vmem:[%s3705_s28 + $0x58] sm:$0xff] %v2585_v0 }
 0xbaa PF: > { %s20_s13 = sadd.s32 1, %s2951_s13  }
 0xbab   : > { %p17_p4 = scmp.ge.s32.totalorder %s20_s13, 4  }
 0xbad   :  { %19 = sbr.rel (!%p17_p4) target bundleno = 1 (0x1), region = 99 }

</bundles_post_ra>
